<compile_context>
chip_gen: v7x
topology: tpu7x:2x2x1
jax: 0.10.0
libtpu: 0.0.40
codegen_flags: <defaults>
</compile_context>

<pallas_src>
import functools

import jax
import jax.numpy as jnp
from jax.experimental import pallas as pl
from jax.experimental.pallas import tpu as pltpu


def _round_up(x, m):
    return ((x + m - 1) // m) * m


# --------------------------------------------------------------------- in-kernel helpers

def _mm(a, w_bf16):
    """Weight matmul: cast activations to bf16 at the MXU boundary, accumulate f32."""
    return jnp.dot(a.astype(jnp.bfloat16), w_bf16, preferred_element_type=jnp.float32)


def _attention(q, ks, vs, n_heads):
    """Softmax MHA (scale already folded into Wq).

    q: (bt*Lq, D) f32; ks/vs: length-bt lists of (Lk, D) f32.
    Returns the merged (bt*Lq, D) per-head-concatenated attention output
    (pre output-projection), so a single Wo matmul can follow.
    The QK^T score uses a transposed-RHS dot_general (native MXU lowering,
    no K^T materialization).
    """
    bt = len(ks)
    total_lq, D = q.shape
    lq = total_lq // bt
    dh = D // n_heads
    nt_dims = (((1,), (1,)), ((), ()))            # contract last dims (Q @ K^T)
    outs = []
    for b in range(bt):
        qb = q[b * lq:(b + 1) * lq, :]
        kb, vb = ks[b], vs[b]
        heads = []
        for h in range(n_heads):
            sl = slice(h * dh, (h + 1) * dh)
            s = jax.lax.dot_general(qb[:, sl], kb[:, sl], nt_dims,
                                    preferred_element_type=jnp.float32)
            m = jnp.max(s, axis=-1, keepdims=True)
            e = jnp.exp(s - m)
            p = e * pl.reciprocal(jnp.sum(e, axis=-1, keepdims=True), approx=True)
            heads.append(jnp.dot(p, vb[:, sl], preferred_element_type=jnp.float32))
        outs.append(jnp.concatenate(heads, axis=-1))     # (lq, D)
    return jnp.concatenate(outs, axis=0)                  # (bt*lq, D)


def _decomp(y, wma, bt, L):
    """series_decomp via an (L, L) moving-average matrix (replicate pad folded in).

    y: (bt*L, D) f32.  One f32 MXU matmul per batch row replaces the k-1
    unaligned shifted-slice adds.  Returns (seasonal, trend_mean).
    """
    means = []
    for b in range(bt):
        yb = y[b * L:(b + 1) * L, :]
        means.append(jnp.dot(wma, yb, preferred_element_type=jnp.float32))
    mean = jnp.concatenate(means, axis=0) if bt > 1 else means[0]
    return y - mean, mean


def _my_layernorm(x, gamma, beta, bt, L, D):
    """my_Layernorm: LayerNorm over channels, then subtract the per-batch seq-mean."""
    mu = jnp.mean(x, axis=-1, keepdims=True)
    var = jnp.mean((x - mu) ** 2, axis=-1, keepdims=True)
    x_hat = (x - mu) * jax.lax.rsqrt(var + 1e-5) * gamma + beta
    x3 = x_hat.reshape(bt, L, D)
    x3 = x3 - jnp.mean(x3, axis=1, keepdims=True)
    return x3.reshape(bt * L, D)


def _trend_conv(rt, wtr, bt, L, D):
    """Circular k=3 Conv1d(d_model -> c_out) on the layer trend.

    Row permutation commutes with right-multiplication, so the circular rolls are
    applied to the (L, Cp) outputs (cheap XLU sublane roll) instead of the (L, D)
    inputs.  Tap order in wtr rows: [t-1 | t | t+1].
    """
    a = _mm(rt, wtr[0:D, :])           # tap t-1 -> roll +1
    c0 = _mm(rt, wtr[D:2 * D, :])      # tap t
    c1 = _mm(rt, wtr[2 * D:, :])       # tap t+1 -> roll -1 (== +L-1)
    pieces = []
    for b in range(bt):
        rows = slice(b * L, (b + 1) * L)
        pieces.append(pltpu.roll(a[rows, :], 1, 0)
                      + c0[rows, :]
                      + pltpu.roll(c1[rows, :], L - 1, 0))
    return jnp.concatenate(pieces, axis=0) if bt > 1 else pieces[0]


# --------------------------------------------------------------------- fused decoder kernel

def _decoder_kernel(x_ref, cross_ref, trend_ref, wma_ref,
                    wqkv_s_ref, bqkv_s_ref, wo_s_ref, bo_s_ref,
                    wq_c_ref, bq_c_ref, wkv_c_ref, bkv_c_ref, wo_c_ref, bo_c_ref,
                    wc1_ref, wc2_ref, wtr_ref,
                    gamma_ref, beta_ref, projw_ref, projb_ref,
                    x_out_ref, trend_out_ref,
                    x_state, trend_state,
                    *, n_heads, d_model, bt, L, S, c_pad):
    l = pl.program_id(1)
    num_layers = pl.num_programs(1)
    D = d_model

    # seasonal / trend state: load at layer 0, otherwise carry in VMEM scratch
    @pl.when(l == 0)
    def _():
        x_state[...] = x_ref[...].reshape(bt * L, D)
        trend_state[...] = trend_ref[...].reshape(bt * L, c_pad)

    x = x_state[...]                                # (bt*L, D) f32
    wma = wma_ref[...]                              # (L, L) f32

    # ---- self attention (fused QKV, merged over batch rows; Wq pre-scaled) -----
    qkv = _mm(x, wqkv_s_ref[0]) + bqkv_s_ref[0]     # (bt*L, 3D)
    ks = [qkv[b * L:(b + 1) * L, D:2 * D] for b in range(bt)]
    vs = [qkv[b * L:(b + 1) * L, 2 * D:] for b in range(bt)]
    attn = _attention(qkv[:, :D], ks, vs, n_heads)
    attn = _mm(attn, wo_s_ref[0]) + bo_s_ref[0]     # single Wo matmul
    x, t1 = _decomp(x + attn, wma, bt, L)

    # ---- cross attention (KV projection of the encoder output, per batch row) --
    q = _mm(x, wq_c_ref[0]) + bq_c_ref[0]           # (bt*L, D)
    ks, vs = [], []
    for b in range(bt):
        kv_b = _mm(cross_ref[b], wkv_c_ref[0]) + bkv_c_ref[0]   # (S, 2D)
        ks.append(kv_b[:, :D])
        vs.append(kv_b[:, D:])
    attn = _attention(q, ks, vs, n_heads)
    attn = _mm(attn, wo_c_ref[0]) + bo_c_ref[0]
    x, t2 = _decomp(x + attn, wma, bt, L)

    # ---- feed forward: 1x1 conv -> relu -> 1x1 conv (bias-free) ----------------
    y = jnp.maximum(_mm(x, wc1_ref[0]), 0.0)
    y = _mm(y, wc2_ref[0])
    x, t3 = _decomp(x + y, wma, bt, L)

    x_state[...] = x                                # carry seasonal to next layer

    # ---- circular k=3 trend Conv1d + trend accumulation (VMEM scratch) ---------
    res_trend = _trend_conv(t1 + t2 + t3, wtr_ref[0], bt, L, D)
    trend_state[...] = trend_state[...] + res_trend

    # ---- final my_Layernorm + Linear projection after the last layer -----------
    @pl.when(l == num_layers - 1)
    def _():
        xn = _my_layernorm(x, gamma_ref[...], beta_ref[...], bt, L, D)
        out = _mm(xn, projw_ref[...]) + projb_ref[...]
        x_out_ref[...] = out.reshape(bt, L, c_pad)
        trend_out_ref[...] = trend_state[...].reshape(bt, L, c_pad)


# --------------------------------------------------------------------- wrapper

def _moving_avg_matrix(L, k):
    """(L, L) matrix M so that M @ x == moving_avg(x) with replicate padding."""
    half = (k - 1) // 2
    idx = jnp.clip(jnp.arange(L)[:, None] + jnp.arange(-half, half + 1)[None, :],
                   0, L - 1)                                     # (L, k)
    return jax.nn.one_hot(idx, L, dtype=jnp.float32).sum(axis=1) / float(k)


def _prepare_params(params, n_heads, c_pad):
    """Fuse QKV / KV, fold 1/sqrt(d_head) into Wq, stack per-layer weights on a
    leading layer axis, cast weight matrices to bf16, pad trend-conv to c_pad."""
    layers = params["layers"]
    d_model = layers[0]["self_attn"]["wq"].shape[0]
    c_out = layers[0]["w_trend"].shape[-1]
    scale = 1.0 / float(d_model // n_heads) ** 0.5
    wdt = jnp.bfloat16

    def per_layer(lp):
        sa, ca = lp["self_attn"], lp["cross_attn"]
        return dict(
            wqkv_s=jnp.concatenate([sa["wq"] * scale, sa["wk"], sa["wv"]],
                                   axis=1).astype(wdt),
            bqkv_s=jnp.concatenate([sa["bq"] * scale, sa["bk"], sa["bv"]])[None, :],
            wo_s=sa["wo"].astype(wdt), bo_s=sa["bo"][None, :],
            wq_c=(ca["wq"] * scale).astype(wdt), bq_c=(ca["bq"] * scale)[None, :],
            wkv_c=jnp.concatenate([ca["wk"], ca["wv"]], axis=1).astype(wdt),
            bkv_c=jnp.concatenate([ca["bk"], ca["bv"]])[None, :],
            wo_c=ca["wo"].astype(wdt), bo_c=ca["bo"][None, :],
            w_conv1=lp["w_conv1"].astype(wdt), w_conv2=lp["w_conv2"].astype(wdt),
            w_trend=jnp.pad(lp["w_trend"],
                            ((0, 0), (0, c_pad - c_out))).astype(wdt),
        )

    per = [per_layer(lp) for lp in layers]
    return {k: jnp.stack([p[k] for p in per], axis=0) for k in per[0]}


def decoder_forward(params, x, cross, trend, *, n_heads, moving_avg,
                    batch_block=None):
    """Decoder.forward: all layers + norm + projection in one pallas_call."""
    B, L, D = x.shape
    S = cross.shape[1]
    C = trend.shape[-1]
    NL = len(params["layers"])
    Dff = params["layers"][0]["w_conv1"].shape[-1]
    Cp = _round_up(max(C, 128), 128)        # lane-dense output channel width

    # batch rows merged per grid step; on v7x keep B // bt >= 2 so both TCs work.
    bt = batch_block if batch_block is not None else min(B, 8)
    assert B % bt == 0, "batch must be divisible by the batch block"

    st = _prepare_params(params, n_heads, Cp)
    wma = _moving_avg_matrix(L, moving_avg)
    gamma = params["norm_gamma"].reshape(1, D)
    beta = params["norm_beta"].reshape(1, D)
    proj_w = jnp.pad(params["proj_w"], ((0, 0), (0, Cp - C))).astype(jnp.bfloat16)
    proj_b = jnp.pad(params["proj_b"], (0, Cp - C)).reshape(1, Cp)
    trend_p = jnp.pad(trend, ((0, 0), (0, 0), (0, Cp - C)))

    kernel = functools.partial(_decoder_kernel, n_heads=n_heads, d_model=D,
                               bt=bt, L=L, S=S, c_pad=Cp)

    # rough cost estimate so XLA schedules around the fused call sensibly
    per_layer_flops = (2 * L * D * 3 * D + 2 * L * D * D          # self QKV + Wo
                       + 4 * L * L * D                            # self scores + PV
                       + 2 * L * D * D + 2 * S * D * 2 * D        # cross Q + KV
                       + 4 * L * S * D + 2 * L * D * D            # cross attn + Wo
                       + 4 * L * D * Dff                          # feed forward
                       + 3 * 2 * L * D * Cp                       # trend conv
                       + 3 * 2 * L * L * D)                       # decomp matmuls
    flops = int(B * (NL * per_layer_flops + 2 * L * D * Cp))
    weight_bytes = sum(int(v.size) * v.dtype.itemsize for v in st.values())
    bytes_accessed = int((B // bt) * weight_bytes
                         + x.size * 4 + cross.size * 4 + trend_p.size * 4
                         + 2 * B * L * Cp * 4)
    cost = pl.CostEstimate(flops=flops,
                           transcendentals=int(B * NL * (L * L + L * S)),
                           bytes_accessed=bytes_accessed)

    grid_spec = pltpu.PrefetchScalarGridSpec(
        num_scalar_prefetch=0,
        grid=(B // bt, NL),
        in_specs=[
            pl.BlockSpec((bt, L, D), lambda b, l: (b, 0, 0)),         # x (seasonal init)
            pl.BlockSpec((bt, S, D), lambda b, l: (b, 0, 0)),         # cross (encoder out)
            pl.BlockSpec((bt, L, Cp), lambda b, l: (b, 0, 0)),        # trend init (padded)
            pl.BlockSpec((L, L), lambda b, l: (0, 0)),                # moving-avg matrix
            pl.BlockSpec((1, D, 3 * D), lambda b, l: (l, 0, 0)),      # self-attn Wqkv
            pl.BlockSpec((1, 1, 3 * D), lambda b, l: (l, 0, 0)),      # self-attn bqkv
            pl.BlockSpec((1, D, D), lambda b, l: (l, 0, 0)),          # self-attn Wo
            pl.BlockSpec((1, 1, D), lambda b, l: (l, 0, 0)),          # self-attn bo
            pl.BlockSpec((1, D, D), lambda b, l: (l, 0, 0)),          # cross-attn Wq
            pl.BlockSpec((1, 1, D), lambda b, l: (l, 0, 0)),          # cross-attn bq
            pl.BlockSpec((1, D, 2 * D), lambda b, l: (l, 0, 0)),      # cross-attn Wkv
            pl.BlockSpec((1, 1, 2 * D), lambda b, l: (l, 0, 0)),      # cross-attn bkv
            pl.BlockSpec((1, D, D), lambda b, l: (l, 0, 0)),          # cross-attn Wo
            pl.BlockSpec((1, 1, D), lambda b, l: (l, 0, 0)),          # cross-attn bo
            pl.BlockSpec((1, D, Dff), lambda b, l: (l, 0, 0)),        # FF conv1
            pl.BlockSpec((1, Dff, D), lambda b, l: (l, 0, 0)),        # FF conv2
            pl.BlockSpec((1, 3 * D, Cp), lambda b, l: (l, 0, 0)),     # circular trend conv
            pl.BlockSpec((1, D), lambda b, l: (0, 0)),                # norm gamma
            pl.BlockSpec((1, D), lambda b, l: (0, 0)),                # norm beta
            pl.BlockSpec((D, Cp), lambda b, l: (0, 0)),               # projection W (padded)
            pl.BlockSpec((1, Cp), lambda b, l: (0, 0)),               # projection b (padded)
        ],
        out_specs=[
            pl.BlockSpec((bt, L, Cp), lambda b, l: (b, 0, 0)),        # x_out
            pl.BlockSpec((bt, L, Cp), lambda b, l: (b, 0, 0)),        # trend_out
        ],
        scratch_shapes=[pltpu.VMEM((bt * L, D), jnp.float32),         # seasonal carry
                        pltpu.VMEM((bt * L, Cp), jnp.float32)],       # trend accumulator
    )

    x_out, trend_out = pl.pallas_call(
        kernel,
        grid_spec=grid_spec,
        out_shape=(jax.ShapeDtypeStruct((B, L, Cp), jnp.float32),
                   jax.ShapeDtypeStruct((B, L, Cp), jnp.float32)),
        compiler_params=pltpu.CompilerParams(
            dimension_semantics=("parallel", "arbitrary"),
            vmem_limit_bytes=32 * 1024 * 1024),
        cost_estimate=cost,
    )(x, cross, trend_p, wma,
      st["wqkv_s"], st["bqkv_s"], st["wo_s"], st["bo_s"],
      st["wq_c"], st["bq_c"], st["wkv_c"], st["bkv_c"], st["wo_c"], st["bo_c"],
      st["w_conv1"], st["w_conv2"], st["w_trend"],
      gamma, beta, proj_w, proj_b)
    return x_out[..., :C], trend_out[..., :C]


# --------------------------------------------------------------------- params

def init_attn_params(key, d_model, scale=0.1):
    ks = jax.random.split(key, 4)
    z = jnp.zeros((d_model,), jnp.float32)
    return {
        "wq": scale * jax.random.normal(ks[0], (d_model, d_model), jnp.float32), "bq": z,
        "wk": scale * jax.random.normal(ks[1], (d_model, d_model), jnp.float32), "bk": z,
        "wv": scale * jax.random.normal(ks[2], (d_model, d_model), jnp.float32), "bv": z,
        "wo": scale * jax.random.normal(ks[3], (d_model, d_model), jnp.float32), "bo": z,
    }


def init_layer_params(key, d_model, d_ff, c_out, scale=0.1):
    k1, k2, k3, k4, k5 = jax.random.split(key, 5)
    return {
        "self_attn": init_attn_params(k1, d_model, scale),
        "cross_attn": init_attn_params(k2, d_model, scale),
        "w_conv1": scale * jax.random.normal(k3, (d_model, d_ff), jnp.float32),
        "w_conv2": scale * jax.random.normal(k4, (d_ff, d_model), jnp.float32),
        # circular Conv1d(d_model -> c_out, k=3), taps flattened as [t-1 | t | t+1]
        "w_trend": scale * jax.random.normal(k5, (3 * d_model, c_out), jnp.float32),
    }


def init_decoder_params(key, num_layers, d_model, d_ff, c_out, scale=0.1):
    keys = jax.random.split(key, num_layers + 1)
    return {
        "layers": [init_layer_params(keys[i], d_model, d_ff, c_out, scale)
                   for i in range(num_layers)],
        "norm_gamma": jnp.ones((d_model,), jnp.float32),
        "norm_beta": jnp.zeros((d_model,), jnp.float32),
        "proj_w": scale * jax.random.normal(keys[-1], (d_model, c_out), jnp.float32),
        "proj_b": jnp.zeros((c_out,), jnp.float32),
    }


# --------------------------------------------------------------------- main

if __name__ == "__main__":
    B, L, S = 2, 8, 12
    d_model, n_heads, d_ff, c_out = 32, 4, 32, 4
    moving_avg = 5
    num_layers = 2

    key = jax.random.PRNGKey(0)
    kp, kx, kc, kt = jax.random.split(key, 4)

    params = init_decoder_params(kp, num_layers, d_model, d_ff, c_out)
    x = jax.random.normal(kx, (B, L, d_model), jnp.float32)        # decoder seasonal input
    cross = jax.random.normal(kc, (B, S, d_model), jnp.float32)    # encoder output
    trend = jax.random.normal(kt, (B, L, c_out), jnp.float32)      # initial trend

    fwd = jax.jit(functools.partial(decoder_forward, n_heads=n_heads,
                                    moving_avg=moving_avg))
    out_x, out_trend = fwd(params, x, cross, trend)
    jax.block_until_ready((out_x, out_trend))

    assert out_x.shape == (B, L, c_out)
    assert out_trend.shape == (B, L, c_out)
    assert bool(jnp.all(jnp.isfinite(out_x)))
    assert bool(jnp.all(jnp.isfinite(out_trend)))
    print("KERNEL_OK")
</pallas_src>

<mosaic_0001>
module attributes {stable_mosaic.version = 11 : i64} {
  func.func @_decoder_kernel(%arg0: i32, %arg1: i32, %arg2: memref<2x8x32xf32, #tpu.memory_space<vmem>>, %arg3: memref<2x12x32xf32, #tpu.memory_space<vmem>>, %arg4: memref<2x8x128xf32, #tpu.memory_space<vmem>>, %arg5: memref<8x8xf32, #tpu.memory_space<vmem>>, %arg6: memref<1x32x96xbf16, #tpu.memory_space<vmem>>, %arg7: memref<1x1x96xf32, #tpu.memory_space<vmem>>, %arg8: memref<1x32x32xbf16, #tpu.memory_space<vmem>>, %arg9: memref<1x1x32xf32, #tpu.memory_space<vmem>>, %arg10: memref<1x32x32xbf16, #tpu.memory_space<vmem>>, %arg11: memref<1x1x32xf32, #tpu.memory_space<vmem>>, %arg12: memref<1x32x64xbf16, #tpu.memory_space<vmem>>, %arg13: memref<1x1x64xf32, #tpu.memory_space<vmem>>, %arg14: memref<1x32x32xbf16, #tpu.memory_space<vmem>>, %arg15: memref<1x1x32xf32, #tpu.memory_space<vmem>>, %arg16: memref<1x32x32xbf16, #tpu.memory_space<vmem>>, %arg17: memref<1x32x32xbf16, #tpu.memory_space<vmem>>, %arg18: memref<1x96x128xbf16, #tpu.memory_space<vmem>>, %arg19: memref<1x32xf32, #tpu.memory_space<vmem>>, %arg20: memref<1x32xf32, #tpu.memory_space<vmem>>, %arg21: memref<32x128xbf16, #tpu.memory_space<vmem>>, %arg22: memref<1x128xf32, #tpu.memory_space<vmem>>, %arg23: memref<2x8x128xf32, #tpu.memory_space<vmem>>, %arg24: memref<2x8x128xf32, #tpu.memory_space<vmem>>, %arg25: memref<16x32xf32, #tpu.memory_space<vmem>>, %arg26: memref<16x128xf32, #tpu.memory_space<vmem>>) attributes {dimension_semantics = [#tpu.dimension_semantics<parallel>, #tpu.dimension_semantics<arbitrary>], iteration_bounds = array<i64: 1, 2>, scalar_prefetch = 0 : i64, scratch_operands = 2 : i64, tpu.core_type = #tpu.core_type<tc>, window_params = [{transform_indices = @transform_0, window_bounds = array<i64: 2, 8, 32>}, {transform_indices = @transform_1, window_bounds = array<i64: 2, 12, 32>}, {transform_indices = @transform_2, window_bounds = array<i64: 2, 8, 128>}, {pipeline_mode = #tpu.pipeline_mode<synchronous>, transform_indices = @transform_3, window_bounds = array<i64: 8, 8>}, {transform_indices = @transform_4, window_bounds = array<i64: 1, 32, 96>}, {transform_indices = @transform_5, window_bounds = array<i64: 1, 1, 96>}, {transform_indices = @transform_6, window_bounds = array<i64: 1, 32, 32>}, {transform_indices = @transform_7, window_bounds = array<i64: 1, 1, 32>}, {transform_indices = @transform_8, window_bounds = array<i64: 1, 32, 32>}, {transform_indices = @transform_9, window_bounds = array<i64: 1, 1, 32>}, {transform_indices = @transform_10, window_bounds = array<i64: 1, 32, 64>}, {transform_indices = @transform_11, window_bounds = array<i64: 1, 1, 64>}, {transform_indices = @transform_12, window_bounds = array<i64: 1, 32, 32>}, {transform_indices = @transform_13, window_bounds = array<i64: 1, 1, 32>}, {transform_indices = @transform_14, window_bounds = array<i64: 1, 32, 32>}, {transform_indices = @transform_15, window_bounds = array<i64: 1, 32, 32>}, {transform_indices = @transform_16, window_bounds = array<i64: 1, 96, 128>}, {pipeline_mode = #tpu.pipeline_mode<synchronous>, transform_indices = @transform_17, window_bounds = array<i64: 1, 32>}, {pipeline_mode = #tpu.pipeline_mode<synchronous>, transform_indices = @transform_18, window_bounds = array<i64: 1, 32>}, {pipeline_mode = #tpu.pipeline_mode<synchronous>, transform_indices = @transform_19, window_bounds = array<i64: 32, 128>}, {pipeline_mode = #tpu.pipeline_mode<synchronous>, transform_indices = @transform_20, window_bounds = array<i64: 1, 128>}, {transform_indices = @transform_21, window_bounds = array<i64: 2, 8, 128>}, {transform_indices = @transform_22, window_bounds = array<i64: 2, 8, 128>}]} {
    %c0_i32 = arith.constant 0 : i32
    %0 = arith.cmpi eq, %arg1, %c0_i32 : i32
    %1 = arith.extui %0 : i1 to i32
    %c0_i32_0 = arith.constant 0 : i32
    %2 = arith.cmpi ne, %1, %c0_i32_0 : i32
    scf.if %2 {
      %c0_145 = arith.constant 0 : index
      %c0_146 = arith.constant 0 : index
      %c0_147 = arith.constant 0 : index
      %382 = vector.load %arg2[%c0_145, %c0_146, %c0_147] : memref<2x8x32xf32, #tpu.memory_space<vmem>>, vector<2x8x32xf32>
      %383 = vector.shape_cast %382 : vector<2x8x32xf32> to vector<16x32xf32>
      %c0_148 = arith.constant 0 : index
      %c0_149 = arith.constant 0 : index
      %384 = vector.load %arg25[%c0_148, %c0_149] : memref<16x32xf32, #tpu.memory_space<vmem>>, vector<16x32xf32>
      tpu.vector_store %arg25[%c0_148, %c0_149], %383 {strides = array<i32>} : memref<16x32xf32, #tpu.memory_space<vmem>>, vector<16x32xf32>,
      %c0_150 = arith.constant 0 : index
      %c0_151 = arith.constant 0 : index
      %c0_152 = arith.constant 0 : index
      %385 = vector.load %arg4[%c0_150, %c0_151, %c0_152] : memref<2x8x128xf32, #tpu.memory_space<vmem>>, vector<2x8x128xf32>
      %386 = vector.shape_cast %385 : vector<2x8x128xf32> to vector<16x128xf32>
      %c0_153 = arith.constant 0 : index
      %c0_154 = arith.constant 0 : index
      %387 = vector.load %arg26[%c0_153, %c0_154] : memref<16x128xf32, #tpu.memory_space<vmem>>, vector<16x128xf32>
      tpu.vector_store %arg26[%c0_153, %c0_154], %386 {strides = array<i32>} : memref<16x128xf32, #tpu.memory_space<vmem>>, vector<16x128xf32>,
    } else {
    }
    %c0 = arith.constant 0 : index
    %c0_1 = arith.constant 0 : index
    %3 = vector.load %arg25[%c0, %c0_1] : memref<16x32xf32, #tpu.memory_space<vmem>>, vector<16x32xf32>
    %c0_2 = arith.constant 0 : index
    %c0_3 = arith.constant 0 : index
    %4 = vector.load %arg5[%c0_2, %c0_3] : memref<8x8xf32, #tpu.memory_space<vmem>>, vector<8x8xf32>
    %c0_4 = arith.constant 0 : index
    %c0_5 = arith.constant 0 : index
    %c0_6 = arith.constant 0 : index
    %5 = vector.load %arg6[%c0_4, %c0_5, %c0_6] : memref<1x32x96xbf16, #tpu.memory_space<vmem>>, vector<1x32x96xbf16>
    %6 = vector.shape_cast %5 : vector<1x32x96xbf16> to vector<32x96xbf16>
    %7 = arith.truncf %3 : vector<16x32xf32> to vector<16x32xbf16>
    %cst = arith.constant dense<0.000000e+00> : vector<16x96xf32>
    %8 = tpu.matmul %7, %6, %cst {dimension_numbers = #tpu.dot_dimension_numbers<[1], [0], [0], [1], [0, 0, 1, 1], [], []>} : vector<16x32xbf16>, vector<32x96xbf16>, vector<16x96xf32> -> vector<16x96xf32>
    %c0_7 = arith.constant 0 : index
    %c0_8 = arith.constant 0 : index
    %c0_9 = arith.constant 0 : index
    %9 = vector.load %arg7[%c0_7, %c0_8, %c0_9] : memref<1x1x96xf32, #tpu.memory_space<vmem>>, vector<1x1x96xf32>
    %10 = vector.shape_cast %9 : vector<1x1x96xf32> to vector<1x96xf32>
    %11 = vector.broadcast %10 : vector<1x96xf32> to vector<16x96xf32>
    %12 = arith.addf %8, %11 : vector<16x96xf32>
    %13 = vector.extract_strided_slice %12 {offsets = [0, 32], sizes = [8, 32], strides = [1, 1]} : vector<16x96xf32> to vector<8x32xf32>
    %14 = vector.extract_strided_slice %12 {offsets = [8, 32], sizes = [8, 32], strides = [1, 1]} : vector<16x96xf32> to vector<8x32xf32>
    %15 = vector.extract_strided_slice %12 {offsets = [0, 64], sizes = [8, 32], strides = [1, 1]} : vector<16x96xf32> to vector<8x32xf32>
    %16 = vector.extract_strided_slice %12 {offsets = [8, 64], sizes = [8, 32], strides = [1, 1]} : vector<16x96xf32> to vector<8x32xf32>
    %17 = vector.extract_strided_slice %12 {offsets = [0, 0], sizes = [16, 32], strides = [1, 1]} : vector<16x96xf32> to vector<16x32xf32>
    %18 = vector.extract_strided_slice %17 {offsets = [0, 0], sizes = [8, 32], strides = [1, 1]} : vector<16x32xf32> to vector<8x32xf32>
    %19 = vector.extract_strided_slice %18 {offsets = [0, 0], sizes = [8, 8], strides = [1, 1]} : vector<8x32xf32> to vector<8x8xf32>
    %20 = vector.extract_strided_slice %13 {offsets = [0, 0], sizes = [8, 8], strides = [1, 1]} : vector<8x32xf32> to vector<8x8xf32>
    %cst_10 = arith.constant dense<0.000000e+00> : vector<8x8xf32>
    %21 = tpu.matmul %19, %20, %cst_10 {dimension_numbers = #tpu.dot_dimension_numbers<[1], [1], [0], [0], [0, 0, 1, 0], [], []>} : vector<8x8xf32>, vector<8x8xf32>, vector<8x8xf32> -> vector<8x8xf32>
    %cst_11 = arith.constant dense<0xFF800000> : vector<8xf32>
    %22 = vector.multi_reduction <maximumf>, %21, %cst_11 [1] : vector<8x8xf32> to vector<8xf32>
    %23 = vector.shape_cast %22 : vector<8xf32> to vector<8x1xf32>
    %24 = vector.broadcast %23 : vector<8x1xf32> to vector<8x8xf32>
    %25 = arith.subf %21, %24 : vector<8x8xf32>
    %26 = math.exp %25 : vector<8x8xf32>
    %cst_12 = arith.constant dense<0.000000e+00> : vector<8xf32>
    %27 = vector.multi_reduction <add>, %26, %cst_12 [1] : vector<8x8xf32> to vector<8xf32>
    %28 = vector.shape_cast %27 : vector<8xf32> to vector<8x1xf32>
    %29 = tpu.reciprocal %28 {approx = true} : vector<8x1xf32> -> vector<8x1xf32>
    %30 = vector.broadcast %29 : vector<8x1xf32> to vector<8x8xf32>
    %31 = arith.mulf %26, %30 : vector<8x8xf32>
    %32 = vector.extract_strided_slice %15 {offsets = [0, 0], sizes = [8, 8], strides = [1, 1]} : vector<8x32xf32> to vector<8x8xf32>
    %cst_13 = arith.constant dense<0.000000e+00> : vector<8x8xf32>
    %33 = tpu.matmul %31, %32, %cst_13 {dimension_numbers = #tpu.dot_dimension_numbers<[1], [0], [0], [1], [0, 0, 1, 1], [], []>} : vector<8x8xf32>, vector<8x8xf32>, vector<8x8xf32> -> vector<8x8xf32>
    %34 = vector.extract_strided_slice %18 {offsets = [0, 8], sizes = [8, 8], strides = [1, 1]} : vector<8x32xf32> to vector<8x8xf32>
    %35 = vector.extract_strided_slice %13 {offsets = [0, 8], sizes = [8, 8], strides = [1, 1]} : vector<8x32xf32> to vector<8x8xf32>
    %cst_14 = arith.constant dense<0.000000e+00> : vector<8x8xf32>
    %36 = tpu.matmul %34, %35, %cst_14 {dimension_numbers = #tpu.dot_dimension_numbers<[1], [1], [0], [0], [0, 0, 1, 0], [], []>} : vector<8x8xf32>, vector<8x8xf32>, vector<8x8xf32> -> vector<8x8xf32>
    %cst_15 = arith.constant dense<0xFF800000> : vector<8xf32>
    %37 = vector.multi_reduction <maximumf>, %36, %cst_15 [1] : vector<8x8xf32> to vector<8xf32>
    %38 = vector.shape_cast %37 : vector<8xf32> to vector<8x1xf32>
    %39 = vector.broadcast %38 : vector<8x1xf32> to vector<8x8xf32>
    %40 = arith.subf %36, %39 : vector<8x8xf32>
    %41 = math.exp %40 : vector<8x8xf32>
    %cst_16 = arith.constant dense<0.000000e+00> : vector<8xf32>
    %42 = vector.multi_reduction <add>, %41, %cst_16 [1] : vector<8x8xf32> to vector<8xf32>
    %43 = vector.shape_cast %42 : vector<8xf32> to vector<8x1xf32>
    %44 = tpu.reciprocal %43 {approx = true} : vector<8x1xf32> -> vector<8x1xf32>
    %45 = vector.broadcast %44 : vector<8x1xf32> to vector<8x8xf32>
    %46 = arith.mulf %41, %45 : vector<8x8xf32>
    %47 = vector.extract_strided_slice %15 {offsets = [0, 8], sizes = [8, 8], strides = [1, 1]} : vector<8x32xf32> to vector<8x8xf32>
    %cst_17 = arith.constant dense<0.000000e+00> : vector<8x8xf32>
    %48 = tpu.matmul %46, %47, %cst_17 {dimension_numbers = #tpu.dot_dimension_numbers<[1], [0], [0], [1], [0, 0, 1, 1], [], []>} : vector<8x8xf32>, vector<8x8xf32>, vector<8x8xf32> -> vector<8x8xf32>
    %49 = vector.extract_strided_slice %18 {offsets = [0, 16], sizes = [8, 8], strides = [1, 1]} : vector<8x32xf32> to vector<8x8xf32>
    %50 = vector.extract_strided_slice %13 {offsets = [0, 16], sizes = [8, 8], strides = [1, 1]} : vector<8x32xf32> to vector<8x8xf32>
    %cst_18 = arith.constant dense<0.000000e+00> : vector<8x8xf32>
    %51 = tpu.matmul %49, %50, %cst_18 {dimension_numbers = #tpu.dot_dimension_numbers<[1], [1], [0], [0], [0, 0, 1, 0], [], []>} : vector<8x8xf32>, vector<8x8xf32>, vector<8x8xf32> -> vector<8x8xf32>
    %cst_19 = arith.constant dense<0xFF800000> : vector<8xf32>
    %52 = vector.multi_reduction <maximumf>, %51, %cst_19 [1] : vector<8x8xf32> to vector<8xf32>
    %53 = vector.shape_cast %52 : vector<8xf32> to vector<8x1xf32>
    %54 = vector.broadcast %53 : vector<8x1xf32> to vector<8x8xf32>
    %55 = arith.subf %51, %54 : vector<8x8xf32>
    %56 = math.exp %55 : vector<8x8xf32>
    %cst_20 = arith.constant dense<0.000000e+00> : vector<8xf32>
    %57 = vector.multi_reduction <add>, %56, %cst_20 [1] : vector<8x8xf32> to vector<8xf32>
    %58 = vector.shape_cast %57 : vector<8xf32> to vector<8x1xf32>
    %59 = tpu.reciprocal %58 {approx = true} : vector<8x1xf32> -> vector<8x1xf32>
    %60 = vector.broadcast %59 : vector<8x1xf32> to vector<8x8xf32>
    %61 = arith.mulf %56, %60 : vector<8x8xf32>
    %62 = vector.extract_strided_slice %15 {offsets = [0, 16], sizes = [8, 8], strides = [1, 1]} : vector<8x32xf32> to vector<8x8xf32>
    %cst_21 = arith.constant dense<0.000000e+00> : vector<8x8xf32>
    %63 = tpu.matmul %61, %62, %cst_21 {dimension_numbers = #tpu.dot_dimension_numbers<[1], [0], [0], [1], [0, 0, 1, 1], [], []>} : vector<8x8xf32>, vector<8x8xf32>, vector<8x8xf32> -> vector<8x8xf32>
    %64 = vector.extract_strided_slice %18 {offsets = [0, 24], sizes = [8, 8], strides = [1, 1]} : vector<8x32xf32> to vector<8x8xf32>
    %65 = vector.extract_strided_slice %13 {offsets = [0, 24], sizes = [8, 8], strides = [1, 1]} : vector<8x32xf32> to vector<8x8xf32>
    %cst_22 = arith.constant dense<0.000000e+00> : vector<8x8xf32>
    %66 = tpu.matmul %64, %65, %cst_22 {dimension_numbers = #tpu.dot_dimension_numbers<[1], [1], [0], [0], [0, 0, 1, 0], [], []>} : vector<8x8xf32>, vector<8x8xf32>, vector<8x8xf32> -> vector<8x8xf32>
    %cst_23 = arith.constant dense<0xFF800000> : vector<8xf32>
    %67 = vector.multi_reduction <maximumf>, %66, %cst_23 [1] : vector<8x8xf32> to vector<8xf32>
    %68 = vector.shape_cast %67 : vector<8xf32> to vector<8x1xf32>
    %69 = vector.broadcast %68 : vector<8x1xf32> to vector<8x8xf32>
    %70 = arith.subf %66, %69 : vector<8x8xf32>
    %71 = math.exp %70 : vector<8x8xf32>
    %cst_24 = arith.constant dense<0.000000e+00> : vector<8xf32>
    %72 = vector.multi_reduction <add>, %71, %cst_24 [1] : vector<8x8xf32> to vector<8xf32>
    %73 = vector.shape_cast %72 : vector<8xf32> to vector<8x1xf32>
    %74 = tpu.reciprocal %73 {approx = true} : vector<8x1xf32> -> vector<8x1xf32>
    %75 = vector.broadcast %74 : vector<8x1xf32> to vector<8x8xf32>
    %76 = arith.mulf %71, %75 : vector<8x8xf32>
    %77 = vector.extract_strided_slice %15 {offsets = [0, 24], sizes = [8, 8], strides = [1, 1]} : vector<8x32xf32> to vector<8x8xf32>
    %cst_25 = arith.constant dense<0.000000e+00> : vector<8x8xf32>
    %78 = tpu.matmul %76, %77, %cst_25 {dimension_numbers = #tpu.dot_dimension_numbers<[1], [0], [0], [1], [0, 0, 1, 1], [], []>} : vector<8x8xf32>, vector<8x8xf32>, vector<8x8xf32> -> vector<8x8xf32>
    %79 = tpu.concatenate %33, %48, %63, %78 in 1 : vector<8x8xf32>, vector<8x8xf32>, vector<8x8xf32>, vector<8x8xf32> -> vector<8x32xf32>
    %80 = vector.extract_strided_slice %17 {offsets = [8, 0], sizes = [8, 32], strides = [1, 1]} : vector<16x32xf32> to vector<8x32xf32>
    %81 = vector.extract_strided_slice %80 {offsets = [0, 0], sizes = [8, 8], strides = [1, 1]} : vector<8x32xf32> to vector<8x8xf32>
    %82 = vector.extract_strided_slice %14 {offsets = [0, 0], sizes = [8, 8], strides = [1, 1]} : vector<8x32xf32> to vector<8x8xf32>
    %cst_26 = arith.constant dense<0.000000e+00> : vector<8x8xf32>
    %83 = tpu.matmul %81, %82, %cst_26 {dimension_numbers = #tpu.dot_dimension_numbers<[1], [1], [0], [0], [0, 0, 1, 0], [], []>} : vector<8x8xf32>, vector<8x8xf32>, vector<8x8xf32> -> vector<8x8xf32>
    %cst_27 = arith.constant dense<0xFF800000> : vector<8xf32>
    %84 = vector.multi_reduction <maximumf>, %83, %cst_27 [1] : vector<8x8xf32> to vector<8xf32>
    %85 = vector.shape_cast %84 : vector<8xf32> to vector<8x1xf32>
    %86 = vector.broadcast %85 : vector<8x1xf32> to vector<8x8xf32>
    %87 = arith.subf %83, %86 : vector<8x8xf32>
    %88 = math.exp %87 : vector<8x8xf32>
    %cst_28 = arith.constant dense<0.000000e+00> : vector<8xf32>
    %89 = vector.multi_reduction <add>, %88, %cst_28 [1] : vector<8x8xf32> to vector<8xf32>
    %90 = vector.shape_cast %89 : vector<8xf32> to vector<8x1xf32>
    %91 = tpu.reciprocal %90 {approx = true} : vector<8x1xf32> -> vector<8x1xf32>
    %92 = vector.broadcast %91 : vector<8x1xf32> to vector<8x8xf32>
    %93 = arith.mulf %88, %92 : vector<8x8xf32>
    %94 = vector.extract_strided_slice %16 {offsets = [0, 0], sizes = [8, 8], strides = [1, 1]} : vector<8x32xf32> to vector<8x8xf32>
    %cst_29 = arith.constant dense<0.000000e+00> : vector<8x8xf32>
    %95 = tpu.matmul %93, %94, %cst_29 {dimension_numbers = #tpu.dot_dimension_numbers<[1], [0], [0], [1], [0, 0, 1, 1], [], []>} : vector<8x8xf32>, vector<8x8xf32>, vector<8x8xf32> -> vector<8x8xf32>
    %96 = vector.extract_strided_slice %80 {offsets = [0, 8], sizes = [8, 8], strides = [1, 1]} : vector<8x32xf32> to vector<8x8xf32>
    %97 = vector.extract_strided_slice %14 {offsets = [0, 8], sizes = [8, 8], strides = [1, 1]} : vector<8x32xf32> to vector<8x8xf32>
    %cst_30 = arith.constant dense<0.000000e+00> : vector<8x8xf32>
    %98 = tpu.matmul %96, %97, %cst_30 {dimension_numbers = #tpu.dot_dimension_numbers<[1], [1], [0], [0], [0, 0, 1, 0], [], []>} : vector<8x8xf32>, vector<8x8xf32>, vector<8x8xf32> -> vector<8x8xf32>
    %cst_31 = arith.constant dense<0xFF800000> : vector<8xf32>
    %99 = vector.multi_reduction <maximumf>, %98, %cst_31 [1] : vector<8x8xf32> to vector<8xf32>
    %100 = vector.shape_cast %99 : vector<8xf32> to vector<8x1xf32>
    %101 = vector.broadcast %100 : vector<8x1xf32> to vector<8x8xf32>
    %102 = arith.subf %98, %101 : vector<8x8xf32>
    %103 = math.exp %102 : vector<8x8xf32>
    %cst_32 = arith.constant dense<0.000000e+00> : vector<8xf32>
    %104 = vector.multi_reduction <add>, %103, %cst_32 [1] : vector<8x8xf32> to vector<8xf32>
    %105 = vector.shape_cast %104 : vector<8xf32> to vector<8x1xf32>
    %106 = tpu.reciprocal %105 {approx = true} : vector<8x1xf32> -> vector<8x1xf32>
    %107 = vector.broadcast %106 : vector<8x1xf32> to vector<8x8xf32>
    %108 = arith.mulf %103, %107 : vector<8x8xf32>
    %109 = vector.extract_strided_slice %16 {offsets = [0, 8], sizes = [8, 8], strides = [1, 1]} : vector<8x32xf32> to vector<8x8xf32>
    %cst_33 = arith.constant dense<0.000000e+00> : vector<8x8xf32>
    %110 = tpu.matmul %108, %109, %cst_33 {dimension_numbers = #tpu.dot_dimension_numbers<[1], [0], [0], [1], [0, 0, 1, 1], [], []>} : vector<8x8xf32>, vector<8x8xf32>, vector<8x8xf32> -> vector<8x8xf32>
    %111 = vector.extract_strided_slice %80 {offsets = [0, 16], sizes = [8, 8], strides = [1, 1]} : vector<8x32xf32> to vector<8x8xf32>
    %112 = vector.extract_strided_slice %14 {offsets = [0, 16], sizes = [8, 8], strides = [1, 1]} : vector<8x32xf32> to vector<8x8xf32>
    %cst_34 = arith.constant dense<0.000000e+00> : vector<8x8xf32>
    %113 = tpu.matmul %111, %112, %cst_34 {dimension_numbers = #tpu.dot_dimension_numbers<[1], [1], [0], [0], [0, 0, 1, 0], [], []>} : vector<8x8xf32>, vector<8x8xf32>, vector<8x8xf32> -> vector<8x8xf32>
    %cst_35 = arith.constant dense<0xFF800000> : vector<8xf32>
    %114 = vector.multi_reduction <maximumf>, %113, %cst_35 [1] : vector<8x8xf32> to vector<8xf32>
    %115 = vector.shape_cast %114 : vector<8xf32> to vector<8x1xf32>
    %116 = vector.broadcast %115 : vector<8x1xf32> to vector<8x8xf32>
    %117 = arith.subf %113, %116 : vector<8x8xf32>
    %118 = math.exp %117 : vector<8x8xf32>
    %cst_36 = arith.constant dense<0.000000e+00> : vector<8xf32>
    %119 = vector.multi_reduction <add>, %118, %cst_36 [1] : vector<8x8xf32> to vector<8xf32>
    %120 = vector.shape_cast %119 : vector<8xf32> to vector<8x1xf32>
    %121 = tpu.reciprocal %120 {approx = true} : vector<8x1xf32> -> vector<8x1xf32>
    %122 = vector.broadcast %121 : vector<8x1xf32> to vector<8x8xf32>
    %123 = arith.mulf %118, %122 : vector<8x8xf32>
    %124 = vector.extract_strided_slice %16 {offsets = [0, 16], sizes = [8, 8], strides = [1, 1]} : vector<8x32xf32> to vector<8x8xf32>
    %cst_37 = arith.constant dense<0.000000e+00> : vector<8x8xf32>
    %125 = tpu.matmul %123, %124, %cst_37 {dimension_numbers = #tpu.dot_dimension_numbers<[1], [0], [0], [1], [0, 0, 1, 1], [], []>} : vector<8x8xf32>, vector<8x8xf32>, vector<8x8xf32> -> vector<8x8xf32>
    %126 = vector.extract_strided_slice %80 {offsets = [0, 24], sizes = [8, 8], strides = [1, 1]} : vector<8x32xf32> to vector<8x8xf32>
    %127 = vector.extract_strided_slice %14 {offsets = [0, 24], sizes = [8, 8], strides = [1, 1]} : vector<8x32xf32> to vector<8x8xf32>
    %cst_38 = arith.constant dense<0.000000e+00> : vector<8x8xf32>
    %128 = tpu.matmul %126, %127, %cst_38 {dimension_numbers = #tpu.dot_dimension_numbers<[1], [1], [0], [0], [0, 0, 1, 0], [], []>} : vector<8x8xf32>, vector<8x8xf32>, vector<8x8xf32> -> vector<8x8xf32>
    %cst_39 = arith.constant dense<0xFF800000> : vector<8xf32>
    %129 = vector.multi_reduction <maximumf>, %128, %cst_39 [1] : vector<8x8xf32> to vector<8xf32>
    %130 = vector.shape_cast %129 : vector<8xf32> to vector<8x1xf32>
    %131 = vector.broadcast %130 : vector<8x1xf32> to vector<8x8xf32>
    %132 = arith.subf %128, %131 : vector<8x8xf32>
    %133 = math.exp %132 : vector<8x8xf32>
    %cst_40 = arith.constant dense<0.000000e+00> : vector<8xf32>
    %134 = vector.multi_reduction <add>, %133, %cst_40 [1] : vector<8x8xf32> to vector<8xf32>
    %135 = vector.shape_cast %134 : vector<8xf32> to vector<8x1xf32>
    %136 = tpu.reciprocal %135 {approx = true} : vector<8x1xf32> -> vector<8x1xf32>
    %137 = vector.broadcast %136 : vector<8x1xf32> to vector<8x8xf32>
    %138 = arith.mulf %133, %137 : vector<8x8xf32>
    %139 = vector.extract_strided_slice %16 {offsets = [0, 24], sizes = [8, 8], strides = [1, 1]} : vector<8x32xf32> to vector<8x8xf32>
    %cst_41 = arith.constant dense<0.000000e+00> : vector<8x8xf32>
    %140 = tpu.matmul %138, %139, %cst_41 {dimension_numbers = #tpu.dot_dimension_numbers<[1], [0], [0], [1], [0, 0, 1, 1], [], []>} : vector<8x8xf32>, vector<8x8xf32>, vector<8x8xf32> -> vector<8x8xf32>
    %141 = tpu.concatenate %95, %110, %125, %140 in 1 : vector<8x8xf32>, vector<8x8xf32>, vector<8x8xf32>, vector<8x8xf32> -> vector<8x32xf32>
    %142 = tpu.concatenate %79, %141 in 0 : vector<8x32xf32>, vector<8x32xf32> -> vector<16x32xf32>
    %c0_42 = arith.constant 0 : index
    %c0_43 = arith.constant 0 : index
    %c0_44 = arith.constant 0 : index
    %143 = vector.load %arg8[%c0_42, %c0_43, %c0_44] : memref<1x32x32xbf16, #tpu.memory_space<vmem>>, vector<1x32x32xbf16>
    %144 = vector.shape_cast %143 : vector<1x32x32xbf16> to vector<32x32xbf16>
    %145 = arith.truncf %142 : vector<16x32xf32> to vector<16x32xbf16>
    %cst_45 = arith.constant dense<0.000000e+00> : vector<16x32xf32>
    %146 = tpu.matmul %145, %144, %cst_45 {dimension_numbers = #tpu.dot_dimension_numbers<[1], [0], [0], [1], [0, 0, 1, 1], [], []>} : vector<16x32xbf16>, vector<32x32xbf16>, vector<16x32xf32> -> vector<16x32xf32>
    %c0_46 = arith.constant 0 : index
    %c0_47 = arith.constant 0 : index
    %c0_48 = arith.constant 0 : index
    %147 = vector.load %arg9[%c0_46, %c0_47, %c0_48] : memref<1x1x32xf32, #tpu.memory_space<vmem>>, vector<1x1x32xf32>
    %148 = vector.shape_cast %147 : vector<1x1x32xf32> to vector<1x32xf32>
    %149 = vector.broadcast %148 : vector<1x32xf32> to vector<16x32xf32>
    %150 = arith.addf %146, %149 : vector<16x32xf32>
    %151 = arith.addf %3, %150 : vector<16x32xf32>
    %152 = vector.extract_strided_slice %151 {offsets = [0, 0], sizes = [8, 32], strides = [1, 1]} : vector<16x32xf32> to vector<8x32xf32>
    %cst_49 = arith.constant dense<0.000000e+00> : vector<8x32xf32>
    %153 = tpu.matmul %4, %152, %cst_49 {dimension_numbers = #tpu.dot_dimension_numbers<[1], [0], [0], [1], [0, 0, 1, 1], [], []>} : vector<8x8xf32>, vector<8x32xf32>, vector<8x32xf32> -> vector<8x32xf32>
    %154 = vector.extract_strided_slice %151 {offsets = [8, 0], sizes = [8, 32], strides = [1, 1]} : vector<16x32xf32> to vector<8x32xf32>
    %cst_50 = arith.constant dense<0.000000e+00> : vector<8x32xf32>
    %155 = tpu.matmul %4, %154, %cst_50 {dimension_numbers = #tpu.dot_dimension_numbers<[1], [0], [0], [1], [0, 0, 1, 1], [], []>} : vector<8x8xf32>, vector<8x32xf32>, vector<8x32xf32> -> vector<8x32xf32>
    %156 = tpu.concatenate %153, %155 in 0 : vector<8x32xf32>, vector<8x32xf32> -> vector<16x32xf32>
    %157 = arith.subf %151, %156 : vector<16x32xf32>
    %c0_51 = arith.constant 0 : index
    %c0_52 = arith.constant 0 : index
    %c0_53 = arith.constant 0 : index
    %158 = vector.load %arg10[%c0_51, %c0_52, %c0_53] : memref<1x32x32xbf16, #tpu.memory_space<vmem>>, vector<1x32x32xbf16>
    %159 = vector.shape_cast %158 : vector<1x32x32xbf16> to vector<32x32xbf16>
    %160 = arith.truncf %157 : vector<16x32xf32> to vector<16x32xbf16>
    %cst_54 = arith.constant dense<0.000000e+00> : vector<16x32xf32>
    %161 = tpu.matmul %160, %159, %cst_54 {dimension_numbers = #tpu.dot_dimension_numbers<[1], [0], [0], [1], [0, 0, 1, 1], [], []>} : vector<16x32xbf16>, vector<32x32xbf16>, vector<16x32xf32> -> vector<16x32xf32>
    %c0_55 = arith.constant 0 : index
    %c0_56 = arith.constant 0 : index
    %c0_57 = arith.constant 0 : index
    %162 = vector.load %arg11[%c0_55, %c0_56, %c0_57] : memref<1x1x32xf32, #tpu.memory_space<vmem>>, vector<1x1x32xf32>
    %163 = vector.shape_cast %162 : vector<1x1x32xf32> to vector<1x32xf32>
    %164 = vector.broadcast %163 : vector<1x32xf32> to vector<16x32xf32>
    %165 = arith.addf %161, %164 : vector<16x32xf32>
    %c0_58 = arith.constant 0 : index
    %c0_59 = arith.constant 0 : index
    %c0_60 = arith.constant 0 : index
    %166 = vector.load %arg3[%c0_58, %c0_59, %c0_60] : memref<2x12x32xf32, #tpu.memory_space<vmem>>, vector<1x12x32xf32>
    %167 = vector.shape_cast %166 : vector<1x12x32xf32> to vector<12x32xf32>
    %c0_61 = arith.constant 0 : index
    %c0_62 = arith.constant 0 : index
    %c0_63 = arith.constant 0 : index
    %168 = vector.load %arg12[%c0_61, %c0_62, %c0_63] : memref<1x32x64xbf16, #tpu.memory_space<vmem>>, vector<1x32x64xbf16>
    %169 = vector.shape_cast %168 : vector<1x32x64xbf16> to vector<32x64xbf16>
    %170 = arith.truncf %167 : vector<12x32xf32> to vector<12x32xbf16>
    %cst_64 = arith.constant dense<0.000000e+00> : vector<12x64xf32>
    %171 = tpu.matmul %170, %169, %cst_64 {dimension_numbers = #tpu.dot_dimension_numbers<[1], [0], [0], [1], [0, 0, 1, 1], [], []>} : vector<12x32xbf16>, vector<32x64xbf16>, vector<12x64xf32> -> vector<12x64xf32>
    %c0_65 = arith.constant 0 : index
    %c0_66 = arith.constant 0 : index
    %c0_67 = arith.constant 0 : index
    %172 = vector.load %arg13[%c0_65, %c0_66, %c0_67] : memref<1x1x64xf32, #tpu.memory_space<vmem>>, vector<1x1x64xf32>
    %173 = vector.shape_cast %172 : vector<1x1x64xf32> to vector<1x64xf32>
    %174 = vector.broadcast %173 : vector<1x64xf32> to vector<12x64xf32>
    %175 = arith.addf %171, %174 : vector<12x64xf32>
    %176 = vector.extract_strided_slice %175 {offsets = [0, 0], sizes = [12, 32], strides = [1, 1]} : vector<12x64xf32> to vector<12x32xf32>
    %177 = vector.extract_strided_slice %175 {offsets = [0, 32], sizes = [12, 32], strides = [1, 1]} : vector<12x64xf32> to vector<12x32xf32>
    %c1 = arith.constant 1 : index
    %c0_68 = arith.constant 0 : index
    %c0_69 = arith.constant 0 : index
    %178 = vector.load %arg3[%c1, %c0_68, %c0_69] : memref<2x12x32xf32, #tpu.memory_space<vmem>>, vector<1x12x32xf32>
    %179 = vector.shape_cast %178 : vector<1x12x32xf32> to vector<12x32xf32>
    %c0_70 = arith.constant 0 : index
    %c0_71 = arith.constant 0 : index
    %c0_72 = arith.constant 0 : index
    %180 = vector.load %arg12[%c0_70, %c0_71, %c0_72] : memref<1x32x64xbf16, #tpu.memory_space<vmem>>, vector<1x32x64xbf16>
    %181 = vector.shape_cast %180 : vector<1x32x64xbf16> to vector<32x64xbf16>
    %182 = arith.truncf %179 : vector<12x32xf32> to vector<12x32xbf16>
    %cst_73 = arith.constant dense<0.000000e+00> : vector<12x64xf32>
    %183 = tpu.matmul %182, %181, %cst_73 {dimension_numbers = #tpu.dot_dimension_numbers<[1], [0], [0], [1], [0, 0, 1, 1], [], []>} : vector<12x32xbf16>, vector<32x64xbf16>, vector<12x64xf32> -> vector<12x64xf32>
    %c0_74 = arith.constant 0 : index
    %c0_75 = arith.constant 0 : index
    %c0_76 = arith.constant 0 : index
    %184 = vector.load %arg13[%c0_74, %c0_75, %c0_76] : memref<1x1x64xf32, #tpu.memory_space<vmem>>, vector<1x1x64xf32>
    %185 = vector.shape_cast %184 : vector<1x1x64xf32> to vector<1x64xf32>
    %186 = vector.broadcast %185 : vector<1x64xf32> to vector<12x64xf32>
    %187 = arith.addf %183, %186 : vector<12x64xf32>
    %188 = vector.extract_strided_slice %187 {offsets = [0, 0], sizes = [12, 32], strides = [1, 1]} : vector<12x64xf32> to vector<12x32xf32>
    %189 = vector.extract_strided_slice %187 {offsets = [0, 32], sizes = [12, 32], strides = [1, 1]} : vector<12x64xf32> to vector<12x32xf32>
    %190 = vector.extract_strided_slice %165 {offsets = [0, 0], sizes = [8, 32], strides = [1, 1]} : vector<16x32xf32> to vector<8x32xf32>
    %191 = vector.extract_strided_slice %190 {offsets = [0, 0], sizes = [8, 8], strides = [1, 1]} : vector<8x32xf32> to vector<8x8xf32>
    %192 = vector.extract_strided_slice %176 {offsets = [0, 0], sizes = [12, 8], strides = [1, 1]} : vector<12x32xf32> to vector<12x8xf32>
    %cst_77 = arith.constant dense<0.000000e+00> : vector<8x12xf32>
    %193 = tpu.matmul %191, %192, %cst_77 {dimension_numbers = #tpu.dot_dimension_numbers<[1], [1], [0], [0], [0, 0, 1, 0], [], []>} : vector<8x8xf32>, vector<12x8xf32>, vector<8x12xf32> -> vector<8x12xf32>
    %cst_78 = arith.constant dense<0xFF800000> : vector<8xf32>
    %194 = vector.multi_reduction <maximumf>, %193, %cst_78 [1] : vector<8x12xf32> to vector<8xf32>
    %195 = vector.shape_cast %194 : vector<8xf32> to vector<8x1xf32>
    %196 = vector.broadcast %195 : vector<8x1xf32> to vector<8x12xf32>
    %197 = arith.subf %193, %196 : vector<8x12xf32>
    %198 = math.exp %197 : vector<8x12xf32>
    %cst_79 = arith.constant dense<0.000000e+00> : vector<8xf32>
    %199 = vector.multi_reduction <add>, %198, %cst_79 [1] : vector<8x12xf32> to vector<8xf32>
    %200 = vector.shape_cast %199 : vector<8xf32> to vector<8x1xf32>
    %201 = tpu.reciprocal %200 {approx = true} : vector<8x1xf32> -> vector<8x1xf32>
    %202 = vector.broadcast %201 : vector<8x1xf32> to vector<8x12xf32>
    %203 = arith.mulf %198, %202 : vector<8x12xf32>
    %204 = vector.extract_strided_slice %177 {offsets = [0, 0], sizes = [12, 8], strides = [1, 1]} : vector<12x32xf32> to vector<12x8xf32>
    %cst_80 = arith.constant dense<0.000000e+00> : vector<8x8xf32>
    %205 = tpu.matmul %203, %204, %cst_80 {dimension_numbers = #tpu.dot_dimension_numbers<[1], [0], [0], [1], [0, 0, 1, 1], [], []>} : vector<8x12xf32>, vector<12x8xf32>, vector<8x8xf32> -> vector<8x8xf32>
    %206 = vector.extract_strided_slice %190 {offsets = [0, 8], sizes = [8, 8], strides = [1, 1]} : vector<8x32xf32> to vector<8x8xf32>
    %207 = vector.extract_strided_slice %176 {offsets = [0, 8], sizes = [12, 8], strides = [1, 1]} : vector<12x32xf32> to vector<12x8xf32>
    %cst_81 = arith.constant dense<0.000000e+00> : vector<8x12xf32>
    %208 = tpu.matmul %206, %207, %cst_81 {dimension_numbers = #tpu.dot_dimension_numbers<[1], [1], [0], [0], [0, 0, 1, 0], [], []>} : vector<8x8xf32>, vector<12x8xf32>, vector<8x12xf32> -> vector<8x12xf32>
    %cst_82 = arith.constant dense<0xFF800000> : vector<8xf32>
    %209 = vector.multi_reduction <maximumf>, %208, %cst_82 [1] : vector<8x12xf32> to vector<8xf32>
    %210 = vector.shape_cast %209 : vector<8xf32> to vector<8x1xf32>
    %211 = vector.broadcast %210 : vector<8x1xf32> to vector<8x12xf32>
    %212 = arith.subf %208, %211 : vector<8x12xf32>
    %213 = math.exp %212 : vector<8x12xf32>
    %cst_83 = arith.constant dense<0.000000e+00> : vector<8xf32>
    %214 = vector.multi_reduction <add>, %213, %cst_83 [1] : vector<8x12xf32> to vector<8xf32>
    %215 = vector.shape_cast %214 : vector<8xf32> to vector<8x1xf32>
    %216 = tpu.reciprocal %215 {approx = true} : vector<8x1xf32> -> vector<8x1xf32>
    %217 = vector.broadcast %216 : vector<8x1xf32> to vector<8x12xf32>
    %218 = arith.mulf %213, %217 : vector<8x12xf32>
    %219 = vector.extract_strided_slice %177 {offsets = [0, 8], sizes = [12, 8], strides = [1, 1]} : vector<12x32xf32> to vector<12x8xf32>
    %cst_84 = arith.constant dense<0.000000e+00> : vector<8x8xf32>
    %220 = tpu.matmul %218, %219, %cst_84 {dimension_numbers = #tpu.dot_dimension_numbers<[1], [0], [0], [1], [0, 0, 1, 1], [], []>} : vector<8x12xf32>, vector<12x8xf32>, vector<8x8xf32> -> vector<8x8xf32>
    %221 = vector.extract_strided_slice %190 {offsets = [0, 16], sizes = [8, 8], strides = [1, 1]} : vector<8x32xf32> to vector<8x8xf32>
    %222 = vector.extract_strided_slice %176 {offsets = [0, 16], sizes = [12, 8], strides = [1, 1]} : vector<12x32xf32> to vector<12x8xf32>
    %cst_85 = arith.constant dense<0.000000e+00> : vector<8x12xf32>
    %223 = tpu.matmul %221, %222, %cst_85 {dimension_numbers = #tpu.dot_dimension_numbers<[1], [1], [0], [0], [0, 0, 1, 0], [], []>} : vector<8x8xf32>, vector<12x8xf32>, vector<8x12xf32> -> vector<8x12xf32>
    %cst_86 = arith.constant dense<0xFF800000> : vector<8xf32>
    %224 = vector.multi_reduction <maximumf>, %223, %cst_86 [1] : vector<8x12xf32> to vector<8xf32>
    %225 = vector.shape_cast %224 : vector<8xf32> to vector<8x1xf32>
    %226 = vector.broadcast %225 : vector<8x1xf32> to vector<8x12xf32>
    %227 = arith.subf %223, %226 : vector<8x12xf32>
    %228 = math.exp %227 : vector<8x12xf32>
    %cst_87 = arith.constant dense<0.000000e+00> : vector<8xf32>
    %229 = vector.multi_reduction <add>, %228, %cst_87 [1] : vector<8x12xf32> to vector<8xf32>
    %230 = vector.shape_cast %229 : vector<8xf32> to vector<8x1xf32>
    %231 = tpu.reciprocal %230 {approx = true} : vector<8x1xf32> -> vector<8x1xf32>
    %232 = vector.broadcast %231 : vector<8x1xf32> to vector<8x12xf32>
    %233 = arith.mulf %228, %232 : vector<8x12xf32>
    %234 = vector.extract_strided_slice %177 {offsets = [0, 16], sizes = [12, 8], strides = [1, 1]} : vector<12x32xf32> to vector<12x8xf32>
    %cst_88 = arith.constant dense<0.000000e+00> : vector<8x8xf32>
    %235 = tpu.matmul %233, %234, %cst_88 {dimension_numbers = #tpu.dot_dimension_numbers<[1], [0], [0], [1], [0, 0, 1, 1], [], []>} : vector<8x12xf32>, vector<12x8xf32>, vector<8x8xf32> -> vector<8x8xf32>
    %236 = vector.extract_strided_slice %190 {offsets = [0, 24], sizes = [8, 8], strides = [1, 1]} : vector<8x32xf32> to vector<8x8xf32>
    %237 = vector.extract_strided_slice %176 {offsets = [0, 24], sizes = [12, 8], strides = [1, 1]} : vector<12x32xf32> to vector<12x8xf32>
    %cst_89 = arith.constant dense<0.000000e+00> : vector<8x12xf32>
    %238 = tpu.matmul %236, %237, %cst_89 {dimension_numbers = #tpu.dot_dimension_numbers<[1], [1], [0], [0], [0, 0, 1, 0], [], []>} : vector<8x8xf32>, vector<12x8xf32>, vector<8x12xf32> -> vector<8x12xf32>
    %cst_90 = arith.constant dense<0xFF800000> : vector<8xf32>
    %239 = vector.multi_reduction <maximumf>, %238, %cst_90 [1] : vector<8x12xf32> to vector<8xf32>
    %240 = vector.shape_cast %239 : vector<8xf32> to vector<8x1xf32>
    %241 = vector.broadcast %240 : vector<8x1xf32> to vector<8x12xf32>
    %242 = arith.subf %238, %241 : vector<8x12xf32>
    %243 = math.exp %242 : vector<8x12xf32>
    %cst_91 = arith.constant dense<0.000000e+00> : vector<8xf32>
    %244 = vector.multi_reduction <add>, %243, %cst_91 [1] : vector<8x12xf32> to vector<8xf32>
    %245 = vector.shape_cast %244 : vector<8xf32> to vector<8x1xf32>
    %246 = tpu.reciprocal %245 {approx = true} : vector<8x1xf32> -> vector<8x1xf32>
    %247 = vector.broadcast %246 : vector<8x1xf32> to vector<8x12xf32>
    %248 = arith.mulf %243, %247 : vector<8x12xf32>
    %249 = vector.extract_strided_slice %177 {offsets = [0, 24], sizes = [12, 8], strides = [1, 1]} : vector<12x32xf32> to vector<12x8xf32>
    %cst_92 = arith.constant dense<0.000000e+00> : vector<8x8xf32>
    %250 = tpu.matmul %248, %249, %cst_92 {dimension_numbers = #tpu.dot_dimension_numbers<[1], [0], [0], [1], [0, 0, 1, 1], [], []>} : vector<8x12xf32>, vector<12x8xf32>, vector<8x8xf32> -> vector<8x8xf32>
    %251 = tpu.concatenate %205, %220, %235, %250 in 1 : vector<8x8xf32>, vector<8x8xf32>, vector<8x8xf32>, vector<8x8xf32> -> vector<8x32xf32>
    %252 = vector.extract_strided_slice %165 {offsets = [8, 0], sizes = [8, 32], strides = [1, 1]} : vector<16x32xf32> to vector<8x32xf32>
    %253 = vector.extract_strided_slice %252 {offsets = [0, 0], sizes = [8, 8], strides = [1, 1]} : vector<8x32xf32> to vector<8x8xf32>
    %254 = vector.extract_strided_slice %188 {offsets = [0, 0], sizes = [12, 8], strides = [1, 1]} : vector<12x32xf32> to vector<12x8xf32>
    %cst_93 = arith.constant dense<0.000000e+00> : vector<8x12xf32>
    %255 = tpu.matmul %253, %254, %cst_93 {dimension_numbers = #tpu.dot_dimension_numbers<[1], [1], [0], [0], [0, 0, 1, 0], [], []>} : vector<8x8xf32>, vector<12x8xf32>, vector<8x12xf32> -> vector<8x12xf32>
    %cst_94 = arith.constant dense<0xFF800000> : vector<8xf32>
    %256 = vector.multi_reduction <maximumf>, %255, %cst_94 [1] : vector<8x12xf32> to vector<8xf32>
    %257 = vector.shape_cast %256 : vector<8xf32> to vector<8x1xf32>
    %258 = vector.broadcast %257 : vector<8x1xf32> to vector<8x12xf32>
    %259 = arith.subf %255, %258 : vector<8x12xf32>
    %260 = math.exp %259 : vector<8x12xf32>
    %cst_95 = arith.constant dense<0.000000e+00> : vector<8xf32>
    %261 = vector.multi_reduction <add>, %260, %cst_95 [1] : vector<8x12xf32> to vector<8xf32>
    %262 = vector.shape_cast %261 : vector<8xf32> to vector<8x1xf32>
    %263 = tpu.reciprocal %262 {approx = true} : vector<8x1xf32> -> vector<8x1xf32>
    %264 = vector.broadcast %263 : vector<8x1xf32> to vector<8x12xf32>
    %265 = arith.mulf %260, %264 : vector<8x12xf32>
    %266 = vector.extract_strided_slice %189 {offsets = [0, 0], sizes = [12, 8], strides = [1, 1]} : vector<12x32xf32> to vector<12x8xf32>
    %cst_96 = arith.constant dense<0.000000e+00> : vector<8x8xf32>
    %267 = tpu.matmul %265, %266, %cst_96 {dimension_numbers = #tpu.dot_dimension_numbers<[1], [0], [0], [1], [0, 0, 1, 1], [], []>} : vector<8x12xf32>, vector<12x8xf32>, vector<8x8xf32> -> vector<8x8xf32>
    %268 = vector.extract_strided_slice %252 {offsets = [0, 8], sizes = [8, 8], strides = [1, 1]} : vector<8x32xf32> to vector<8x8xf32>
    %269 = vector.extract_strided_slice %188 {offsets = [0, 8], sizes = [12, 8], strides = [1, 1]} : vector<12x32xf32> to vector<12x8xf32>
    %cst_97 = arith.constant dense<0.000000e+00> : vector<8x12xf32>
    %270 = tpu.matmul %268, %269, %cst_97 {dimension_numbers = #tpu.dot_dimension_numbers<[1], [1], [0], [0], [0, 0, 1, 0], [], []>} : vector<8x8xf32>, vector<12x8xf32>, vector<8x12xf32> -> vector<8x12xf32>
    %cst_98 = arith.constant dense<0xFF800000> : vector<8xf32>
    %271 = vector.multi_reduction <maximumf>, %270, %cst_98 [1] : vector<8x12xf32> to vector<8xf32>
    %272 = vector.shape_cast %271 : vector<8xf32> to vector<8x1xf32>
    %273 = vector.broadcast %272 : vector<8x1xf32> to vector<8x12xf32>
    %274 = arith.subf %270, %273 : vector<8x12xf32>
    %275 = math.exp %274 : vector<8x12xf32>
    %cst_99 = arith.constant dense<0.000000e+00> : vector<8xf32>
    %276 = vector.multi_reduction <add>, %275, %cst_99 [1] : vector<8x12xf32> to vector<8xf32>
    %277 = vector.shape_cast %276 : vector<8xf32> to vector<8x1xf32>
    %278 = tpu.reciprocal %277 {approx = true} : vector<8x1xf32> -> vector<8x1xf32>
    %279 = vector.broadcast %278 : vector<8x1xf32> to vector<8x12xf32>
    %280 = arith.mulf %275, %279 : vector<8x12xf32>
    %281 = vector.extract_strided_slice %189 {offsets = [0, 8], sizes = [12, 8], strides = [1, 1]} : vector<12x32xf32> to vector<12x8xf32>
    %cst_100 = arith.constant dense<0.000000e+00> : vector<8x8xf32>
    %282 = tpu.matmul %280, %281, %cst_100 {dimension_numbers = #tpu.dot_dimension_numbers<[1], [0], [0], [1], [0, 0, 1, 1], [], []>} : vector<8x12xf32>, vector<12x8xf32>, vector<8x8xf32> -> vector<8x8xf32>
    %283 = vector.extract_strided_slice %252 {offsets = [0, 16], sizes = [8, 8], strides = [1, 1]} : vector<8x32xf32> to vector<8x8xf32>
    %284 = vector.extract_strided_slice %188 {offsets = [0, 16], sizes = [12, 8], strides = [1, 1]} : vector<12x32xf32> to vector<12x8xf32>
    %cst_101 = arith.constant dense<0.000000e+00> : vector<8x12xf32>
    %285 = tpu.matmul %283, %284, %cst_101 {dimension_numbers = #tpu.dot_dimension_numbers<[1], [1], [0], [0], [0, 0, 1, 0], [], []>} : vector<8x8xf32>, vector<12x8xf32>, vector<8x12xf32> -> vector<8x12xf32>
    %cst_102 = arith.constant dense<0xFF800000> : vector<8xf32>
    %286 = vector.multi_reduction <maximumf>, %285, %cst_102 [1] : vector<8x12xf32> to vector<8xf32>
    %287 = vector.shape_cast %286 : vector<8xf32> to vector<8x1xf32>
    %288 = vector.broadcast %287 : vector<8x1xf32> to vector<8x12xf32>
    %289 = arith.subf %285, %288 : vector<8x12xf32>
    %290 = math.exp %289 : vector<8x12xf32>
    %cst_103 = arith.constant dense<0.000000e+00> : vector<8xf32>
    %291 = vector.multi_reduction <add>, %290, %cst_103 [1] : vector<8x12xf32> to vector<8xf32>
    %292 = vector.shape_cast %291 : vector<8xf32> to vector<8x1xf32>
    %293 = tpu.reciprocal %292 {approx = true} : vector<8x1xf32> -> vector<8x1xf32>
    %294 = vector.broadcast %293 : vector<8x1xf32> to vector<8x12xf32>
    %295 = arith.mulf %290, %294 : vector<8x12xf32>
    %296 = vector.extract_strided_slice %189 {offsets = [0, 16], sizes = [12, 8], strides = [1, 1]} : vector<12x32xf32> to vector<12x8xf32>
    %cst_104 = arith.constant dense<0.000000e+00> : vector<8x8xf32>
    %297 = tpu.matmul %295, %296, %cst_104 {dimension_numbers = #tpu.dot_dimension_numbers<[1], [0], [0], [1], [0, 0, 1, 1], [], []>} : vector<8x12xf32>, vector<12x8xf32>, vector<8x8xf32> -> vector<8x8xf32>
    %298 = vector.extract_strided_slice %252 {offsets = [0, 24], sizes = [8, 8], strides = [1, 1]} : vector<8x32xf32> to vector<8x8xf32>
    %299 = vector.extract_strided_slice %188 {offsets = [0, 24], sizes = [12, 8], strides = [1, 1]} : vector<12x32xf32> to vector<12x8xf32>
    %cst_105 = arith.constant dense<0.000000e+00> : vector<8x12xf32>
    %300 = tpu.matmul %298, %299, %cst_105 {dimension_numbers = #tpu.dot_dimension_numbers<[1], [1], [0], [0], [0, 0, 1, 0], [], []>} : vector<8x8xf32>, vector<12x8xf32>, vector<8x12xf32> -> vector<8x12xf32>
    %cst_106 = arith.constant dense<0xFF800000> : vector<8xf32>
    %301 = vector.multi_reduction <maximumf>, %300, %cst_106 [1] : vector<8x12xf32> to vector<8xf32>
    %302 = vector.shape_cast %301 : vector<8xf32> to vector<8x1xf32>
    %303 = vector.broadcast %302 : vector<8x1xf32> to vector<8x12xf32>
    %304 = arith.subf %300, %303 : vector<8x12xf32>
    %305 = math.exp %304 : vector<8x12xf32>
    %cst_107 = arith.constant dense<0.000000e+00> : vector<8xf32>
    %306 = vector.multi_reduction <add>, %305, %cst_107 [1] : vector<8x12xf32> to vector<8xf32>
    %307 = vector.shape_cast %306 : vector<8xf32> to vector<8x1xf32>
    %308 = tpu.reciprocal %307 {approx = true} : vector<8x1xf32> -> vector<8x1xf32>
    %309 = vector.broadcast %308 : vector<8x1xf32> to vector<8x12xf32>
    %310 = arith.mulf %305, %309 : vector<8x12xf32>
    %311 = vector.extract_strided_slice %189 {offsets = [0, 24], sizes = [12, 8], strides = [1, 1]} : vector<12x32xf32> to vector<12x8xf32>
    %cst_108 = arith.constant dense<0.000000e+00> : vector<8x8xf32>
    %312 = tpu.matmul %310, %311, %cst_108 {dimension_numbers = #tpu.dot_dimension_numbers<[1], [0], [0], [1], [0, 0, 1, 1], [], []>} : vector<8x12xf32>, vector<12x8xf32>, vector<8x8xf32> -> vector<8x8xf32>
    %313 = tpu.concatenate %267, %282, %297, %312 in 1 : vector<8x8xf32>, vector<8x8xf32>, vector<8x8xf32>, vector<8x8xf32> -> vector<8x32xf32>
    %314 = tpu.concatenate %251, %313 in 0 : vector<8x32xf32>, vector<8x32xf32> -> vector<16x32xf32>
    %c0_109 = arith.constant 0 : index
    %c0_110 = arith.constant 0 : index
    %c0_111 = arith.constant 0 : index
    %315 = vector.load %arg14[%c0_109, %c0_110, %c0_111] : memref<1x32x32xbf16, #tpu.memory_space<vmem>>, vector<1x32x32xbf16>
    %316 = vector.shape_cast %315 : vector<1x32x32xbf16> to vector<32x32xbf16>
    %317 = arith.truncf %314 : vector<16x32xf32> to vector<16x32xbf16>
    %cst_112 = arith.constant dense<0.000000e+00> : vector<16x32xf32>
    %318 = tpu.matmul %317, %316, %cst_112 {dimension_numbers = #tpu.dot_dimension_numbers<[1], [0], [0], [1], [0, 0, 1, 1], [], []>} : vector<16x32xbf16>, vector<32x32xbf16>, vector<16x32xf32> -> vector<16x32xf32>
    %c0_113 = arith.constant 0 : index
    %c0_114 = arith.constant 0 : index
    %c0_115 = arith.constant 0 : index
    %319 = vector.load %arg15[%c0_113, %c0_114, %c0_115] : memref<1x1x32xf32, #tpu.memory_space<vmem>>, vector<1x1x32xf32>
    %320 = vector.shape_cast %319 : vector<1x1x32xf32> to vector<1x32xf32>
    %321 = vector.broadcast %320 : vector<1x32xf32> to vector<16x32xf32>
    %322 = arith.addf %318, %321 : vector<16x32xf32>
    %323 = arith.addf %157, %322 : vector<16x32xf32>
    %324 = vector.extract_strided_slice %323 {offsets = [0, 0], sizes = [8, 32], strides = [1, 1]} : vector<16x32xf32> to vector<8x32xf32>
    %cst_116 = arith.constant dense<0.000000e+00> : vector<8x32xf32>
    %325 = tpu.matmul %4, %324, %cst_116 {dimension_numbers = #tpu.dot_dimension_numbers<[1], [0], [0], [1], [0, 0, 1, 1], [], []>} : vector<8x8xf32>, vector<8x32xf32>, vector<8x32xf32> -> vector<8x32xf32>
    %326 = vector.extract_strided_slice %323 {offsets = [8, 0], sizes = [8, 32], strides = [1, 1]} : vector<16x32xf32> to vector<8x32xf32>
    %cst_117 = arith.constant dense<0.000000e+00> : vector<8x32xf32>
    %327 = tpu.matmul %4, %326, %cst_117 {dimension_numbers = #tpu.dot_dimension_numbers<[1], [0], [0], [1], [0, 0, 1, 1], [], []>} : vector<8x8xf32>, vector<8x32xf32>, vector<8x32xf32> -> vector<8x32xf32>
    %328 = tpu.concatenate %325, %327 in 0 : vector<8x32xf32>, vector<8x32xf32> -> vector<16x32xf32>
    %329 = arith.subf %323, %328 : vector<16x32xf32>
    %c0_118 = arith.constant 0 : index
    %c0_119 = arith.constant 0 : index
    %c0_120 = arith.constant 0 : index
    %330 = vector.load %arg16[%c0_118, %c0_119, %c0_120] : memref<1x32x32xbf16, #tpu.memory_space<vmem>>, vector<1x32x32xbf16>
    %331 = vector.shape_cast %330 : vector<1x32x32xbf16> to vector<32x32xbf16>
    %332 = arith.truncf %329 : vector<16x32xf32> to vector<16x32xbf16>
    %cst_121 = arith.constant dense<0.000000e+00> : vector<16x32xf32>
    %333 = tpu.matmul %332, %331, %cst_121 {dimension_numbers = #tpu.dot_dimension_numbers<[1], [0], [0], [1], [0, 0, 1, 1], [], []>} : vector<16x32xbf16>, vector<32x32xbf16>, vector<16x32xf32> -> vector<16x32xf32>
    %cst_122 = arith.constant 0.000000e+00 : f32
    %334 = vector.broadcast %cst_122 : f32 to vector<16x32xf32>
    %335 = arith.maximumf %333, %334 : vector<16x32xf32>
    %c0_123 = arith.constant 0 : index
    %c0_124 = arith.constant 0 : index
    %c0_125 = arith.constant 0 : index
    %336 = vector.load %arg17[%c0_123, %c0_124, %c0_125] : memref<1x32x32xbf16, #tpu.memory_space<vmem>>, vector<1x32x32xbf16>
    %337 = vector.shape_cast %336 : vector<1x32x32xbf16> to vector<32x32xbf16>
    %338 = arith.truncf %335 : vector<16x32xf32> to vector<16x32xbf16>
    %cst_126 = arith.constant dense<0.000000e+00> : vector<16x32xf32>
    %339 = tpu.matmul %338, %337, %cst_126 {dimension_numbers = #tpu.dot_dimension_numbers<[1], [0], [0], [1], [0, 0, 1, 1], [], []>} : vector<16x32xbf16>, vector<32x32xbf16>, vector<16x32xf32> -> vector<16x32xf32>
    %340 = arith.addf %329, %339 : vector<16x32xf32>
    %341 = vector.extract_strided_slice %340 {offsets = [0, 0], sizes = [8, 32], strides = [1, 1]} : vector<16x32xf32> to vector<8x32xf32>
    %cst_127 = arith.constant dense<0.000000e+00> : vector<8x32xf32>
    %342 = tpu.matmul %4, %341, %cst_127 {dimension_numbers = #tpu.dot_dimension_numbers<[1], [0], [0], [1], [0, 0, 1, 1], [], []>} : vector<8x8xf32>, vector<8x32xf32>, vector<8x32xf32> -> vector<8x32xf32>
    %343 = vector.extract_strided_slice %340 {offsets = [8, 0], sizes = [8, 32], strides = [1, 1]} : vector<16x32xf32> to vector<8x32xf32>
    %cst_128 = arith.constant dense<0.000000e+00> : vector<8x32xf32>
    %344 = tpu.matmul %4, %343, %cst_128 {dimension_numbers = #tpu.dot_dimension_numbers<[1], [0], [0], [1], [0, 0, 1, 1], [], []>} : vector<8x8xf32>, vector<8x32xf32>, vector<8x32xf32> -> vector<8x32xf32>
    %345 = tpu.concatenate %342, %344 in 0 : vector<8x32xf32>, vector<8x32xf32> -> vector<16x32xf32>
    %346 = arith.subf %340, %345 : vector<16x32xf32>
    %c0_129 = arith.constant 0 : index
    %c0_130 = arith.constant 0 : index
    %347 = vector.load %arg25[%c0_129, %c0_130] : memref<16x32xf32, #tpu.memory_space<vmem>>, vector<16x32xf32>
    tpu.vector_store %arg25[%c0_129, %c0_130], %346 {strides = array<i32>} : memref<16x32xf32, #tpu.memory_space<vmem>>, vector<16x32xf32>,
    %348 = arith.addf %156, %328 : vector<16x32xf32>
    %349 = arith.addf %348, %345 : vector<16x32xf32>
    %c0_131 = arith.constant 0 : index
    %c0_132 = arith.constant 0 : index
    %c0_133 = arith.constant 0 : index
    %350 = vector.load %arg18[%c0_131, %c0_132, %c0_133] : memref<1x96x128xbf16, #tpu.memory_space<vmem>>, vector<1x96x128xbf16>
    %351 = vector.shape_cast %350 : vector<1x96x128xbf16> to vector<96x128xbf16>
    %352 = vector.extract_strided_slice %351 {offsets = [0, 0], sizes = [32, 128], strides = [1, 1]} : vector<96x128xbf16> to vector<32x128xbf16>
    %353 = arith.truncf %349 : vector<16x32xf32> to vector<16x32xbf16>
    %cst_134 = arith.constant dense<0.000000e+00> : vector<16x128xf32>
    %354 = tpu.matmul %353, %352, %cst_134 {dimension_numbers = #tpu.dot_dimension_numbers<[1], [0], [0], [1], [0, 0, 1, 1], [], []>} : vector<16x32xbf16>, vector<32x128xbf16>, vector<16x128xf32> -> vector<16x128xf32>
    %355 = vector.extract_strided_slice %351 {offsets = [32, 0], sizes = [32, 128], strides = [1, 1]} : vector<96x128xbf16> to vector<32x128xbf16>
    %356 = arith.truncf %349 : vector<16x32xf32> to vector<16x32xbf16>
    %cst_135 = arith.constant dense<0.000000e+00> : vector<16x128xf32>
    %357 = tpu.matmul %356, %355, %cst_135 {dimension_numbers = #tpu.dot_dimension_numbers<[1], [0], [0], [1], [0, 0, 1, 1], [], []>} : vector<16x32xbf16>, vector<32x128xbf16>, vector<16x128xf32> -> vector<16x128xf32>
    %358 = vector.extract_strided_slice %351 {offsets = [64, 0], sizes = [32, 128], strides = [1, 1]} : vector<96x128xbf16> to vector<32x128xbf16>
    %359 = arith.truncf %349 : vector<16x32xf32> to vector<16x32xbf16>
    %cst_136 = arith.constant dense<0.000000e+00> : vector<16x128xf32>
    %360 = tpu.matmul %359, %358, %cst_136 {dimension_numbers = #tpu.dot_dimension_numbers<[1], [0], [0], [1], [0, 0, 1, 1], [], []>} : vector<16x32xbf16>, vector<32x128xbf16>, vector<16x128xf32> -> vector<16x128xf32>
    %361 = vector.extract_strided_slice %354 {offsets = [0, 0], sizes = [8, 128], strides = [1, 1]} : vector<16x128xf32> to vector<8x128xf32>
    %c1_i32 = arith.constant 1 : i32
    %362 = tpu.dynamic_rotate %361 by %c1_i32 dim 0 : vector<8x128xf32>, i32 -> vector<8x128xf32>
    %363 = vector.extract_strided_slice %357 {offsets = [0, 0], sizes = [8, 128], strides = [1, 1]} : vector<16x128xf32> to vector<8x128xf32>
    %364 = arith.addf %362, %363 : vector<8x128xf32>
    %365 = vector.extract_strided_slice %360 {offsets = [0, 0], sizes = [8, 128], strides = [1, 1]} : vector<16x128xf32> to vector<8x128xf32>
    %c7_i32 = arith.constant 7 : i32
    %366 = tpu.dynamic_rotate %365 by %c7_i32 dim 0 : vector<8x128xf32>, i32 -> vector<8x128xf32>
    %367 = arith.addf %364, %366 : vector<8x128xf32>
    %368 = vector.extract_strided_slice %354 {offsets = [8, 0], sizes = [8, 128], strides = [1, 1]} : vector<16x128xf32> to vector<8x128xf32>
    %c1_i32_137 = arith.constant 1 : i32
    %369 = tpu.dynamic_rotate %368 by %c1_i32_137 dim 0 : vector<8x128xf32>, i32 -> vector<8x128xf32>
    %370 = vector.extract_strided_slice %357 {offsets = [8, 0], sizes = [8, 128], strides = [1, 1]} : vector<16x128xf32> to vector<8x128xf32>
    %371 = arith.addf %369, %370 : vector<8x128xf32>
    %372 = vector.extract_strided_slice %360 {offsets = [8, 0], sizes = [8, 128], strides = [1, 1]} : vector<16x128xf32> to vector<8x128xf32>
    %c7_i32_138 = arith.constant 7 : i32
    %373 = tpu.dynamic_rotate %372 by %c7_i32_138 dim 0 : vector<8x128xf32>, i32 -> vector<8x128xf32>
    %374 = arith.addf %371, %373 : vector<8x128xf32>
    %375 = tpu.concatenate %367, %374 in 0 : vector<8x128xf32>, vector<8x128xf32> -> vector<16x128xf32>
    %c0_139 = arith.constant 0 : index
    %c0_140 = arith.constant 0 : index
    %376 = vector.load %arg26[%c0_139, %c0_140] : memref<16x128xf32, #tpu.memory_space<vmem>>, vector<16x128xf32>
    %377 = arith.addf %376, %375 : vector<16x128xf32>
    %c0_141 = arith.constant 0 : index
    %c0_142 = arith.constant 0 : index
    %378 = vector.load %arg26[%c0_141, %c0_142] : memref<16x128xf32, #tpu.memory_space<vmem>>, vector<16x128xf32>
    tpu.vector_store %arg26[%c0_141, %c0_142], %377 {strides = array<i32>} : memref<16x128xf32, #tpu.memory_space<vmem>>, vector<16x128xf32>,
    %c1_i32_143 = arith.constant 1 : i32
    %379 = arith.cmpi eq, %arg1, %c1_i32_143 : i32
    %380 = arith.extui %379 : i1 to i32
    %c0_i32_144 = arith.constant 0 : i32
    %381 = arith.cmpi ne, %380, %c0_i32_144 : i32
    scf.if %381 {
      %c0_145 = arith.constant 0 : index
      %c0_146 = arith.constant 0 : index
      %382 = vector.load %arg19[%c0_145, %c0_146] : memref<1x32xf32, #tpu.memory_space<vmem>>, vector<1x32xf32>
      %c0_147 = arith.constant 0 : index
      %c0_148 = arith.constant 0 : index
      %383 = vector.load %arg20[%c0_147, %c0_148] : memref<1x32xf32, #tpu.memory_space<vmem>>, vector<1x32xf32>
      %cst_149 = arith.constant dense<0.000000e+00> : vector<16xf32>
      %384 = vector.multi_reduction <add>, %346, %cst_149 [1] : vector<16x32xf32> to vector<16xf32>
      %385 = vector.shape_cast %384 : vector<16xf32> to vector<16x1xf32>
      %cst_150 = arith.constant 3.200000e+01 : f32
      %386 = vector.broadcast %cst_150 : f32 to vector<16x1xf32>
      %387 = arith.divf %385, %386 : vector<16x1xf32>
      %388 = vector.broadcast %387 : vector<16x1xf32> to vector<16x32xf32>
      %389 = arith.subf %346, %388 : vector<16x32xf32>
      %390 = arith.mulf %389, %389 : vector<16x32xf32>
      %cst_151 = arith.constant dense<0.000000e+00> : vector<16xf32>
      %391 = vector.multi_reduction <add>, %390, %cst_151 [1] : vector<16x32xf32> to vector<16xf32>
      %392 = vector.shape_cast %391 : vector<16xf32> to vector<16x1xf32>
      %cst_152 = arith.constant 3.200000e+01 : f32
      %393 = vector.broadcast %cst_152 : f32 to vector<16x1xf32>
      %394 = arith.divf %392, %393 : vector<16x1xf32>
      %395 = vector.broadcast %387 : vector<16x1xf32> to vector<16x32xf32>
      %396 = arith.subf %346, %395 : vector<16x32xf32>
      %cst_153 = arith.constant 9.99999974E-6 : f32
      %397 = vector.broadcast %cst_153 : f32 to vector<16x1xf32>
      %398 = arith.addf %394, %397 : vector<16x1xf32>
      %399 = math.rsqrt %398 : vector<16x1xf32>
      %400 = vector.broadcast %399 : vector<16x1xf32> to vector<16x32xf32>
      %401 = arith.mulf %396, %400 : vector<16x32xf32>
      %402 = vector.broadcast %382 : vector<1x32xf32> to vector<16x32xf32>
      %403 = arith.mulf %401, %402 : vector<16x32xf32>
      %404 = vector.broadcast %383 : vector<1x32xf32> to vector<16x32xf32>
      %405 = arith.addf %403, %404 : vector<16x32xf32>
      %406 = vector.shape_cast %405 : vector<16x32xf32> to vector<2x8x32xf32>
      %cst_154 = arith.constant dense<0.000000e+00> : vector<2x32xf32>
      %407 = vector.multi_reduction <add>, %406, %cst_154 [1] : vector<2x8x32xf32> to vector<2x32xf32>
      %408 = vector.shape_cast %407 : vector<2x32xf32> to vector<2x1x32xf32>
      %cst_155 = arith.constant 8.000000e+00 : f32
      %409 = vector.broadcast %cst_155 : f32 to vector<2x1x32xf32>
      %410 = arith.divf %408, %409 : vector<2x1x32xf32>
      %411 = vector.broadcast %410 : vector<2x1x32xf32> to vector<2x8x32xf32>
      %412 = arith.subf %406, %411 : vector<2x8x32xf32>
      %413 = vector.shape_cast %412 : vector<2x8x32xf32> to vector<16x32xf32>
      %c0_156 = arith.constant 0 : index
      %c0_157 = arith.constant 0 : index
      %414 = vector.load %arg21[%c0_156, %c0_157] : memref<32x128xbf16, #tpu.memory_space<vmem>>, vector<32x128xbf16>
      %415 = arith.truncf %413 : vector<16x32xf32> to vector<16x32xbf16>
      %cst_158 = arith.constant dense<0.000000e+00> : vector<16x128xf32>
      %416 = tpu.matmul %415, %414, %cst_158 {dimension_numbers = #tpu.dot_dimension_numbers<[1], [0], [0], [1], [0, 0, 1, 1], [], []>} : vector<16x32xbf16>, vector<32x128xbf16>, vector<16x128xf32> -> vector<16x128xf32>
      %c0_159 = arith.constant 0 : index
      %c0_160 = arith.constant 0 : index
      %417 = vector.load %arg22[%c0_159, %c0_160] : memref<1x128xf32, #tpu.memory_space<vmem>>, vector<1x128xf32>
      %418 = vector.broadcast %417 : vector<1x128xf32> to vector<16x128xf32>
      %419 = arith.addf %416, %418 : vector<16x128xf32>
      %420 = vector.shape_cast %419 : vector<16x128xf32> to vector<2x8x128xf32>
      %c0_161 = arith.constant 0 : index
      %c0_162 = arith.constant 0 : index
      %c0_163 = arith.constant 0 : index
      %421 = vector.load %arg23[%c0_161, %c0_162, %c0_163] : memref<2x8x128xf32, #tpu.memory_space<vmem>>, vector<2x8x128xf32>
      tpu.vector_store %arg23[%c0_161, %c0_162, %c0_163], %420 {strides = array<i32>} : memref<2x8x128xf32, #tpu.memory_space<vmem>>, vector<2x8x128xf32>,
      %c0_164 = arith.constant 0 : index
      %c0_165 = arith.constant 0 : index
      %422 = vector.load %arg26[%c0_164, %c0_165] : memref<16x128xf32, #tpu.memory_space<vmem>>, vector<16x128xf32>
      %423 = vector.shape_cast %422 : vector<16x128xf32> to vector<2x8x128xf32>
      %c0_166 = arith.constant 0 : index
      %c0_167 = arith.constant 0 : index
      %c0_168 = arith.constant 0 : index
      %424 = vector.load %arg24[%c0_166, %c0_167, %c0_168] : memref<2x8x128xf32, #tpu.memory_space<vmem>>, vector<2x8x128xf32>
      tpu.vector_store %arg24[%c0_166, %c0_167, %c0_168], %423 {strides = array<i32>} : memref<2x8x128xf32, #tpu.memory_space<vmem>>, vector<2x8x128xf32>,
    } else {
    }
    return
  }
  func.func @transform_0(%arg0: i32, %arg1: i32) -> (i32, i32, i32) {
    %c0_i32 = arith.constant 0 : i32
    %c0_i32_0 = arith.constant 0 : i32
    %c0_i32_1 = arith.constant 0 : i32
    return %arg0, %c0_i32, %c0_i32_0 : i32, i32, i32
  }
  func.func @transform_1(%arg0: i32, %arg1: i32) -> (i32, i32, i32) {
    %c0_i32 = arith.constant 0 : i32
    %c0_i32_0 = arith.constant 0 : i32
    %c0_i32_1 = arith.constant 0 : i32
    return %arg0, %c0_i32, %c0_i32_0 : i32, i32, i32
  }
  func.func @transform_2(%arg0: i32, %arg1: i32) -> (i32, i32, i32) {
    %c0_i32 = arith.constant 0 : i32
    %c0_i32_0 = arith.constant 0 : i32
    %c0_i32_1 = arith.constant 0 : i32
    return %arg0, %c0_i32, %c0_i32_0 : i32, i32, i32
  }
  func.func @transform_3(%arg0: i32, %arg1: i32) -> (i32, i32) {
    %c0_i32 = arith.constant 0 : i32
    %c0_i32_0 = arith.constant 0 : i32
    %c0_i32_1 = arith.constant 0 : i32
    return %c0_i32, %c0_i32_0 : i32, i32
  }
  func.func @transform_4(%arg0: i32, %arg1: i32) -> (i32, i32, i32) {
    %c0_i32 = arith.constant 0 : i32
    %c0_i32_0 = arith.constant 0 : i32
    %c0_i32_1 = arith.constant 0 : i32
    return %arg1, %c0_i32, %c0_i32_0 : i32, i32, i32
  }
  func.func @transform_5(%arg0: i32, %arg1: i32) -> (i32, i32, i32) {
    %c0_i32 = arith.constant 0 : i32
    %c0_i32_0 = arith.constant 0 : i32
    %c0_i32_1 = arith.constant 0 : i32
    return %arg1, %c0_i32, %c0_i32_0 : i32, i32, i32
  }
  func.func @transform_6(%arg0: i32, %arg1: i32) -> (i32, i32, i32) {
    %c0_i32 = arith.constant 0 : i32
    %c0_i32_0 = arith.constant 0 : i32
    %c0_i32_1 = arith.constant 0 : i32
    return %arg1, %c0_i32, %c0_i32_0 : i32, i32, i32
  }
  func.func @transform_7(%arg0: i32, %arg1: i32) -> (i32, i32, i32) {
    %c0_i32 = arith.constant 0 : i32
    %c0_i32_0 = arith.constant 0 : i32
    %c0_i32_1 = arith.constant 0 : i32
    return %arg1, %c0_i32, %c0_i32_0 : i32, i32, i32
  }
  func.func @transform_8(%arg0: i32, %arg1: i32) -> (i32, i32, i32) {
    %c0_i32 = arith.constant 0 : i32
    %c0_i32_0 = arith.constant 0 : i32
    %c0_i32_1 = arith.constant 0 : i32
    return %arg1, %c0_i32, %c0_i32_0 : i32, i32, i32
  }
  func.func @transform_9(%arg0: i32, %arg1: i32) -> (i32, i32, i32) {
    %c0_i32 = arith.constant 0 : i32
    %c0_i32_0 = arith.constant 0 : i32
    %c0_i32_1 = arith.constant 0 : i32
    return %arg1, %c0_i32, %c0_i32_0 : i32, i32, i32
  }
  func.func @transform_10(%arg0: i32, %arg1: i32) -> (i32, i32, i32) {
    %c0_i32 = arith.constant 0 : i32
    %c0_i32_0 = arith.constant 0 : i32
    %c0_i32_1 = arith.constant 0 : i32
    return %arg1, %c0_i32, %c0_i32_0 : i32, i32, i32
  }
  func.func @transform_11(%arg0: i32, %arg1: i32) -> (i32, i32, i32) {
    %c0_i32 = arith.constant 0 : i32
    %c0_i32_0 = arith.constant 0 : i32
    %c0_i32_1 = arith.constant 0 : i32
    return %arg1, %c0_i32, %c0_i32_0 : i32, i32, i32
  }
  func.func @transform_12(%arg0: i32, %arg1: i32) -> (i32, i32, i32) {
    %c0_i32 = arith.constant 0 : i32
    %c0_i32_0 = arith.constant 0 : i32
    %c0_i32_1 = arith.constant 0 : i32
    return %arg1, %c0_i32, %c0_i32_0 : i32, i32, i32
  }
  func.func @transform_13(%arg0: i32, %arg1: i32) -> (i32, i32, i32) {
    %c0_i32 = arith.constant 0 : i32
    %c0_i32_0 = arith.constant 0 : i32
    %c0_i32_1 = arith.constant 0 : i32
    return %arg1, %c0_i32, %c0_i32_0 : i32, i32, i32
  }
  func.func @transform_14(%arg0: i32, %arg1: i32) -> (i32, i32, i32) {
    %c0_i32 = arith.constant 0 : i32
    %c0_i32_0 = arith.constant 0 : i32
    %c0_i32_1 = arith.constant 0 : i32
    return %arg1, %c0_i32, %c0_i32_0 : i32, i32, i32
  }
  func.func @transform_15(%arg0: i32, %arg1: i32) -> (i32, i32, i32) {
    %c0_i32 = arith.constant 0 : i32
    %c0_i32_0 = arith.constant 0 : i32
    %c0_i32_1 = arith.constant 0 : i32
    return %arg1, %c0_i32, %c0_i32_0 : i32, i32, i32
  }
  func.func @transform_16(%arg0: i32, %arg1: i32) -> (i32, i32, i32) {
    %c0_i32 = arith.constant 0 : i32
    %c0_i32_0 = arith.constant 0 : i32
    %c0_i32_1 = arith.constant 0 : i32
    return %arg1, %c0_i32, %c0_i32_0 : i32, i32, i32
  }
  func.func @transform_17(%arg0: i32, %arg1: i32) -> (i32, i32) {
    %c0_i32 = arith.constant 0 : i32
    %c0_i32_0 = arith.constant 0 : i32
    %c0_i32_1 = arith.constant 0 : i32
    return %c0_i32, %c0_i32_0 : i32, i32
  }
  func.func @transform_18(%arg0: i32, %arg1: i32) -> (i32, i32) {
    %c0_i32 = arith.constant 0 : i32
    %c0_i32_0 = arith.constant 0 : i32
    %c0_i32_1 = arith.constant 0 : i32
    return %c0_i32, %c0_i32_0 : i32, i32
  }
  func.func @transform_19(%arg0: i32, %arg1: i32) -> (i32, i32) {
    %c0_i32 = arith.constant 0 : i32
    %c0_i32_0 = arith.constant 0 : i32
    %c0_i32_1 = arith.constant 0 : i32
    return %c0_i32, %c0_i32_0 : i32, i32
  }
  func.func @transform_20(%arg0: i32, %arg1: i32) -> (i32, i32) {
    %c0_i32 = arith.constant 0 : i32
    %c0_i32_0 = arith.constant 0 : i32
    %c0_i32_1 = arith.constant 0 : i32
    return %c0_i32, %c0_i32_0 : i32, i32
  }
  func.func @transform_21(%arg0: i32, %arg1: i32) -> (i32, i32, i32) {
    %c0_i32 = arith.constant 0 : i32
    %c0_i32_0 = arith.constant 0 : i32
    %c0_i32_1 = arith.constant 0 : i32
    return %arg0, %c0_i32, %c0_i32_0 : i32, i32, i32
  }
  func.func @transform_22(%arg0: i32, %arg1: i32) -> (i32, i32, i32) {
    %c0_i32 = arith.constant 0 : i32
    %c0_i32_0 = arith.constant 0 : i32
    %c0_i32_1 = arith.constant 0 : i32
    return %arg0, %c0_i32, %c0_i32_0 : i32, i32, i32
  }
}

</mosaic_0001>

<bundles_post_ra>
// kernel: decoder_forward.1
= control target key start
LH: loop header
LB: loop body
LE: loop exit
PB: predicated region body
PF: predicated region fallthrough
CT: control target
= control target key end

     0   :  { %s6379_s28 = smov 0   ;;  %s6381_s29 = smov 0   ;;  %s7048_s0 = inlined_call_operand.vmem [shape: f32[2,8,32], index: 0, kind: input, shape index: {}]   ;;  %s7049_s1 = inlined_call_operand.vmem [shape: f32[2,12,32], index: 1, kind: input, shape index: {}]   ;;  %s7050_s2 = inlined_call_operand.vmem [shape: f32[2,8,128], index: 2, kind: input, shape index: {}]   ;;  %s7051_s3 = inlined_call_operand.vmem [shape: f32[8,8], index: 3, kind: input, shape index: {}]   ;;  %s7052_s4 = inlined_call_operand.vmem [shape: bf16[2,32,96], index: 4, kind: input, shape index: {}]   ;;  %s7053_s5 = inlined_call_operand.vmem [shape: f32[2,1,96], index: 5, kind: input, shape index: {}]   ;;  %s7054_s6 = inlined_call_operand.vmem [shape: bf16[2,32,32], index: 6, kind: input, shape index: {}]   ;;  %s7055_s7 = inlined_call_operand.vmem [shape: f32[2,1,32], index: 7, kind: input, shape index: {}]   ;;  %s7056_s8 = inlined_call_operand.vmem [shape: bf16[2,32,32], index: 8, kind: input, shape index: {}]   ;;  %s7057_s9 = inlined_call_operand.vmem [shape: f32[2,1,32], index: 9, kind: input, shape index: {}]   ;;  %s7058_s10 = inlined_call_operand.vmem [shape: bf16[2,32,64], index: 10, kind: input, shape index: {}]   ;;  %s7059_s11 = inlined_call_operand.vmem [shape: f32[2,1,64], index: 11, kind: input, shape index: {}]   ;;  %s7060_s12 = inlined_call_operand.vmem [shape: bf16[2,32,32], index: 12, kind: input, shape index: {}]   ;;  %s7061_s13 = inlined_call_operand.vmem [shape: f32[2,1,32], index: 13, kind: input, shape index: {}]   ;;  %s7062_s14 = inlined_call_operand.vmem [shape: bf16[2,32,32], index: 14, kind: input, shape index: {}]   ;;  %s7063_s15 = inlined_call_operand.vmem [shape: bf16[2,32,32], index: 15, kind: input, shape index: {}]   ;;  %s7064_s16 = inlined_call_operand.vmem [shape: bf16[2,96,128], index: 16, kind: input, shape index: {}]   ;;  %s7065_s17 = inlined_call_operand.vmem [shape: f32[1,32], index: 17, kind: input, shape index: {}]   ;;  %s7066_s18 = inlined_call_operand.vmem [shape: f32[1,32], index: 18, kind: input, shape index: {}]   ;;  %s7067_s19 = inlined_call_operand.vmem [shape: bf16[32,128], index: 19, kind: input, shape index: {}]   ;;  %s7068_s20 = inlined_call_operand.vmem [shape: f32[1,128], index: 20, kind: input, shape index: {}]   ;;  %s7069_s21 = inlined_call_operand.vmem [shape: f32[2,8,128], index: 21, kind: output, shape index: {0}]   ;;  %s7070_s22 = inlined_call_operand.vmem [shape: f32[2,8,128], index: 22, kind: output, shape index: {1}]  }
   0x1   :  { %7084 = sst [smem:[#allocation7_spill]] %s7048_s0 }
   0x2   :  { %7085 = sst [smem:[#allocation8_spill]] %s7049_s1 }
   0x3   :  { %7086 = sst [smem:[#allocation9_spill]] %s7050_s2 }
   0x4   :  { %7087 = sst [smem:[#allocation10_spill]] %s7051_s3  ;;  %s6377_s3 = smov 0  }
   0x5   :  { %7088 = sst [smem:[#allocation11_spill]] %s7052_s4 }
   0x6   :  { %7089 = sst [smem:[#allocation12_spill]] %s7053_s5 }
   0x7   :  { %7090 = sst [smem:[#allocation13_spill]] %s7054_s6 }
   0x8   :  { %7091 = sst [smem:[#allocation14_spill]] %s7056_s8 }
   0x9   :  { %7092 = sst [smem:[#allocation15_spill]] %s7065_s17 }
   0xa   :  { %7093 = sst [smem:[#allocation16_spill]] %s7066_s18 }
   0xb   :  { %7094 = sst [smem:[#allocation17_spill]] %s7067_s19 }
   0xc   :  { %7095 = sst [smem:[#allocation18_spill]] %s7068_s20 }
   0xd   :  { %7096 = sst [smem:[#allocation19_spill]] %s7069_s21 }
   0xe   :  { %7097 = sst [smem:[#allocation20_spill]] %s7070_s22 }
   0xf LB: > { %7098 = sst [smem:[#allocation4_spill]] %s6236_s28  ;;  %s42_s30 = sadd.s32 1, %s6236_s28  ;;  %s6240_s29 = sphi %s6381_s29, %s33_s29   ;;  %s6236_s28 = sphi %s6379_s28, %s7131_s28   ;;  %s6232_s3 = sphi %s6377_s3, %s7130_s3  }
  0x10   : > { %7099 = sst [smem:[#allocation5_spill]] %s6240_s29  ;;  %p5328_p0 = scmp.ge.s32.totalorder %s6240_s29, 1 }
  0x11   : > { %p43_p1 = scmp.ge.s32.totalorder %s42_s30, 2  ;;  %p771_p2 = scmp.lt.s32.totalorder %s6240_s29, 3 }
  0x13   : > { %s7133_s30 = smov (%p43_p1, %s42_s30), 0  ;;  %p772_p3 = pnand %p5328_p0, %p771_p2 }
  0x14   : > { %7100 = sst [smem:[#allocation6_spill]] %s7133_s30  ;;  %p923_p4 = scmp.lt.s32.totalorder (!%p772_p3), %s6232_s3, 1 }
  0x15   : > { %775 = sbr.rel (%p772_p3) target bundleno = 7789 (0x1e6d), region = 104  ;;  %s7102_s26 = sld [smem:[#allocation11_spill]] (!%p772_p3) }
  0x16   : > { %s7103_s28 = sld [smem:[#allocation13_spill]] (!%p772_p3)  ;;  %s7104_s8 = sld [smem:[#allocation14_spill]] (!%p772_p3) }
  0x17   : > { %p5344_p5 = scmp.ne.s32.totalorder (!%p772_p3), %s6232_s3, 0 }
  0x1c   : > { %s6399_s4 = scalar_select %p923_p4, %s6232_s3, 1 }
  0x1d   : > { %s7105_s18 = sld [smem:[#allocation7_spill]] (!%p5344_p5)  ;;  %vm997_vm0 = vcmask (!%p5344_p5), 261120   ;;  %s7106_s25 = sld [smem:[#allocation9_spill]] (!%p5344_p5) }
  0x1e   : > { %s5466_s0 = sshll.u32 %s6399_s4, 4  ;;  %994 = sbr.rel (%p5344_p5) target bundleno = 38 (0x26), region = 108 }
  0x1f   : > { %s927_s2 = scalar_lea.vmem %s7102_s26, %s5466_s0  ;;  %s6412_s29 = scalar_lea.vmem %s7103_s28, %s5466_s0 }
  0x20   : > { %s6421_s19 = scalar_lea.vmem %s7104_s8, %s5466_s0  ;;  %s6430_s26 = scalar_lea.vmem %s7058_s10, %s5466_s0 }
  0x21   : > { %s6439_s22 = scalar_lea.vmem %s7060_s12, %s5466_s0  ;;  %s6448_s5 = scalar_lea.vmem %s7062_s14, %s5466_s0 }
  0x22   : > { %s6453_s8 = scalar_lea.vmem %s7063_s15, %s5466_s0  ;;  %s5983_s28 = smul.u32 48, %s6399_s4 }
  0x23   : > { %v995_v0 = vld [vmem:[%s7105_s18] sm:$0xff] (!%p5344_p5)  ;;  %v996_v1 = vld [vmem:[%s7105_s18 + $0x8] sm:$0xff] (!%p5344_p5) }
  0x24   : > { %s6459_s20 = scalar_lea.vmem %s7064_s16, %s5983_s28  ;;  %v1000_v2 = vld [vmem:[%s7106_s25] sm:$0xff] (!%p5344_p5)  ;;  %998 = vst.msk [vmem:[#allocation2] sm:$0xff] (!%p5344_p5), %vm997_vm0, %v995_v0  ;;  %999 = vst.msk [vmem:[#allocation2 + $0x8] sm:$0xff] (!%p5344_p5), %vm997_vm0, %v996_v1  ;;  %v1001_v3 = vld [vmem:[%s7106_s25 + $0x8] sm:$0xff] (!%p5344_p5) }
  0x25   : > { %1002 = vst [vmem:[#allocation3] sm:$0xff] %v1000_v2  ;;  %1003 = vst [vmem:[#allocation3 + $0x8] sm:$0xff] %v1001_v3 }
  0x26 PF: > { %v6128_v4 = vld [vmem:[%s927_s2] sm:$0xff]   ;;  %v6242_v5 = vmov 0.0   ;;  %v6129_v6 = vld [vmem:[%s927_s2 + $0x8] sm:$0xff]   ;;  %vm6243_vm1 = vmmov 0   ;;  %vm1031_vm2 = vcmask 261120   ;;  %s7107_s21 = sld [smem:[#allocation12_spill]] }
  0x27   : > { %5601 = vmatprep.subr.bf16.mxu0 %v6242_v5  ;;  %5609 = vmatprep.subr.mxu1 %v6242_v5  ;;  %s6244_s23 = smov 64   ;;  %s6245_s1 = smov 96   ;;  %vm1079_vm3 = vcmask 64512   ;;  %vm1749_vm4 = vcmask 130048   ;;  %vm1751_vm5 = vcmask 195584   ;;  %vm2907_vm7 = vcmask 97280  }
  0x28   : > { %5602 = vmatpush3.bf16.msra.mxu0 %v6128_v4  ;;  %5605 = vmatprep.mubr.msk.bf16.mxu0 %vm6243_vm1, %v6242_v5  ;;  %s6246_s0 = smov 88   ;;  %s6247_s6 = smov 120   ;;  %vm6718_vm6 = vmpackc.low %vm1079_vm3, %vm1079_vm3  ;;  %vm2927_vm8 = vcmask 1043456   ;;  %vm6259_vm9 = vmmov 1  }
  0x29   : > { %5603 = vmatprep.subr.bf16.mxu0 %v6242_v5  ;;  %5611 = vmatprep.mubr.msk.f32.mxu1 %vm6243_vm1, %v6242_v5  ;;  %s6248_s27 = smov 80   ;;  %s6249_s28 = smov 112   ;;  %vm6795_vm10 = vmpackc.low %vm2927_vm8, %vm6259_vm9 }
  0x2a   : > { %s6250_s2 = smov 104   ;;  %s7082_s30 = smov 72  }
  0x2b   : > { %s6254_s24 = smov 56   ;;  %p5453_p6 = scmp.ne.s32.totalorder %s6232_s3, 1 }
  0x2c   : > { %v6478_v7 = vld [vmem:[#allocation2] sm:$0xff]  ;;  %v6480_v8 = vld [vmem:[#allocation2 + $0x8] sm:$0xff]  ;;  %5604 = vmatpush3.bf16.msra.mxu0 %v6129_v6  ;;  %s7108_s17 = scalar_lea.vmem %s7107_s21, %s6399_s4  ;;  %s6252_s21 = smov 48   ;;  %vm6261_vm11 = vmmov (!%p5453_p6), 0  }
  0x2d   : > { %v1011_v9 = vpack.c.bf16 %v6480_v8, %v6478_v7  ;;  %5624 = vmatprep.subr.mxu0 %v6242_v5  ;;  %v5345_v10 = vld [vmem:[%s7108_s17] ss:$0 sm:$0xff]  ;;  %s6253_s17 = smov 40  }
  0x2f   : > { %5606 = vmatmul.mubr.msk.bf16.vlgmr.msra.gmra.mrb[0].mxu0 %vm1031_vm2, %v1011_v9 }
  0x30   : > { %5626 = vmatprep.mubr.msk.f32.mxu0 %vm6243_vm1, %v6242_v5 }
 0x102   : > { %v1069_v11 = vpop.f32.mrb[0].mxu0 }
 0x103   : > { %v6496_v12 = vadd.f32 %v5345_v10, %v1069_v11  ;;  %v5607_v13 = vpop.f32.mrb[1].mxu0 }
 0x104   : > { %v1072_v14 = vpop.f32.mrb[2].mxu0 }
 0x105   : > { %v6498_v15 = vadd.f32 %v5345_v10, %v1072_v14  ;;  %1165 = vrot.lane.b32.xlu1 %v6496_v12, %s6244_s23  ;;  %1077 = vrot.lane.b32.xlu0 %v6496_v12, %s6245_s1  ;;  %v5608_v16 = vpop.f32.mrb[3].mxu0 }
 0x109   : > { %1243 = vrot.lane.b32.xlu1 %v6496_v12, %s6246_s0 }
 0x10d   : > { %1241 = vrot.lane.b32.xlu1 %v6496_v12, %s6247_s6 }
 0x111   : > { %1408 = vrot.lane.b32.xlu1 %v6496_v12, %s6248_s27 }
 0x115   : > { %1406 = vrot.lane.b32.xlu1 %v6496_v12, %s6249_s28 }
 0x119   : > { %1571 = vrot.lane.b32.xlu1 %v6496_v12, %s6250_s2 }
 0x177   : > { %v1078_v17 = vpop.permute.xlu0 %1077  ;;  %v1166_v18 = vpop.permute.xlu1 %1165 }
 0x178   : > { %5610 = vmatpush3.xpose.msk.msra.mxu1 %vm1079_vm3, %v1078_v17 }
 0x179   : > { %5614 = vmatprep.subr.mxu1 %v6242_v5 }
 0x17b   : > { %5612 = vmatmul.mubr.msk.f32.vlgmr.msra.gmra.mrb[0].mxu1 %vm1079_vm3, %v6496_v12  ;;  %v1244_v27 = vpop.permute.xlu1 %1243 }
 0x17c   : > { %5615 = vmatpush3.msra.mxu1 %v1166_v18  ;;  %5616 = vmatprep.mubr.msk.f32.mxu1 %vm6243_vm1, %v6242_v5 }
 0x17d   : > { %5619 = vmatprep.subr.mxu1 %v6242_v5 }
 0x17f   : > { %v1242_v28 = vpop.permute.xlu1 %1241 }
 0x183   : > { %v1409_v29 = vpop.permute.xlu1 %1408 }
 0x187   : > { %v1407_v30 = vpop.permute.xlu1 %1406 }
 0x18b   : > { %v1572_v31 = vpop.permute.xlu1 %1571 }
 0x24e   : > { %v1150_v19 = vpop.f32.mrb[0].mxu1 }
 0x24f   : > { %v5613_v20 = vpop.f32.mrb[1].mxu1  ;;  %v1154_v21 = vsel %vm1079_vm3, %v1150_v19, -inf }
 0x250   : > { %1155 = vmax.xlane.f32.xlu0 %v1154_v21 }
 0x266   : > { %1573 = vrot.lane.b32.xlu0 %v6496_v12, %s7082_s30 }
 0x26a   : > { %2082 = vrot.lane.b32.xlu0 %v6498_v15, %s6249_s28 }
 0x26e   : > { %2247 = vrot.lane.b32.xlu0 %v6498_v15, %s6250_s2 }
 0x2dd   : > { %v1156_v22 = vpop.xlane.xlu0 %1155 }
 0x2de   : > { %v1157_v23 = vsub.f32 %v1150_v19, %v1156_v22 }
 0x2e0   : > { %v1158_v24 = vmul.f32 1.442695, %v1157_v23 }
 0x2e1   : > { %v1574_v37 = vpop.permute.xlu0 %1573 }
 0x2e2   : > { %6148 = vpow2.f32 %v1158_v24 }
 0x2e5   : > { %v2083_v40 = vpop.permute.xlu0 %2082 }
 0x2e9   : > { %v2248_v42 = vpop.permute.xlu0 %2247 }
 0x2ec   : > { %v6149_v25 = vpop.eup %6148 }
 0x2ed   : > { %v1160_v26 = vsel %vm1079_vm3, %v6149_v25, 0.0 }
 0x2ee   : > { %1161 = vadd.xlane.f32.xlu1 %v1160_v26 }
 0x2ff   : > { %1754 = vrot.lane.b32.xlu1 %v6498_v15, %s6245_s1 }
 0x303   : > { %1919 = vrot.lane.b32.xlu1 %v6498_v15, %s6246_s0 }
 0x307   : > { %1917 = vrot.lane.b32.xlu1 %v6498_v15, %s6247_s6 }
 0x30b   : > { %2084 = vrot.lane.b32.xlu1 %v6498_v15, %s6248_s27 }
 0x30f   : > { %2249 = vrot.lane.b32.xlu1 %v6498_v15, %s7082_s30  ;;  %s7110_s30 = sld [smem:[#allocation10_spill]] }
 0x37b   : > { %v1162_v32 = vpop.xlane.xlu1 %1161 }
 0x37c   : > { %6150 = vrcp.f32 %v1162_v32 }
 0x37f   : > { %v1755_v35 = vpop.permute.xlu1 %1754 }
 0x383   : > { %v1920_v36 = vpop.permute.xlu1 %1919 }
 0x386   : > { %v6151_v33 = vpop.eup %6150 }
 0x387   : > { %v1164_v34 = vmul.f32 %v6151_v33, %v6149_v25  ;;  %v1918_v38 = vpop.permute.xlu1 %1917 }
 0x389   : > { %5617 = vmatmul.mubr.msk.f32.vlgmr.msra.gmra.mrb[2].mxu1 %vm1079_vm3, %v1164_v34 }
 0x38a   : > { %5620 = vmatpush3.xpose.msk.msra.mxu1 %vm1079_vm3, %v1244_v27  ;;  %5621 = vmatprep.mubr.msk.f32.mxu1 %vm6243_vm1, %v6242_v5 }
 0x38b   : > { %5629 = vmatprep.subr.mxu1 %v6242_v5  ;;  %v2085_v39 = vpop.permute.xlu1 %2084 }
 0x38d   : > { %5622 = vmatmul.mubr.msk.f32.vlgmr.msra.gmra.mrb[4].mxu1 %vm1079_vm3, %v1242_v28 }
 0x38e   : > { %5630 = vmatpush3.xpose.msk.msra.mxu1 %vm1079_vm3, %v1409_v29  ;;  %5631 = vmatprep.mubr.msk.f32.mxu1 %vm6243_vm1, %v6242_v5 }
 0x38f   : > { %5639 = vmatprep.subr.mxu1 %v6242_v5  ;;  %v2250_v41 = vpop.permute.xlu1 %2249 }
 0x391   : > { %5632 = vmatmul.mubr.msk.f32.vlgmr.msra.gmra.mrb[6].mxu1 %vm1079_vm3, %v1407_v30 }
 0x392   : > { %5640 = vmatpush3.xpose.msk.msra.mxu1 %vm1079_vm3, %v1574_v37  ;;  %5641 = vmatprep.mubr.msk.f32.mxu1 %vm6243_vm1, %v6242_v5 }
 0x393   : > { %5649 = vmatprep.subr.mxu1 %v6242_v5 }
 0x395   : > { %5642 = vmatmul.mubr.msk.f32.vlgmr.msra.gmra.mrb[8].mxu1 %vm1079_vm3, %v1572_v31 }
 0x396   : > { %5650 = vmatpush3.xpose.msk.msra.mxu1 %vm1079_vm3, %v1755_v35  ;;  %5651 = vmatprep.mubr.msk.f32.mxu1 %vm6243_vm1, %v6242_v5 }
 0x397   : > { %5659 = vmatprep.subr.mxu1 %v6242_v5 }
 0x399   : > { %5652 = vmatmul.mubr.msk.f32.vlgmr.msra.gmra.mrb[10].mxu1 %vm1079_vm3, %v6498_v15 }
 0x39a   : > { %5660 = vmatpush3.xpose.msk.msra.mxu1 %vm1079_vm3, %v1920_v36  ;;  %5661 = vmatprep.mubr.msk.f32.mxu1 %vm6243_vm1, %v6242_v5 }
 0x39b   : > { %5669 = vmatprep.subr.mxu1 %v6242_v5 }
 0x39d   : > { %5662 = vmatmul.mubr.msk.f32.vlgmr.msra.gmra.mrb[12].mxu1 %vm1079_vm3, %v1918_v38 }
 0x39e   : > { %5670 = vmatpush3.xpose.msk.msra.mxu1 %vm1079_vm3, %v2085_v39  ;;  %5671 = vmatprep.mubr.msk.f32.mxu1 %vm6243_vm1, %v6242_v5 }
 0x39f   : > { %5679 = vmatprep.subr.mxu1 %v6242_v5 }
 0x3a1   : > { %5672 = vmatmul.mubr.msk.f32.vlgmr.msra.gmra.mrb[14].mxu1 %vm1079_vm3, %v2083_v40 }
 0x3a2   : > { %5680 = vmatpush3.xpose.msk.msra.mxu1 %vm1079_vm3, %v2250_v41  ;;  %5681 = vmatprep.mubr.msk.f32.mxu1 %vm6243_vm1, %v6242_v5 }
 0x3a3   : > { %5689 = vmatprep.subr.bf16.mxu1 %v6242_v5 }
 0x3a5   : > { %5682 = vmatmul.mubr.msk.f32.vlgmr.msra.gmra.mrb[16].mxu1 %vm1079_vm3, %v2248_v42 }
 0x3a6   : > { %5693 = vmatprep.mubr.msk.bf16.mxu1 %vm6243_vm1, %v6242_v5 }
 0x45c   : > { %v6578_v43 = vpop.f32.mrb[2].mxu1 }
 0x45d   : > { %v5618_v44 = vpop.f32.mrb[3].mxu1 }
 0x460   : > { %v1315_v45 = vpop.f32.mrb[4].mxu1 }
 0x461   : > { %v5623_v46 = vpop.f32.mrb[5].mxu1  ;;  %v1319_v47 = vsel %vm1079_vm3, %v1315_v45, -inf }
 0x462   : > { %1320 = vmax.xlane.f32.xlu1 %v1319_v47 }
 0x464   : > { %v1480_v48 = vpop.f32.mrb[6].mxu1 }
 0x465   : > { %v5633_v49 = vpop.f32.mrb[7].mxu1  ;;  %v1484_v50 = vsel %vm1079_vm3, %v1480_v48, -inf }
 0x466   : > { %1485 = vmax.xlane.f32.xlu0 %v1484_v50 }
 0x468   : > { %v1645_v51 = vpop.f32.mrb[8].mxu1 }
 0x469   : > { %v5643_v52 = vpop.f32.mrb[9].mxu1  ;;  %v1649_v53 = vsel %vm1079_vm3, %v1645_v51, -inf }
 0x46a   : > { %1650 = vmax.xlane.f32.xlu0 %v1649_v53 }
 0x46c   : > { %v1826_v54 = vpop.f32.mrb[10].mxu1 }
 0x46d   : > { %v5653_v55 = vpop.f32.mrb[11].mxu1  ;;  %v1830_v56 = vsel %vm1079_vm3, %v1826_v54, -inf }
 0x46e   : > { %1831 = vmax.xlane.f32.xlu1 %v1830_v56 }
 0x470   : > { %v1991_v57 = vpop.f32.mrb[12].mxu1 }
 0x471   : > { %v5663_v58 = vpop.f32.mrb[13].mxu1  ;;  %v1995_v59 = vsel %vm1079_vm3, %v1991_v57, -inf }
 0x472   : > { %1996 = vmax.xlane.f32.xlu0 %v1995_v59 }
 0x474   : > { %v2156_v60 = vpop.f32.mrb[14].mxu1 }
 0x475   : > { %v5673_v61 = vpop.f32.mrb[15].mxu1  ;;  %v2160_v62 = vsel %vm1079_vm3, %v2156_v60, -inf }
 0x476   : > { %2161 = vmax.xlane.f32.xlu1 %v2160_v62 }
 0x478   : > { %v2321_v63 = vpop.f32.mrb[16].mxu1 }
 0x479   : > { %v5683_v0 = vpop.f32.mrb[17].mxu1  ;;  %v2325_v1 = vsel %vm1079_vm3, %v2321_v63, -inf }
 0x47a   : > { %2326 = vmax.xlane.f32.xlu0 %v2325_v1 }
 0x487   : > { %1495 = vrot.lane.b32.xlu1 %v6496_v12, %s6252_s21 }
 0x48b   : > { %1660 = vrot.lane.b32.xlu1 %v6496_v12, %s6253_s17 }
 0x490   : > { %1330 = vrot.lane.b32.xlu0 %v6496_v12, %s6254_s24 }
 0x4ef   : > { %v1321_v2 = vpop.xlane.xlu1 %1320 }
 0x4f0   : > { %v1322_v3 = vsub.f32 %v1315_v45, %v1321_v2 }
 0x4f2   : > { %v1323_v4 = vmul.f32 1.442695, %v1322_v3 }
 0x4f3   : > { %v1486_v6 = vpop.xlane.xlu0 %1485 }
 0x4f4   : > { %6152 = vpow2.f32 %v1323_v4  ;;  %v1487_v9 = vsub.f32 %v1480_v48, %v1486_v6 }
 0x4f6   : > { %v1488_v10 = vmul.f32 1.442695, %v1487_v9 }
 0x4f7   : > { %v1651_v13 = vpop.xlane.xlu0 %1650 }
 0x4f8   : > { %6154 = vpow2.f32 %v1488_v10  ;;  %v1652_v20 = vsub.f32 %v1645_v51, %v1651_v13 }
 0x4fa   : > { %v1653_v23 = vmul.f32 1.442695, %v1652_v20 }
 0x4fb   : > { %v1832_v21 = vpop.xlane.xlu1 %1831 }
 0x4fc   : > { %v1833_v22 = vsub.f32 %v1826_v54, %v1832_v21  ;;  %6156 = vpow2.f32 %v1653_v23 }
 0x4fe   : > { %v6153_v11 = vpop.eup %6152  ;;  %v1834_v26 = vmul.f32 1.442695, %v1833_v22 }
 0x4ff   : > { %v1325_v14 = vsel %vm1079_vm3, %v6153_v11, 0.0  ;;  %v1997_v17 = vpop.xlane.xlu0 %1996 }
 0x500   : > { %1326 = vadd.xlane.f32.xlu1 %v1325_v14  ;;  %v1998_v24 = vsub.f32 %v1991_v57, %v1997_v17  ;;  %6158 = vpow2.f32 %v1834_v26 }
 0x502   : > { %v6155_v16 = vpop.eup %6154  ;;  %v1999_v28 = vmul.f32 1.442695, %v1998_v24 }
 0x503   : > { %v1490_v18 = vsel %vm1079_vm3, %v6155_v16, 0.0  ;;  %v2162_v25 = vpop.xlane.xlu1 %2161 }
 0x504   : > { %1491 = vadd.xlane.f32.xlu0 %v1490_v18  ;;  %v2163_v27 = vsub.f32 %v2156_v60, %v2162_v25  ;;  %6160 = vpow2.f32 %v1999_v28 }
 0x506   : > { %v2164_v30 = vmul.f32 1.442695, %v2163_v27  ;;  %v6157_v32 = vpop.eup %6156 }
 0x507   : > { %v2327_v19 = vpop.xlane.xlu0 %2326  ;;  %v1655_v34 = vsel %vm1079_vm3, %v6157_v32, 0.0  ;;  %v1496_v42 = vpop.permute.xlu1 %1495 }
 0x508   : > { %v2328_v29 = vsub.f32 %v2321_v63, %v2327_v19  ;;  %6162 = vpow2.f32 %v2164_v30  ;;  %v6131_v19 = vld [vmem:[%s6412_s29 + $0x8] sm:$0xff]  }
 0x50a   : > { %v2329_v31 = vmul.f32 1.442695, %v2328_v29  ;;  %v6159_v33 = vpop.eup %6158 }
 0x50b   : > { %v1331_v12 = vpop.permute.xlu0 %1330  ;;  %v1836_v38 = vsel %vm1079_vm3, %v6159_v33, 0.0  ;;  %v1661_v44 = vpop.permute.xlu1 %1660 }
 0x50c   : > { %5625 = vmatpush3.msra.mxu0 %v1331_v12  ;;  %6164 = vpow2.f32 %v2329_v31 }
 0x50d   : > { %5634 = vmatprep.subr.mxu0 %v6242_v5 }
 0x50e   : > { %v6161_v35 = vpop.eup %6160 }
 0x50f   : > { %v2001_v37 = vsel %vm1079_vm3, %v6161_v35, 0.0 }
 0x511   : > { %2006 = vrot.lane.b32.xlu1 %v6498_v15, %s6254_s24  ;;  %s7080_s24 = smov 8  }
 0x512   : > { %v6163_v36 = vpop.eup %6162 }
 0x513   : > { %v2166_v41 = vsel %vm1079_vm3, %v6163_v36, 0.0 }
 0x516   : > { %v6601_v39 = vpop.eup %6164 }
 0x517   : > { %v2331_v40 = vsel %vm1079_vm3, %v6601_v39, 0.0 }
 0x51a   : > { %1841 = vrot.lane.b32.xlu0 %v6498_v15, %s6244_s23  ;;  %s7081_s23 = smov 16  }
 0x535   : > { %1656 = vadd.xlane.f32.xlu1 %v1655_v34 }
 0x539   : > { %2002 = vadd.xlane.f32.xlu1 %v2001_v37  ;;  %1837 = vadd.xlane.f32.xlu0 %v1836_v38 }
 0x53d   : > { %2332 = vadd.xlane.f32.xlu1 %v2331_v40  ;;  %2167 = vadd.xlane.f32.xlu0 %v2166_v41 }
 0x54e   : > { %2336 = vrot.lane.b32.xlu1 %v6498_v15, %s6253_s17  ;;  %s7112_s17 = scalar_lea.vmem %s7059_s11, %s6399_s4 }
 0x553   : > { %2171 = vrot.lane.b32.xlu0 %v6498_v15, %s6252_s21  ;;  %s7079_s21 = smov 24  }
 0x58d   : > { %v1327_v45 = vpop.xlane.xlu1 %1326 }
 0x58e   : > { %6166 = vrcp.f32 %v1327_v45 }
 0x591   : > { %v1492_v46 = vpop.xlane.xlu0 %1491  ;;  %v2007_v15 = vpop.permute.xlu1 %2006 }
 0x592   : > { %6168 = vrcp.f32 %v1492_v46 }
 0x595   : > { %v1842_v51 = vpop.permute.xlu0 %1841 }
 0x598   : > { %v6167_v47 = vpop.eup %6166 }
 0x599   : > { %v1329_v48 = vmul.f32 %v6167_v47, %v6153_v11 }
 0x59b   : > { %5627 = vmatmul.mubr.msk.f32.vlgmr.msra.gmra.mrb[4].mxu0 %vm1079_vm3, %v1329_v48 }
 0x59c   : > { %v6169_v49 = vpop.eup %6168  ;;  %5635 = vmatpush3.msra.mxu0 %v1496_v42  ;;  %5636 = vmatprep.mubr.msk.f32.mxu0 %vm6243_vm1, %v6242_v5 }
 0x59d   : > { %v1494_v50 = vmul.f32 %v6169_v49, %v6155_v16  ;;  %5644 = vmatprep.subr.mxu0 %v6242_v5  ;;  %v6130_v16 = vld [vmem:[%s6412_s29] sm:$0xff]  }
 0x59e   : > { %5690 = vmatpush3.bf16.msra.mxu1 %v6130_v16 }
 0x59f   : > { %5637 = vmatmul.mubr.msk.f32.vlgmr.msra.gmra.mrb[6].mxu0 %vm1079_vm3, %v1494_v50  ;;  %5691 = vmatprep.subr.bf16.mxu1 %v6242_v5 }
 0x5a0   : > { %5645 = vmatpush3.msra.mxu0 %v1661_v44  ;;  %5646 = vmatprep.mubr.msk.f32.mxu0 %vm6243_vm1, %v6242_v5 }
 0x5a1   : > { %5654 = vmatprep.subr.mxu0 %v6242_v5 }
 0x5a2   : > { %5692 = vmatpush3.bf16.msra.mxu1 %v6131_v19 }
 0x5a3   : > { %5707 = vmatprep.subr.bf16.mxu1 %v6242_v5 }
 0x5c2   : > { %v1657_v52 = vpop.xlane.xlu1 %1656 }
 0x5c3   : > { %6170 = vrcp.f32 %v1657_v52 }
 0x5c6   : > { %v1838_v53 = vpop.xlane.xlu0 %1837  ;;  %v2003_v54 = vpop.xlane.xlu1 %2002 }
 0x5c7   : > { %6172 = vrcp.f32 %v1838_v53 }
 0x5c8   : > { %6174 = vrcp.f32 %v2003_v54 }
 0x5ca   : > { %v2168_v55 = vpop.xlane.xlu0 %2167  ;;  %v2333_v58 = vpop.xlane.xlu1 %2332 }
 0x5cb   : > { %6176 = vrcp.f32 %v2168_v55 }
 0x5cc   : > { %6178 = vrcp.f32 %v2333_v58  ;;  %v6258_v58 = vmov 0.0|0.0  }
 0x5cd   : > { %v6171_v56 = vpop.eup %6170 }
 0x5ce   : > { %v1659_v57 = vmul.f32 %v6171_v56, %v6157_v32  ;;  %v2172_v0 = vpop.permute.xlu0 %2171  ;;  %v2337_v3 = vpop.permute.xlu1 %2336  ;;  %v6134_v56 = vld [vmem:[%s6421_s19] sm:$0xff]  }
 0x5d0   : > { %5647 = vmatmul.mubr.msk.f32.vlgmr.msra.gmra.mrb[8].mxu0 %vm1079_vm3, %v1659_v57  ;;  %v6135_v57 = vld [vmem:[%s6421_s19 + $0x8] sm:$0xff]  }
 0x5d1   : > { %v6173_v59 = vpop.eup %6172  ;;  %5655 = vmatpush3.msra.mxu0 %v1842_v51  ;;  %5656 = vmatprep.mubr.msk.f32.mxu0 %vm6243_vm1, %v6242_v5  ;;  %v6664_v51 = vld [vmem:[%s7110_s30] sm:$0xff]  ;;  %s7118_s30 = smov 72  }
 0x5d2   : > { %v1840_v60 = vmul.f32 %v6173_v59, %v6159_v33  ;;  %5664 = vmatprep.subr.mxu0 %v6242_v5  ;;  %v6175_v61 = vpop.eup %6174 }
 0x5d3   : > { %v2005_v62 = vmul.f32 %v6175_v61, %v6161_v35 }
 0x5d4   : > { %5657 = vmatmul.mubr.msk.f32.vlgmr.msra.gmra.mrb[10].mxu0 %vm1079_vm3, %v1840_v60 }
 0x5d5   : > { %5665 = vmatpush3.msra.mxu0 %v2007_v15  ;;  %5666 = vmatprep.mubr.msk.f32.mxu0 %vm6243_vm1, %v6242_v5  ;;  %v6177_v63 = vpop.eup %6176 }
 0x5d6   : > { %5674 = vmatprep.subr.mxu0 %v6242_v5  ;;  %v2170_v1 = vmul.f32 %v6177_v63, %v6163_v36  ;;  %v6179_v2 = vpop.eup %6178 }
 0x5d7   : > { %v2335_v4 = vmul.f32 %v6179_v2, %v6601_v39  ;;  %v5383_v2 = vld [vmem:[%s7112_s17] ss:$0 sm:$0xff]  ;;  %s7115_s17 = scalar_lea.vmem %s7057_s9, %s6399_s4 }
 0x5d8   : > { %5667 = vmatmul.mubr.msk.f32.vlgmr.msra.gmra.mrb[12].mxu0 %vm1079_vm3, %v2005_v62 }
 0x5d9   : > { %5675 = vmatpush3.msra.mxu0 %v2172_v0  ;;  %5676 = vmatprep.mubr.msk.f32.mxu0 %vm6243_vm1, %v6242_v5 }
 0x5da   : > { %5684 = vmatprep.subr.mxu0 %v6242_v5 }
 0x5dc   : > { %5677 = vmatmul.mubr.msk.f32.vlgmr.msra.gmra.mrb[14].mxu0 %vm1079_vm3, %v2170_v1 }
 0x5dd   : > { %5685 = vmatpush3.msra.mxu0 %v2337_v3  ;;  %5686 = vmatprep.mubr.msk.f32.mxu0 %vm6243_vm1, %v6242_v5 }
 0x5de   : > { %5697 = vmatprep.subr.mxu0 %v6242_v5 }
 0x5e0   : > { %5687 = vmatmul.mubr.msk.f32.vlgmr.msra.gmra.mrb[16].mxu0 %vm1079_vm3, %v2335_v4 }
 0x5e1   : > { %5699 = vmatprep.mubr.msk.f32.mxu0 %vm6243_vm1, %v6242_v5 }
 0x66e   : > { %v1402_v6 = vpop.f32.mrb[4].mxu0 }
 0x66f   : > { %v5628_v9 = vpop.f32.mrb[5].mxu0 }
 0x672   : > { %v1567_v10 = vpop.f32.mrb[6].mxu0 }
 0x673   : > { %v5638_v11 = vpop.f32.mrb[7].mxu0 }
 0x6a3   : > { %v1732_v13 = vpop.f32.mrb[8].mxu0 }
 0x6a4   : > { %v5648_v14 = vpop.f32.mrb[9].mxu0 }
 0x6a7   : > { %v1913_v17 = vpop.f32.mrb[10].mxu0 }
 0x6a8   : > { %v5658_v18 = vpop.f32.mrb[11].mxu0 }
 0x6ab   : > { %v2078_v12 = vpop.f32.mrb[12].mxu0 }
 0x6ac   : > { %v6028_v20 = vpack.i.bf16 %v2078_v12, %v1402_v6  ;;  %v5668_v21 = vpop.f32.mrb[13].mxu0 }
 0x6ae   : > { %6029 = vrot.lane.b32.xlu0 %v6028_v20, %s7080_s24 }
 0x6af   : > { %v2243_v22 = vpop.f32.mrb[14].mxu0 }
 0x6b0   : > { %v6033_v23 = vpack.i.bf16 %v2243_v22, %v1567_v10  ;;  %v5678_v24 = vpop.f32.mrb[15].mxu0 }
 0x6b2   : > { %6034 = vrot.lane.b32.xlu1 %v6033_v23, %s7081_s23  ;;  %s7111_s23 = sld [smem:[#allocation8_spill]]  ;;  %v5379_v23 = vld [vmem:[%s7115_s17] ss:$0 sm:$0xff] }
 0x6b3   : > { %v2408_v25 = vpop.f32.mrb[16].mxu0 }
 0x6b4   : > { %v6038_v26 = vpack.i.bf16 %v2408_v25, %v1732_v13  ;;  %v5688_v27 = vpop.f32.mrb[17].mxu0 }
 0x6b6   : > { %6039 = vrot.lane.b32.xlu0 %v6038_v26, %s7079_s21  ;;  %s7109_s21 = scalar_lea.vmem %s7055_s7, %s6399_s4 }
 0x6b8   : > { %v2710_v53 = vld [vmem:[%s7111_s23] sm:$0xff]  ;;  %v2711_v54 = vld [vmem:[%s7111_s23 + $0x8] sm:$0xf]  ;;  %v5388_v18 = vld [vmem:[%s7111_s23 + $0x18] sm:$0xf] }
 0x6b9   : > { %v2716_v55 = vpack.c.bf16 %v2711_v54, %v2710_v53 }
 0x720   : > { %v6030_v28 = vpop.permute.xlu0 %6029 }
 0x721   : > { %v6032_v30 = vunpack.i.h.bf16 %v6030_v28  ;;  %v6031_v31 = vunpack.i.l.bf16 %v6030_v28 }
 0x723   : > { %v2424_v35 = vsel %vm1079_vm3, %v1913_v17, %v6032_v30  ;;  %v1748_v36 = vsel %vm1079_vm3, %v6578_v43, %v6031_v31  ;;  %v5373_v43 = vld [vmem:[%s7109_s21] ss:$0 sm:$0xff]  ;;  %v5387_v17 = vld [vmem:[%s7111_s23 + $0x10] sm:$0xff]  ;;  %s7124_s21 = sld [smem:[#allocation15_spill]] (!%p5453_p6) }
 0x724   : > { %v6035_v29 = vpop.permute.xlu1 %6034  ;;  %v2783_v19 = vpack.c.bf16 %v5388_v18, %v5387_v17 }
 0x725   : > { %v6037_v32 = vunpack.i.h.bf16 %v6035_v29  ;;  %v6036_v33 = vunpack.i.l.bf16 %v6035_v29 }
 0x727   : > { %v2425_v39 = vsel %vm1749_vm4, %v2424_v35, %v6037_v32  ;;  %v1750_v40 = vsel %vm1749_vm4, %v1748_v36, %v6036_v33 }
 0x728   : > { %v6040_v34 = vpop.permute.xlu0 %6039 }
 0x729   : > { %v6042_v37 = vunpack.i.h.bf16 %v6040_v34  ;;  %v6041_v38 = vunpack.i.l.bf16 %v6040_v34 }
 0x72b   : > { %v2426_v41 = vsel %vm1751_vm5, %v2425_v39, %v6042_v37  ;;  %v1752_v42 = vsel %vm1751_vm5, %v1750_v40, %v6041_v38 }
 0x72c   : > { %v2431_v44 = vpack.c.bf16 %v2426_v41, %v1752_v42 }
 0x72e   : > { %5694 = vmatmul.mubr.msk.bf16.vlgmr.msra.gmra.mrb[20].mxu1 %vm1031_vm2, %v2431_v44 }
 0x72f   : > { %5711 = vmatprep.mubr.msk.bf16.mxu1 %vm6243_vm1, %v6242_v5  ;;  %5708 = vmatpush3.bf16.msra.mxu1 %v6134_v56 }
 0x730   : > { %5709 = vmatprep.subr.bf16.mxu1 %v6242_v5 }
 0x733   : > { %5710 = vmatpush3.bf16.msra.mxu1 %v6135_v57 }
 0x734   : > { %5723 = vmatprep.subr.bf16.mxu1 %v6242_v5 }
 0x801   : > { %v2488_v45 = vpop.f32.mrb[20].mxu1 }
 0x802   : > { %v2489_v46 = vadd.f32 %v5373_v43, %v2488_v45  ;;  %v5695_v47 = vpop.f32.mrb[21].mxu1 }
 0x803   : > { %v2491_v48 = vpop.f32.mrb[22].mxu1 }
 0x804   : > { %v2495_v49 = vadd.f32 %v2489_v46, %v6478_v7  ;;  %v2492_v50 = vadd.f32 %v5373_v43, %v2491_v48  ;;  %v5696_v15 = vpop.f32.mrb[23].mxu1  ;;  %v6132_v7 = vld [vmem:[%s6430_s26] sm:$0xff]  }
 0x806   : > { %v2496_v52 = vadd.f32 %v2492_v50, %v6480_v8  ;;  %5698 = vmatpush3.msra.mxu0 %v2495_v49  ;;  %v6133_v8 = vld [vmem:[%s6430_s26 + $0x8] sm:$0xff]   ;;  %s7125_s26 = sld [smem:[#allocation16_spill]] (!%p5453_p6) }
 0x807   : > { %5700 = vmatmul.mubr.msk.f32.vlgmr.msra.gmra.mrb[18].mxu0 %vm1079_vm3, %v6664_v51  ;;  %5702 = vmatprep.subr.mxu0 %v6242_v5 }
 0x808   : > { %5703 = vmatpush3.msra.mxu0 %v2496_v52  ;;  %5704 = vmatprep.mubr.msk.f32.mxu0 %vm6243_vm1, %v6242_v5 }
 0x809   : > { %5715 = vmatprep.subr.bf16.mxu0 %v6242_v5 }
 0x80b   : > { %5705 = vmatmul.mubr.msk.f32.vlgmr.msra.gmra.mrb[20].mxu0 %vm1079_vm3, %v6664_v51 }
 0x80c   : > { %5716 = vmatpush3.bf16.msra.mxu0 %v6132_v7  ;;  %5719 = vmatprep.mubr.msk.bf16.mxu0 %vm6243_vm1, %v6242_v5 }
 0x80d   : > { %5717 = vmatprep.subr.bf16.mxu0 %v6242_v5 }
 0x810   : > { %5718 = vmatpush3.bf16.msra.mxu0 %v6133_v8 }
 0x811   : > { %5919 = vmatprep.subr.bf16.mxu0 %v6258_v58 }
 0x813   : > { %5720 = vmatmul.mubr.msk.bf16.vlgmr.msra.gmra.mrb[24].mxu0 %vm1031_vm2, %v2716_v55 }
 0x814   : > { %5735 = vmatprep.mubr.msk.f32.mxu0 %vm6243_vm1, %v6242_v5 }
 0x8da   : > { %v6694_v59 = vpop.f32.mrb[18].mxu0 }
 0x8db   : > { %v5701_v60 = vpop.f32.mrb[19].mxu0  ;;  %v6699_v62 = vsub.f32 %v2495_v49, %v6694_v59 }
 0x8de   : > { %v6696_v61 = vpop.f32.mrb[20].mxu0 }
 0x8df   : > { %v6702_v63 = vsub.f32 %v2496_v52, %v6696_v61  ;;  %v5706_v0 = vpop.f32.mrb[21].mxu0 }
 0x8e1   : > { %v2646_v1 = vpack.c.bf16 %v6702_v63, %v6699_v62 }
 0x8e3   : > { %5712 = vmatmul.mubr.msk.bf16.vlgmr.msra.gmra.mrb[24].mxu1 %vm1031_vm2, %v2646_v1 }
 0x8e4   : > { %5724 = vmatpush3.bf16.msra.mxu1 %v6132_v7  ;;  %5727 = vmatprep.mubr.msk.bf16.mxu1 %vm6243_vm1, %v6242_v5 }
 0x8e5   : > { %5725 = vmatprep.subr.bf16.mxu1 %v6242_v5 }
 0x8e6   : > { %v2773_v3 = vpop.f32.mrb[24].mxu0 }
 0x8e7   : > { %v2774_v4 = vadd.f32 %v5383_v2, %v2773_v3  ;;  %v5721_v6 = vpop.f32.mrb[25].mxu0 }
 0x8e8   : > { %v2776_v9 = vpop.f32.mrb[26].mxu0  ;;  %5726 = vmatpush3.bf16.msra.mxu1 %v6133_v8 }
 0x8e9   : > { %v2777_v10 = vadd.f32 %v5383_v2, %v2776_v9  ;;  %v5722_v11 = vpop.f32.mrb[27].mxu0  ;;  %5927 = vmatprep.subr.bf16.mxu1 %v6258_v58 }
 0x8eb   : > { %v6722_v14 = vpack.i.bf16 %v2777_v10, %v2774_v4  ;;  %v5920_v16 = vpack.c.bf16 %v2777_v10, %v2774_v4  ;;  %5728 = vmatmul.mubr.msk.bf16.vlgmr.msra.gmra.mrb[28].mxu1 %vm1031_vm2, %v2783_v19 }
 0x8ec   : > { %5749 = vmatprep.mubr.msk.f32.mxu1 %vm6243_vm1, %v6242_v5 }
 0x8ed   : > { %6044 = vrot.lane.b32.xlu1 %v6722_v14, %s6247_s6  ;;  %5922 = vmatpush3.bf16.xpose.msk.msra.mxu0 %vm6718_vm6, %v5920_v16 }
 0x8ee   : > { %5923 = vmatprep.subr.bf16.mxu0 %v6258_v58 }
 0x8f1   : > { %6049 = vrot.lane.b32.xlu1 %v6722_v14, %s6249_s28 }
 0x95f   : > { %v6045_v12 = vpop.permute.xlu1 %6044 }
 0x960   : > { %v6047_v20 = vunpack.i.h.bf16 %v6045_v12  ;;  %v6046_v21 = vunpack.i.l.bf16 %v6045_v12 }
 0x962   : > { %v5928_v22 = vpack.c.bf16 %v6047_v20, %v6046_v21  ;;  %v6136_v20 = vld [vmem:[%s6439_s22] sm:$0xff]  }
 0x963   : > { %v6050_v34 = vpop.permute.xlu1 %6049 }
 0x964   : > { %5930 = vmatpush3.bf16.xpose.msk.msra.mxu1 %vm6718_vm6, %v5928_v22  ;;  %v6052_v35 = vunpack.i.h.bf16 %v6050_v34  ;;  %v6051_v36 = vunpack.i.l.bf16 %v6050_v34 }
 0x965   : > { %5935 = vmatprep.subr.bf16.mxu1 %v6258_v58 }
 0x966   : > { %v5936_v37 = vpack.c.bf16 %v6052_v35, %v6051_v36 }
 0x9b6   : > { %v2703_v24 = vpop.f32.mrb[24].mxu1 }
 0x9b7   : > { %v6748_v25 = vadd.f32 %v5379_v23, %v2703_v24  ;;  %v5713_v26 = vpop.f32.mrb[25].mxu1 }
 0x9b8   : > { %v2706_v27 = vpop.f32.mrb[26].mxu1 }
 0x9b9   : > { %v6750_v28 = vadd.f32 %v5379_v23, %v2706_v27  ;;  %3000 = vrot.lane.b32.xlu0 %v6748_v25, %s6247_s6  ;;  %v5714_v29 = vpop.f32.mrb[27].mxu1  ;;  %5736 = vmatmul.mubr.msk.f32.vlgmr.msra.gmra.mrb[22].mxu0 %vm1079_vm3, %v6748_v25 }
 0x9ba   : > { %5742 = vmatprep.mubr.msk.f32.mxu0 %vm6243_vm1, %v6242_v5 }
 0x9bd   : > { %3173 = vrot.lane.b32.xlu0 %v6748_v25, %s6249_s28 }
 0x9be   : > { %v2821_v30 = vpop.f32.mrb[28].mxu1 }
 0x9bf   : > { %v5729_v31 = vpop.f32.mrb[29].mxu1  ;;  %v6769_v40 = vadd.f32 %v5383_v2, %v2821_v30 }
 0x9c0   : > { %v2824_v32 = vpop.f32.mrb[30].mxu1 }
 0x9c1   : > { %v5730_v33 = vpop.f32.mrb[31].mxu1  ;;  %v6771_v41 = vadd.f32 %v5383_v2, %v2824_v32 }
 0x9c3   : > { %v6775_v42 = vpack.i.bf16 %v6771_v41, %v6769_v40  ;;  %v5952_v44 = vpack.c.bf16 %v6771_v41, %v6769_v40 }
 0xa2b   : > { %v3001_v38 = vpop.permute.xlu0 %3000 }
 0xa2c   : > { %5750 = vmatmul.mubr.msk.f32.vlgmr.msra.gmra.mrb[18].mxu1 %vm1079_vm3, %v3001_v38 }
 0xa2d   : > { %5938 = vmatpush3.bf16.xpose.msk.msra.mxu1 %vm6718_vm6, %v5936_v37  ;;  %5763 = vmatprep.mubr.msk.f32.mxu1 %vm6243_vm1, %v6242_v5 }
 0xa2e   : > { %5947 = vmatprep.subr.bf16.mxu1 %v6258_v58 }
 0xa2f   : > { %v3174_v39 = vpop.permute.xlu0 %3173 }
 0xa34   : > { %5764 = vmatmul.mubr.msk.f32.vlgmr.msra.gmra.mrb[32].mxu1 %vm1079_vm3, %v3174_v39 }
 0xa35   : > { %5784 = vmatprep.mubr.msk.f32.mxu1 %vm6243_vm1, %v6242_v5 }
 0xa8c   : > { %v2903_v43 = vpop.f32.mrb[22].mxu0 }
 0xa8d   : > { %v5737_v45 = vpop.f32.mrb[23].mxu0  ;;  %v2908_v46 = vsel %vm2907_vm7, %v2903_v43, -inf }
 0xa8e   : > { %2909 = vmax.xlane.f32.xlu1 %v2908_v46 }
 0xaff   : > { %v3078_v47 = vpop.f32.mrb[18].mxu1 }
 0xb00   : > { %v5751_v48 = vpop.f32.mrb[19].mxu1  ;;  %v3082_v49 = vsel %vm2907_vm7, %v3078_v47, -inf }
 0xb01   : > { %3083 = vmax.xlane.f32.xlu0 %v3082_v49 }
 0xb07   : > { %v3251_v50 = vpop.f32.mrb[32].mxu1 }
 0xb08   : > { %v5765_v15 = vpop.f32.mrb[33].mxu1  ;;  %v3255_v52 = vsel %vm2907_vm7, %v3251_v50, -inf }
 0xb09   : > { %3256 = vmax.xlane.f32.xlu0 %v3255_v52 }
 0xb1b   : > { %v2910_v7 = vpop.xlane.xlu1 %2909 }
 0xb1c   : > { %v2911_v8 = vsub.f32 %v2903_v43, %v2910_v7 }
 0xb1e   : > { %v2912_v53 = vmul.f32 1.442695, %v2911_v8 }
 0xb20   : > { %6180 = vpow2.f32 %v2912_v53 }
 0xb2a   : > { %v6181_v54 = vpop.eup %6180 }
 0xb2b   : > { %v2914_v55 = vsel %vm2907_vm7, %v6181_v54, 0.0 }
 0xb2c   : > { %2915 = vadd.xlane.f32.xlu1 %v2914_v55 }
 0xb3d   : > { %6059 = vrot.lane.b32.xlu1 %v6722_v14, %s6246_s0 }
 0xb41   : > { %6064 = vrot.lane.b32.xlu1 %v6722_v14, %s6248_s27 }
 0xb8e   : > { %v3084_v56 = vpop.xlane.xlu0 %3083 }
 0xb8f   : > { %v3085_v57 = vsub.f32 %v3078_v47, %v3084_v56 }
 0xb91   : > { %v3086_v60 = vmul.f32 1.442695, %v3085_v57 }
 0xb93   : > { %6182 = vpow2.f32 %v3086_v60 }
 0xb96   : > { %v3257_v0 = vpop.xlane.xlu0 %3256 }
 0xb97   : > { %v3258_v1 = vsub.f32 %v3251_v50, %v3257_v0 }
 0xb99   : > { %v3259_v2 = vmul.f32 1.442695, %v3258_v1 }
 0xb9b   : > { %6184 = vpow2.f32 %v3259_v2 }
 0xb9d   : > { %v6183_v3 = vpop.eup %6182 }
 0xb9e   : > { %v3088_v4 = vsel %vm2907_vm7, %v6183_v3, 0.0 }
 0xb9f   : > { %3089 = vadd.xlane.f32.xlu0 %v3088_v4 }
 0xba5   : > { %v6185_v6 = vpop.eup %6184 }
 0xba6   : > { %v3261_v9 = vsel %vm2907_vm7, %v6185_v6, 0.0 }
 0xba7   : > { %3262 = vadd.xlane.f32.xlu1 %v3261_v9 }
 0xbb5   : > { %6054 = vrot.lane.b32.xlu0 %v6722_v14, %s6245_s1 }
 0xbb8   : > { %3346 = vrot.lane.b32.xlu1 %v6748_v25, %s6250_s2 }
 0xbb9   : > { %6069 = vrot.lane.b32.xlu0 %v6722_v14, %s6250_s2  ;;  %v2916_v10 = vpop.xlane.xlu1 %2915 }
 0xbba   : > { %6186 = vrcp.f32 %v2916_v10 }
 0xbbd   : > { %v6060_v11 = vpop.permute.xlu1 %6059 }
 0xbbe   : > { %v6062_v22 = vunpack.i.h.bf16 %v6060_v11  ;;  %v6061_v23 = vunpack.i.l.bf16 %v6060_v11 }
 0xbc0   : > { %v5932_v29 = vpack.c.bf16 %v6062_v22, %v6061_v23 }
 0xbc1   : > { %v6065_v17 = vpop.permute.xlu1 %6064 }
 0xbc2   : > { %v6067_v30 = vunpack.i.h.bf16 %v6065_v17  ;;  %v6066_v31 = vunpack.i.l.bf16 %v6065_v17 }
 0xbc4   : > { %v6187_v21 = vpop.eup %6186  ;;  %v5940_v33 = vpack.c.bf16 %v6067_v30, %v6066_v31 }
 0xbc5   : > { %v2918_v26 = vmul.f32 %v6187_v21, %v6181_v54 }
 0xc2c   : > { %v3090_v16 = vpop.xlane.xlu0 %3089 }
 0xc2d   : > { %6188 = vrcp.f32 %v3090_v16 }
 0xc30   : > { %v6055_v18 = vpop.permute.xlu0 %6054 }
 0xc31   : > { %v6057_v19 = vunpack.i.h.bf16 %v6055_v18  ;;  %v6056_v12 = vunpack.i.l.bf16 %v6055_v18 }
 0xc33   : > { %v5924_v24 = vpack.c.bf16 %v6057_v19, %v6056_v12 }
 0xc34   : > { %v3263_v25 = vpop.xlane.xlu1 %3262  ;;  %v6070_v34 = vpop.permute.xlu0 %6069 }
 0xc35   : > { %6190 = vrcp.f32 %v3263_v25  ;;  %5926 = vmatpush3.bf16.msk.msra.mxu0 %vm6795_vm10, %v5924_v24  ;;  %v6072_v37 = vunpack.i.h.bf16 %v6070_v34  ;;  %v6071_v38 = vunpack.i.l.bf16 %v6070_v34 }
 0xc36   : > { %5931 = vmatprep.subr.bf16.mxu0 %v6258_v58 }
 0xc37   : > { %v6189_v27 = vpop.eup %6188  ;;  %v5944_v39 = vpack.c.bf16 %v6072_v37, %v6071_v38 }
 0xc38   : > { %5743 = vmatmul.mubr.msk.f32.vlgmr.msra.gmra.mrb[28].mxu0 %vm2907_vm7, %v2918_v26  ;;  %v3092_v32 = vmul.f32 %v6189_v27, %v6183_v3  ;;  %v3347_v43 = vpop.permute.xlu1 %3346 }
 0xc39   : > { %5934 = vmatpush3.bf16.msk.msra.mxu0 %vm6795_vm10, %v5932_v29  ;;  %5756 = vmatprep.mubr.msk.f32.mxu0 %vm6243_vm1, %v6242_v5 }
 0xc3a   : > { %5939 = vmatprep.subr.bf16.mxu0 %v6258_v58 }
 0xc3c   : > { %5757 = vmatmul.mubr.msk.f32.vlgmr.msra.gmra.mrb[30].mxu0 %vm2907_vm7, %v3092_v32 }
 0xc3d   : > { %5942 = vmatpush3.bf16.msk.msra.mxu0 %vm6795_vm10, %v5940_v33  ;;  %5770 = vmatprep.mubr.msk.f32.mxu0 %vm6243_vm1, %v6242_v5 }
 0xc3e   : > { %5943 = vmatprep.subr.bf16.mxu0 %v6258_v58 }
 0xc3f   : > { %v6191_v35 = vpop.eup %6190 }
 0xc40   : > { %v3265_v36 = vmul.f32 %v6191_v35, %v6185_v6 }
 0xc42   : > { %5771 = vmatmul.mubr.msk.f32.vlgmr.msra.gmra.mrb[32].mxu0 %vm2907_vm7, %v3265_v36 }
 0xc43   : > { %5777 = vmatprep.mubr.msk.f32.mxu0 %vm6243_vm1, %v6242_v5 }
 0xc46   : > { %5946 = vmatpush3.bf16.xpose.msk.msra.mxu0 %vm6718_vm6, %v5944_v39 }
 0xc47   : > { %5955 = vmatprep.subr.bf16.mxu0 %v6258_v58 }
 0xc4d   : > { %5778 = vmatmul.mubr.msk.f32.vlgmr.msra.gmra.mrb[34].mxu0 %vm1079_vm3, %v3347_v43 }
 0xc4e   : > { %5798 = vmatprep.mubr.msk.f32.mxu0 %vm6243_vm1, %v6242_v5 }
 0xd0b   : > { %v6823_v45 = vpop.f32.mrb[28].mxu0 }
 0xd0c   : > { %v5744_v46 = vpop.f32.mrb[29].mxu0 }
 0xd0f   : > { %v6825_v47 = vpop.f32.mrb[30].mxu0 }
 0xd10   : > { %v5758_v48 = vpop.f32.mrb[31].mxu0 }
 0xd15   : > { %v6827_v49 = vpop.f32.mrb[32].mxu0 }
 0xd16   : > { %v5772_v50 = vpop.f32.mrb[33].mxu0 }
 0xd20   : > { %v3424_v15 = vpop.f32.mrb[34].mxu0 }
 0xd21   : > { %v5779_v52 = vpop.f32.mrb[35].mxu0  ;;  %v3428_v7 = vsel %vm2907_vm7, %v3424_v15, -inf }
 0xd22   : > { %3429 = vmax.xlane.f32.xlu0 %v3428_v7 }
 0xd38   : > { %6074 = vrot.lane.b32.xlu0 %v6722_v14, %s7118_s30 }
 0xd3c   : > { %6084 = vrot.lane.b32.xlu0 %v6775_v42, %s6247_s6 }
 0xd40   : > { %3704 = vrot.lane.b32.xlu0 %v6750_v28, %s6247_s6  ;;  %s7121_s6 = smov 24  }
 0xdaf   : > { %v3430_v8 = vpop.xlane.xlu0 %3429 }
 0xdb0   : > { %v3431_v53 = vsub.f32 %v3424_v15, %v3430_v8 }
 0xdb2   : > { %v3432_v54 = vmul.f32 1.442695, %v3431_v53 }
 0xdb3   : > { %v6075_v55 = vpop.permute.xlu0 %6074 }
 0xdb4   : > { %6192 = vpow2.f32 %v3432_v54  ;;  %v6077_v56 = vunpack.i.h.bf16 %v6075_v55  ;;  %v6076_v57 = vunpack.i.l.bf16 %v6075_v55 }
 0xdb6   : > { %v5948_v60 = vpack.c.bf16 %v6077_v56, %v6076_v57 }
 0xdb7   : > { %v6085_v23 = vpop.permute.xlu0 %6084 }
 0xdb8   : > { %5950 = vmatpush3.bf16.msk.msra.mxu1 %vm6795_vm10, %v5948_v60  ;;  %v6087_v25 = vunpack.i.h.bf16 %v6085_v23  ;;  %v6086_v26 = vunpack.i.l.bf16 %v6085_v23 }
 0xdb9   : > { %5951 = vmatprep.subr.bf16.mxu1 %v6258_v58 }
 0xdba   : > { %v5960_v29 = vpack.c.bf16 %v6087_v25, %v6086_v26 }
 0xdbb   : > { %v3705_v30 = vpop.permute.xlu0 %3704 }
 0xdbe   : > { %v6193_v14 = vpop.eup %6192 }
 0xdbf   : > { %v3434_v0 = vsel %vm2907_vm7, %v6193_v14, 0.0 }
 0xdc0   : > { %3435 = vadd.xlane.f32.xlu1 %v3434_v0 }
 0xe4d   : > { %v3436_v1 = vpop.xlane.xlu1 %3435 }
 0xe4e   : > { %6194 = vrcp.f32 %v3436_v1 }
 0xe58   : > { %v6195_v2 = vpop.eup %6194 }
 0xe59   : > { %v3438_v3 = vmul.f32 %v6195_v2, %v6193_v14 }
 0xe5b   : > { %5785 = vmatmul.mubr.msk.f32.vlgmr.msra.gmra.mrb[34].mxu1 %vm2907_vm7, %v3438_v3 }
 0xe5c   : > { %5954 = vmatpush3.bf16.xpose.msk.msra.mxu1 %vm6718_vm6, %v5952_v44  ;;  %5791 = vmatprep.mubr.msk.f32.mxu1 %vm6243_vm1, %v6242_v5 }
 0xe5d   : > { %5963 = vmatprep.subr.bf16.mxu1 %v6258_v58 }
 0xe63   : > { %5792 = vmatmul.mubr.msk.f32.vlgmr.msra.gmra.mrb[36].mxu1 %vm1079_vm3, %v6750_v28 }
 0xe64   : > { %5812 = vmatprep.mubr.msk.f32.mxu1 %vm6243_vm1, %v6242_v5 }
 0xf2e   : > { %v6853_v4 = vpop.f32.mrb[34].mxu1 }
 0xf2f   : > { %v5786_v6 = vpop.f32.mrb[35].mxu1 }
 0xf36   : > { %v3609_v9 = vpop.f32.mrb[36].mxu1 }
 0xf37   : > { %v5793_v10 = vpop.f32.mrb[37].mxu1  ;;  %v3613_v40 = vsel %vm2907_vm7, %v3609_v9, -inf }
 0xf38   : > { %3614 = vmax.xlane.f32.xlu1 %v3613_v40 }
 0xfc5   : > { %v3615_v41 = vpop.xlane.xlu1 %3614 }
 0xfc6   : > { %v3616_v44 = vsub.f32 %v3609_v9, %v3615_v41 }
 0xfc8   : > { %v3617_v11 = vmul.f32 1.442695, %v3616_v44 }
 0xfca   : > { %6196 = vpow2.f32 %v3617_v11 }
 0xfd4   : > { %v6197_v16 = vpop.eup %6196 }
 0xfd5   : > { %v3619_v17 = vsel %vm2907_vm7, %v6197_v16, 0.0 }
 0xfd6   : > { %3620 = vadd.xlane.f32.xlu1 %v3619_v17 }
 0xfe7   : > { %6079 = vrot.lane.b32.xlu1 %v6775_v42, %s6245_s1  ;;  %s7119_s1 = smov 16  }
0x1063   : > { %v3621_v18 = vpop.xlane.xlu1 %3620 }
0x1064   : > { %6198 = vrcp.f32 %v3621_v18 }
0x1067   : > { %v6080_v19 = vpop.permute.xlu1 %6079 }
0x1068   : > { %v6082_v12 = vunpack.i.h.bf16 %v6080_v19  ;;  %v6081_v21 = vunpack.i.l.bf16 %v6080_v19 }
0x106a   : > { %v5956_v22 = vpack.c.bf16 %v6082_v12, %v6081_v21 }
0x106c   : > { %5958 = vmatpush3.bf16.msk.msra.mxu0 %vm6795_vm10, %v5956_v22 }
0x106d   : > { %5959 = vmatprep.subr.bf16.mxu0 %v6258_v58 }
0x106e   : > { %v6199_v24 = vpop.eup %6198 }
0x106f   : > { %v3623_v27 = vmul.f32 %v6199_v24, %v6197_v16 }
0x1071   : > { %5799 = vmatmul.mubr.msk.f32.vlgmr.msra.gmra.mrb[36].mxu0 %vm2907_vm7, %v3623_v27 }
0x1072   : > { %5805 = vmatprep.mubr.msk.f32.mxu0 %vm6243_vm1, %v6242_v5 }
0x1075   : > { %5962 = vmatpush3.bf16.xpose.msk.msra.mxu0 %vm6718_vm6, %v5960_v29 }
0x1076   : > { %5971 = vmatprep.subr.bf16.mxu0 %v6258_v58 }
0x107c   : > { %5806 = vmatmul.mubr.msk.f32.vlgmr.msra.gmra.mrb[38].mxu0 %vm1079_vm3, %v3705_v30 }
0x107d   : > { %5826 = vmatprep.mubr.msk.f32.mxu0 %vm6243_vm1, %v6242_v5 }
0x1144   : > { %v6871_v31 = vpop.f32.mrb[36].mxu0 }
0x1145   : > { %v5800_v32 = vpop.f32.mrb[37].mxu0 }
0x114f   : > { %v3782_v33 = vpop.f32.mrb[38].mxu0 }
0x1150   : > { %v5807_v34 = vpop.f32.mrb[39].mxu0  ;;  %v3786_v35 = vsel %vm2907_vm7, %v3782_v33, -inf }
0x1151   : > { %3787 = vmax.xlane.f32.xlu0 %v3786_v35 }
0x1167   : > { %6089 = vrot.lane.b32.xlu0 %v6775_v42, %s6246_s0  ;;  %s7120_s0 = smov 8  }
0x116b   : > { %3877 = vrot.lane.b32.xlu0 %v6750_v28, %s6249_s28 }
0x11de   : > { %v3788_v36 = vpop.xlane.xlu0 %3787 }
0x11df   : > { %v3789_v37 = vsub.f32 %v3782_v33, %v3788_v36 }
0x11e1   : > { %v3790_v38 = vmul.f32 1.442695, %v3789_v37 }
0x11e2   : > { %v6090_v39 = vpop.permute.xlu0 %6089 }
0x11e3   : > { %6200 = vpow2.f32 %v3790_v38  ;;  %v6092_v43 = vunpack.i.h.bf16 %v6090_v39  ;;  %v6091_v46 = vunpack.i.l.bf16 %v6090_v39 }
0x11e5   : > { %v5964_v48 = vpack.c.bf16 %v6092_v43, %v6091_v46  ;;  %v6137_v43 = vld [vmem:[%s6439_s22 + $0x8] sm:$0xff]  }
0x11e6   : > { %v3878_v57 = vpop.permute.xlu0 %3877 }
0x11e7   : > { %5966 = vmatpush3.bf16.msk.msra.mxu1 %vm6795_vm10, %v5964_v48 }
0x11e8   : > { %5967 = vmatprep.subr.bf16.mxu1 %v6258_v58 }
0x11ed   : > { %v6201_v50 = vpop.eup %6200 }
0x11ee   : > { %v3792_v15 = vsel %vm2907_vm7, %v6201_v50, 0.0 }
0x11ef   : > { %3793 = vadd.xlane.f32.xlu1 %v3792_v15 }
0x1200   : > { %6094 = vrot.lane.b32.xlu1 %v6775_v42, %s6249_s28  ;;  %s7122_s28 = scalar_lea.vmem %s7061_s13, %s6399_s4  ;;  %s7123_s4 = sld [smem:[#allocation17_spill]] (!%p5453_p6) }
0x127c   : > { %v3794_v52 = vpop.xlane.xlu1 %3793 }
0x127d   : > { %6202 = vrcp.f32 %v3794_v52 }
0x1280   : > { %v6095_v7 = vpop.permute.xlu1 %6094 }
0x1281   : > { %v6097_v8 = vunpack.i.h.bf16 %v6095_v7  ;;  %v6096_v53 = vunpack.i.l.bf16 %v6095_v7 }
0x1283   : > { %v5968_v56 = vpack.c.bf16 %v6097_v8, %v6096_v53 }
0x1287   : > { %v6203_v54 = vpop.eup %6202 }
0x1288   : > { %v3796_v55 = vmul.f32 %v6203_v54, %v6201_v50 }
0x128a   : > { %5813 = vmatmul.mubr.msk.f32.vlgmr.msra.gmra.mrb[38].mxu1 %vm2907_vm7, %v3796_v55 }
0x128b   : > { %5970 = vmatpush3.bf16.xpose.msk.msra.mxu1 %vm6718_vm6, %v5968_v56  ;;  %5819 = vmatprep.mubr.msk.f32.mxu1 %vm6243_vm1, %v6242_v5 }
0x128c   : > { %5979 = vmatprep.subr.bf16.mxu1 %v6258_v58 }
0x1292   : > { %5820 = vmatmul.mubr.msk.f32.vlgmr.msra.gmra.mrb[40].mxu1 %vm1079_vm3, %v3878_v57 }
0x1293   : > { %5840 = vmatprep.mubr.msk.f32.mxu1 %vm6243_vm1, %v6242_v5 }
0x135d   : > { %v3873_v60 = vpop.f32.mrb[38].mxu1 }
0x135e   : > { %v6113_v14 = vpack.i.bf16 %v3873_v60, %v6825_v47  ;;  %v5814_v0 = vpop.f32.mrb[39].mxu1 }
0x1365   : > { %v3955_v1 = vpop.f32.mrb[40].mxu1 }
0x1366   : > { %v5821_v2 = vpop.f32.mrb[41].mxu1  ;;  %v3959_v3 = vsel %vm2907_vm7, %v3955_v1, -inf }
0x1367   : > { %3960 = vmax.xlane.f32.xlu1 %v3959_v3 }
0x1378   : > { %6104 = vrot.lane.b32.xlu1 %v6775_v42, %s6250_s2 }
0x137c   : > { %4050 = vrot.lane.b32.xlu1 %v6750_v28, %s6250_s2 }
0x13f4   : > { %v3961_v6 = vpop.xlane.xlu1 %3960 }
0x13f5   : > { %v3962_v9 = vsub.f32 %v3955_v1, %v3961_v6 }
0x13f7   : > { %v3963_v10 = vmul.f32 1.442695, %v3962_v9 }
0x13f8   : > { %v6105_v18 = vpop.permute.xlu1 %6104 }
0x13f9   : > { %6204 = vpow2.f32 %v3963_v10  ;;  %v6107_v19 = vunpack.i.h.bf16 %v6105_v18  ;;  %v6106_v12 = vunpack.i.l.bf16 %v6105_v18 }
0x13fb   : > { %v5976_v22 = vpack.c.bf16 %v6107_v19, %v6106_v12 }
0x13fc   : > { %v4051_v23 = vpop.permute.xlu1 %4050 }
0x1403   : > { %v6205_v40 = vpop.eup %6204 }
0x1404   : > { %v3965_v41 = vsel %vm2907_vm7, %v6205_v40, 0.0 }
0x1405   : > { %3966 = vadd.xlane.f32.xlu0 %v3965_v41 }
0x141b   : > { %6099 = vrot.lane.b32.xlu0 %v6775_v42, %s6248_s27 }
0x1492   : > { %v3967_v47 = vpop.xlane.xlu0 %3966 }
0x1493   : > { %6206 = vrcp.f32 %v3967_v47 }
0x1496   : > { %v6100_v44 = vpop.permute.xlu0 %6099 }
0x1497   : > { %v6102_v11 = vunpack.i.h.bf16 %v6100_v44  ;;  %v6101_v16 = vunpack.i.l.bf16 %v6100_v44 }
0x1499   : > { %v5972_v17 = vpack.c.bf16 %v6102_v11, %v6101_v16 }
0x149b   : > { %5974 = vmatpush3.bf16.msk.msra.mxu0 %vm6795_vm10, %v5972_v17 }
0x149c   : > { %5975 = vmatprep.subr.bf16.mxu0 %v6258_v58 }
0x149d   : > { %v6207_v28 = vpop.eup %6206 }
0x149e   : > { %v3969_v21 = vmul.f32 %v6207_v28, %v6205_v40 }
0x14a0   : > { %5827 = vmatmul.mubr.msk.f32.vlgmr.msra.gmra.mrb[40].mxu0 %vm2907_vm7, %v3969_v21 }
0x14a1   : > { %5833 = vmatprep.mubr.msk.f32.mxu0 %vm6243_vm1, %v6242_v5 }
0x14a4   : > { %5978 = vmatpush3.bf16.xpose.msk.msra.mxu0 %vm6718_vm6, %v5976_v22 }
0x14a5   : > { %5851 = vmatprep.subr.mxu0 %v6242_v5 }
0x14ab   : > { %5834 = vmatmul.mubr.msk.f32.vlgmr.msra.gmra.mrb[42].mxu0 %vm1079_vm3, %v4051_v23  ;;  %v6140_v23 = vld [vmem:[%s6453_s8] sm:$0xff]  }
0x14ac   : > { %5853 = vmatprep.mubr.msk.f32.mxu0 %vm6243_vm1, %v6242_v5 }
0x1573   : > { %v4046_v58 = vpop.f32.mrb[40].mxu0 }
0x1574   : > { %v6118_v24 = vpack.i.bf16 %v4046_v58, %v6827_v49  ;;  %v5828_v25 = vpop.f32.mrb[41].mxu0  ;;  %v6141_v58 = vld [vmem:[%s6453_s8 + $0x8] sm:$0xff]  }
0x157e   : > { %v4128_v26 = vpop.f32.mrb[42].mxu0 }
0x157f   : > { %v5835_v27 = vpop.f32.mrb[43].mxu0  ;;  %v4132_v29 = vsel %vm2907_vm7, %v4128_v26, -inf }
0x1580   : > { %4133 = vmax.xlane.f32.xlu0 %v4132_v29 }
0x1596   : > { %6109 = vrot.lane.b32.xlu0 %v6775_v42, %s7118_s30 }
0x159a   : > { %6119 = vrot.lane.b32.xlu0 %v6118_v24, %s7119_s1  ;;  %s7126_s1 = sld [smem:[#allocation20_spill]] (!%p5453_p6) }
0x160d   : > { %v4134_v13 = vpop.xlane.xlu0 %4133 }
0x160e   : > { %v4135_v30 = vsub.f32 %v4128_v26, %v4134_v13 }
0x1610   : > { %v4136_v32 = vmul.f32 1.442695, %v4135_v30 }
0x1611   : > { %v6110_v33 = vpop.permute.xlu0 %6109 }
0x1612   : > { %6208 = vpow2.f32 %v4136_v32  ;;  %v6112_v34 = vunpack.i.h.bf16 %v6110_v33  ;;  %v6111_v35 = vunpack.i.l.bf16 %v6110_v33 }
0x1614   : > { %v5980_v49 = vpack.c.bf16 %v6112_v34, %v6111_v35 }
0x1615   : > { %v6120_v8 = vpop.permute.xlu0 %6119 }
0x1616   : > { %5982 = vmatpush3.bf16.msk.msra.mxu1 %vm6795_vm10, %v5980_v49  ;;  %v6122_v55 = vunpack.i.h.bf16 %v6120_v8  ;;  %v6121_v56 = vunpack.i.l.bf16 %v6120_v8  ;;  %v6142_v49 = vld [vmem:[%s6459_s20] sm:$0xff]  }
0x1617   : > { %5843 = vmatprep.subr.bf16.mxu1 %v6242_v5 }
0x161c   : > { %v6209_v36 = vpop.eup %6208 }
0x161d   : > { %v4138_v42 = vsel %vm2907_vm7, %v6209_v36, 0.0 }
0x161e   : > { %4139 = vadd.xlane.f32.xlu1 %v4138_v42  ;;  %v6144_v42 = vld [vmem:[%s6459_s20 + $0x8] sm:$0xff]  }
0x162f   : > { %6114 = vrot.lane.b32.xlu1 %v6113_v14, %s7120_s0 }
0x16ab   : > { %v4140_v37 = vpop.xlane.xlu1 %4139 }
0x16ac   : > { %6210 = vrcp.f32 %v4140_v37  ;;  %v6145_v37 = vld [vmem:[%s6459_s20 + $0x18] sm:$0xff]  }
0x16af   : > { %v6115_v15 = vpop.permute.xlu1 %6114 }
0x16b0   : > { %v6117_v52 = vunpack.i.h.bf16 %v6115_v15  ;;  %v6116_v7 = vunpack.i.l.bf16 %v6115_v15  ;;  %v6146_v15 = vld [vmem:[%s6459_s20 + $0x20] sm:$0xff]  }
0x16b2   : > { %v4235_v53 = vsel %vm1079_vm3, %v6871_v31, %v6117_v52  ;;  %v3531_v54 = vsel %vm1079_vm3, %v6823_v45, %v6116_v7  ;;  %v5430_v45 = vld [vmem:[%s7122_s28] ss:$0 sm:$0xff]  ;;  %v6147_v7 = vld [vmem:[%s6459_s20 + $0x28] sm:$0xff]   ;;  %s7127_s28 = sld [smem:[#allocation18_spill]] (!%p5453_p6) }
0x16b3   : > { %v4236_v0 = vsel %vm1749_vm4, %v4235_v53, %v6122_v55 }
0x16b6   : > { %v6211_v38 = vpop.eup %6210 }
0x16b7   : > { %v4142_v39 = vmul.f32 %v6211_v38, %v6209_v36  ;;  %v6143_v36 = vld [vmem:[%s6459_s20 + $0x10] sm:$0xff]  }
0x16b9   : > { %5841 = vmatmul.mubr.msk.f32.vlgmr.msra.gmra.mrb[42].mxu1 %vm2907_vm7, %v4142_v39 }
0x16ba   : > { %5847 = vmatprep.mubr.msk.bf16.mxu1 %vm6243_vm1, %v6242_v5  ;;  %5844 = vmatpush3.bf16.msra.mxu1 %v6136_v20 }
0x16bb   : > { %5845 = vmatprep.subr.bf16.mxu1 %v6242_v5 }
0x16be   : > { %5846 = vmatpush3.bf16.msra.mxu1 %v6137_v43 }
0x16bf   : > { %5861 = vmatprep.subr.bf16.mxu1 %v6242_v5 }
0x178c   : > { %v4219_v46 = vpop.f32.mrb[42].mxu1 }
0x178d   : > { %v6123_v48 = vpack.i.bf16 %v4219_v46, %v6853_v4  ;;  %v5842_v50 = vpop.f32.mrb[43].mxu1  ;;  %v3532_v4 = vsel %vm1749_vm4, %v3531_v54, %v6121_v56 }
0x178f   : > { %6124 = vrot.lane.b32.xlu1 %v6123_v48, %s7121_s6 }
0x1801   : > { %v6125_v57 = vpop.permute.xlu1 %6124 }
0x1802   : > { %v6127_v60 = vunpack.i.h.bf16 %v6125_v57  ;;  %v6126_v14 = vunpack.i.l.bf16 %v6125_v57 }
0x1804   : > { %v4237_v1 = vsel %vm1751_vm5, %v4236_v0, %v6127_v60  ;;  %v3533_v2 = vsel %vm1751_vm5, %v3532_v4, %v6126_v14 }
0x1805   : > { %v4242_v3 = vpack.c.bf16 %v4237_v1, %v3533_v2 }
0x1807   : > { %5848 = vmatmul.mubr.msk.bf16.vlgmr.msra.gmra.mrb[44].mxu1 %vm1031_vm2, %v4242_v3 }
0x1808   : > { %5865 = vmatprep.mubr.msk.bf16.mxu1 %vm6243_vm1, %v6242_v5 }
0x18da   : > { %v4299_v31 = vpop.f32.mrb[44].mxu1 }
0x18db   : > { %v4300_v6 = vadd.f32 %v5430_v45, %v4299_v31  ;;  %v5849_v9 = vpop.f32.mrb[45].mxu1 }
0x18dc   : > { %v4302_v10 = vpop.f32.mrb[46].mxu1 }
0x18dd   : > { %v4306_v40 = vadd.f32 %v4300_v6, %v6699_v62  ;;  %v4303_v41 = vadd.f32 %v5430_v45, %v4302_v10  ;;  %v5850_v47 = vpop.f32.mrb[47].mxu1  ;;  %v6138_v62 = vld [vmem:[%s6448_s5] sm:$0xff]   ;;  %v4907_v6 = vld [vmem:[#allocation3] sm:$0xff] }
0x18de   : > { %5862 = vmatpush3.bf16.msra.mxu1 %v6138_v62 }
0x18df   : > { %v4307_v44 = vadd.f32 %v4303_v41, %v6702_v63  ;;  %5852 = vmatpush3.msra.mxu0 %v4306_v40  ;;  %5863 = vmatprep.subr.bf16.mxu1 %v6242_v5  ;;  %v6139_v63 = vld [vmem:[%s6448_s5 + $0x8] sm:$0xff]   ;;  %v4908_v41 = vld [vmem:[#allocation3 + $0x8] sm:$0xff]  ;;  %s7128_s5 = sld [smem:[#allocation19_spill]] (!%p5453_p6) }
0x18e0   : > { %5854 = vmatmul.mubr.msk.f32.vlgmr.msra.gmra.mrb[44].mxu0 %vm1079_vm3, %v6664_v51  ;;  %5856 = vmatprep.subr.mxu0 %v6242_v5 }
0x18e1   : > { %5857 = vmatpush3.msra.mxu0 %v4307_v44  ;;  %5858 = vmatprep.mubr.msk.f32.mxu0 %vm6243_vm1, %v6242_v5 }
0x18e2   : > { %5869 = vmatprep.subr.bf16.mxu0 %v6242_v5  ;;  %5864 = vmatpush3.bf16.msra.mxu1 %v6139_v63 }
0x18e3   : > { %5877 = vmatprep.subr.mxu1 %v6242_v5 }
0x18e4   : > { %5859 = vmatmul.mubr.msk.f32.vlgmr.msra.gmra.mrb[46].mxu0 %vm1079_vm3, %v6664_v51 }
0x18e5   : > { %5873 = vmatprep.mubr.msk.bf16.mxu0 %vm6243_vm1, %v6242_v5  ;;  %5870 = vmatpush3.bf16.msra.mxu0 %v6140_v23 }
0x18e6   : > { %5871 = vmatprep.subr.bf16.mxu0 %v6242_v5 }
0x18e9   : > { %5872 = vmatpush3.bf16.msra.mxu0 %v6141_v58 }
0x18ea   : > { %5882 = vmatprep.subr.mxu0 %v6242_v5 }
0x19b3   : > { %v4374_v11 = vpop.f32.mrb[44].mxu0 }
0x19b4   : > { %v4720_v16 = vadd.f32 %v4374_v11, %v6694_v59  ;;  %v5855_v17 = vpop.f32.mrb[45].mxu0  ;;  %v4448_v28 = vsub.f32 %v4306_v40, %v4374_v11 }
0x19b7   : > { %v4444_v18 = vpop.f32.mrb[46].mxu0 }
0x19b8   : > { %v4449_v19 = vsub.f32 %v4307_v44, %v4444_v18  ;;  %v4721_v12 = vadd.f32 %v4444_v18, %v6696_v61  ;;  %v5860_v21 = vpop.f32.mrb[47].mxu0 }
0x19ba   : > { %v4454_v22 = vpack.c.bf16 %v4449_v19, %v4448_v28 }
0x19bc   : > { %5866 = vmatmul.mubr.msk.bf16.vlgmr.msra.gmra.mrb[48].mxu1 %vm1031_vm2, %v4454_v22 }
0x19bd   : > { %5879 = vmatprep.mubr.msk.f32.mxu1 %vm6243_vm1, %v6242_v5 }
0x1a8f   : > { %v4504_v59 = vpop.f32.mrb[48].mxu1 }
0x1a90   : > { %v5867_v24 = vpop.f32.mrb[49].mxu1  ;;  %v4511_v26 = vmax.f32 %v4504_v59, 0.0  ;;  %v6212_v59 = vld [vmem:[%s7123_s4] sm:$0xff] (!%p5453_p6)  }
0x1a91   : > { %v4507_v25 = vpop.f32.mrb[50].mxu1  ;;  %v6260_v24 = vmov (!%p5453_p6), 0.0  }
0x1a92   : > { %v4512_v61 = vmax.f32 %v4507_v25, 0.0  ;;  %v5868_v27 = vpop.f32.mrb[51].mxu1  ;;  %v6213_v25 = vld [vmem:[%s7123_s4 + $0x8] sm:$0xff] (!%p5453_p6)  }
0x1a94   : > { %v4517_v29 = vpack.c.bf16 %v4512_v61, %v4511_v26 }
0x1a96   : > { %5874 = vmatmul.mubr.msk.bf16.vlgmr.msra.gmra.mrb[48].mxu0 %vm1031_vm2, %v4517_v29 }
0x1a97   : > { %5884 = vmatprep.mubr.msk.f32.mxu0 %vm6243_vm1, %v6242_v5 }
0x1b69   : > { %v4567_v13 = vpop.f32.mrb[48].mxu0 }
0x1b6a   : > { %v4574_v30 = vadd.f32 %v4567_v13, %v4448_v28  ;;  %v5875_v32 = vpop.f32.mrb[49].mxu0 }
0x1b6b   : > { %v4570_v33 = vpop.f32.mrb[50].mxu0 }
0x1b6c   : > { %v4575_v34 = vadd.f32 %v4570_v33, %v4449_v19  ;;  %v5876_v35 = vpop.f32.mrb[51].mxu0  ;;  %5878 = vmatpush3.msra.mxu1 %v4574_v30  ;;  %v5454_v33 = vld [vmem:[%s7124_s21] ss:$0 sm:$0xff] (!%p5453_p6) }
0x1b6d   : > { %5880 = vmatmul.mubr.msk.f32.vlgmr.msra.gmra.mrb[52].mxu1 %vm1079_vm3, %v6664_v51  ;;  %5887 = vmatprep.subr.bf16.mxu1 %v6242_v5  ;;  %v5455_v35 = vld [vmem:[%s7125_s26] ss:$0 sm:$0xff] (!%p5453_p6) }
0x1b6e   : > { %5883 = vmatpush3.msra.mxu0 %v4575_v34  ;;  %5891 = vmatprep.mubr.msk.bf16.mxu1 %vm6243_vm1, %v6242_v5 }
0x1b6f   : > { %5885 = vmatmul.mubr.msk.f32.vlgmr.msra.gmra.mrb[52].mxu0 %vm1079_vm3, %v6664_v51  ;;  %5895 = vmatprep.subr.bf16.mxu0 %v6242_v5 }
0x1b70   : > { %5899 = vmatprep.mubr.msk.bf16.mxu0 %vm6243_vm1, %v6242_v5  ;;  %5888 = vmatpush3.bf16.msra.mxu1 %v6142_v49 }
0x1b71   : > { %5896 = vmatpush3.bf16.msra.mxu0 %v6143_v36  ;;  %5889 = vmatprep.subr.bf16.mxu1 %v6242_v5 }
0x1b72   : > { %5897 = vmatprep.subr.bf16.mxu0 %v6242_v5 }
0x1b74   : > { %5890 = vmatpush3.bf16.msra.mxu1 %v6144_v42 }
0x1b75   : > { %5898 = vmatpush3.bf16.msra.mxu0 %v6145_v37  ;;  %5903 = vmatprep.subr.bf16.mxu1 %v6242_v5 }
0x1b76   : > { %5911 = vmatprep.subr.bf16.mxu0 (!%p5453_p6), %v6260_v24 }
0x1c40   : > { %v4642_v51 = vpop.f32.mrb[52].mxu1 }
0x1c41   : > { %v4716_v38 = vsub.f32 %v4574_v30, %v4642_v51  ;;  %v4722_v39 = vadd.f32 %v4720_v16, %v4642_v51  ;;  %v5881_v20 = vpop.f32.mrb[53].mxu1 }
0x1c42   : > { %v4712_v43 = vpop.f32.mrb[52].mxu0 }
0x1c43   : > { %4718 = vst.msk [vmem:[#allocation2] sm:$0xff] %vm1031_vm2, %v4716_v38  ;;  %v4717_v46 = vsub.f32 %v4575_v34, %v4712_v43  ;;  %v4723_v48 = vadd.f32 %v4721_v12, %v4712_v43  ;;  %v5886_v50 = vpop.f32.mrb[53].mxu0  ;;  %v4919_v63 = vsel (!%p5453_p6), %vm1031_vm2, %v4716_v38, 0.0 }
0x1c44   : > { %4920 = vadd.xlane.f32.xlu0 (!%p5453_p6), %v4919_v63 }
0x1c45   : > { %4719 = vst.msk [vmem:[#allocation2 + $0x8] sm:$0xff] %vm1031_vm2, %v4717_v46  ;;  %v4736_v52 = vpack.c.bf16 %v4723_v48, %v4722_v39  ;;  %v4922_v11 = vsel (!%p5453_p6), %vm1031_vm2, %v4717_v46, 0.0 }
0x1c47   : > { %5892 = vmatmul.mubr.msk.bf16.vlgmr.msra.gmra.mrb[56].mxu1 %vm1031_vm2, %v4736_v52  ;;  %5900 = vmatmul.mubr.msk.bf16.vlgmr.msra.gmra.mrb[56].mxu0 %vm1031_vm2, %v4736_v52 }
0x1c48   : > { %5904 = vmatpush3.bf16.msra.mxu1 %v6146_v15  ;;  %5907 = vmatprep.mubr.msk.bf16.mxu1 %vm6243_vm1, %v6242_v5 }
0x1c49   : > { %5905 = vmatprep.subr.bf16.mxu1 %v6242_v5  ;;  %4923 = vadd.xlane.f32.xlu0 (!%p5453_p6), %v4922_v11 }
0x1c4a   : > { %5915 = vmatprep.mubr.msk.bf16.mxu0 (!%p5453_p6), %vm6261_vm11, %v6260_v24  ;;  %5912 = vmatpush3.bf16.msra.mxu0 (!%p5453_p6), %v6212_v59 }
0x1c4b   : > { %5913 = vmatprep.subr.bf16.mxu0 (!%p5453_p6), %v6260_v24 }
0x1c4c   : > { %5906 = vmatpush3.bf16.msra.mxu1 %v6147_v7 }
0x1c4e   : > { %5914 = vmatpush3.bf16.msra.mxu0 (!%p5453_p6), %v6213_v25 }
0x1c4f   : > { %5908 = vmatmul.mubr.msk.bf16.vlgmr.msra.gmra.mrb[60].mxu1 %vm1031_vm2, %v4736_v52 }
0x1cd1   : > { %v4921_v16 = vpop.xlane.xlu0 (!%p5453_p6), %4920 }
0x1cd2   : > { %v4926_v17 = vmul.f32 (!%p5453_p6), 0.03125, %v4921_v16 }
0x1cd4   : > { %v4928_v18 = vsub.f32 (!%p5453_p6), %v4716_v38, %v4926_v17 }
0x1cd6   : > { %v4924_v28 = vpop.xlane.xlu0 (!%p5453_p6), %4923  ;;  %v4930_v12 = vmul.f32 (!%p5453_p6), %v4928_v18, %v4928_v18 }
0x1cd7   : > { %v4927_v19 = vmul.f32 (!%p5453_p6), 0.03125, %v4924_v28 }
0x1cd8   : > { %v4932_v22 = vsel (!%p5453_p6), %vm1031_vm2, %v4930_v12, 0.0 }
0x1cd9   : > { %v4929_v21 = vsub.f32 (!%p5453_p6), %v4717_v46, %v4927_v19  ;;  %4933 = vadd.xlane.f32.xlu1 (!%p5453_p6), %v4932_v22 }
0x1cdb   : > { %v4931_v23 = vmul.f32 (!%p5453_p6), %v4929_v21, %v4929_v21 }
0x1cdd   : > { %v4935_v58 = vsel (!%p5453_p6), %vm1031_vm2, %v4931_v23, 0.0 }
0x1cde   : > { %4936 = vadd.xlane.f32.xlu1 (!%p5453_p6), %v4935_v58 }
0x1d1a   : > { %v4786_v8 = vpop.f32.mrb[56].mxu1  ;;  %v4839_v53 = vpop.f32.mrb[56].mxu0 }
0x1d1b   : > { %v4899_v54 = vrot.slane %v4786_v8, 7  ;;  %v5893_v55 = vpop.f32.mrb[57].mxu1  ;;  %v5901_v56 = vpop.f32.mrb[57].mxu0 }
0x1d1c   : > { %v4789_v57 = vpop.f32.mrb[58].mxu1  ;;  %v4842_v60 = vpop.f32.mrb[58].mxu0 }
0x1d1d   : > { %v4900_v14 = vadd.f32 %v4899_v54, %v4839_v53  ;;  %v4903_v4 = vrot.slane %v4789_v57, 7  ;;  %v5894_v0 = vpop.f32.mrb[59].mxu1  ;;  %v5902_v1 = vpop.f32.mrb[59].mxu0 }
0x1d1f   : > { %v4904_v2 = vadd.f32 %v4903_v4, %v4842_v60 }
0x1d22   : > { %v4892_v3 = vpop.f32.mrb[60].mxu1 }
0x1d23   : > { %v4901_v45 = vrot.slane %v4892_v3, 1  ;;  %v5909_v31 = vpop.f32.mrb[61].mxu1  ;;  %v5456_v3 = vld [vmem:[%s7127_s28] ss:$0 sm:$0xff] (!%p5453_p6) }
0x1d24   : > { %v4895_v5 = vpop.f32.mrb[62].mxu1 }
0x1d25   : > { %v4902_v9 = vadd.f32 %v4901_v45, %v4900_v14  ;;  %v4905_v10 = vrot.slane %v4895_v5, 1  ;;  %v5910_v40 = vpop.f32.mrb[63].mxu1  ;;  %4916 = sbr.rel (%p5453_p6) target bundleno = 7789 (0x1e6d), region = 112 }
0x1d27   : > { %v4909_v47 = vadd.f32 %v4907_v6, %v4902_v9  ;;  %v4906_v44 = vadd.f32 %v4905_v10, %v4904_v2 }
0x1d29   : > { %4911 = vst [vmem:[#allocation3] sm:$0xff] %v4909_v47  ;;  %v4910_v62 = vadd.f32 %v4908_v41, %v4906_v44 }
0x1d2b   : > { %4912 = vst [vmem:[#allocation3 + $0x8] sm:$0xff] %v4910_v62 }
0x1d30   : > { %v5051_v1 = vld [vmem:[#allocation3] sm:$0xff] }
0x1d31   : > { %5053 = vst [vmem:[%s7126_s1] sm:$0xff] %v5051_v1 }
0x1d32   : > { %v5052_v2 = vld [vmem:[#allocation3 + $0x8] sm:$0xff] }
0x1d33   : > { %5054 = vst [vmem:[%s7126_s1 + $0x8] sm:$0xff] %v5052_v2 }
0x1d66   : > { %v4934_v26 = vpop.xlane.xlu1 %4933 }
0x1d67   : > { %v4938_v61 = vmul.f32 0.03125, %v4934_v26 }
0x1d69   : > { %v4940_v27 = vadd.f32 1e-05, %v4938_v61 }
0x1d6b   : > { %v4937_v29 = vpop.xlane.xlu1 %4936  ;;  %6214 = vrsqrt.f32 %v4940_v27 }
0x1d6c   : > { %v4939_v13 = vmul.f32 0.03125, %v4937_v29 }
0x1d6e   : > { %v4941_v30 = vadd.f32 1e-05, %v4939_v13 }
0x1d70   : > { %6216 = vrsqrt.f32 %v4941_v30 }
0x1d75   : > { %v6215_v32 = vpop.eup %6214 }
0x1d76   : > { %v4944_v34 = vmul.f32 %v6215_v32, %v4928_v18 }
0x1d78   : > { %v4952_v49 = vmul.f32 %v5454_v33, %v4944_v34 }
0x1d7a   : > { %v6217_v36 = vpop.eup %6216  ;;  %v4960_v37 = vadd.f32 %v5455_v35, %v4952_v49 }
0x1d7b   : > { %v4945_v42 = vmul.f32 %v6217_v36, %v4929_v21 }
0x1d7c   : > { %v4962_v38 = vsel %vm1031_vm2, %v4960_v37, 0.0 }
0x1d7d   : > { %v4953_v51 = vmul.f32 %v5454_v33, %v4945_v42  ;;  %v4963_v39 = vrot.slane %v4962_v38, 4 }
0x1d7f   : > { %v4961_v20 = vadd.f32 %v5455_v35, %v4953_v51  ;;  %v4964_v43 = vadd.f32 %v4963_v39, %v4962_v38 }
0x1d81   : > { %v4969_v46 = vsel %vm1031_vm2, %v4961_v20, 0.0  ;;  %v4965_v48 = vrot.slane %v4964_v43, 2 }
0x1d82   : > { %v4970_v50 = vrot.slane %v4969_v46, 4 }
0x1d83   : > { %v4966_v15 = vadd.f32 %v4965_v48, %v4964_v43 }
0x1d84   : > { %v4971_v52 = vadd.f32 %v4970_v50, %v4969_v46 }
0x1d85   : > { %v4967_v7 = vrot.slane %v4966_v15, 1 }
0x1d86   : > { %v4972_v8 = vrot.slane %v4971_v52, 2 }
0x1d87   : > { %v4968_v53 = vadd.f32 %v4967_v7, %v4966_v15 }
0x1d88   : > { %v4973_v54 = vadd.f32 %v4972_v8, %v4971_v52 }
0x1d89   : > { %v4977_v57 = vmul.f32 0.125, %v4968_v53 }
0x1d8a   : > { %v4974_v55 = vrot.slane %v4973_v54, 1 }
0x1d8b   : > { %v4979_v14 = vsub.f32 %v4960_v37, %v4977_v57 }
0x1d8c   : > { %v4975_v56 = vadd.f32 %v4974_v55, %v4973_v54 }
0x1d8e   : > { %v4978_v60 = vmul.f32 0.125, %v4975_v56 }
0x1d90   : > { %v4980_v4 = vsub.f32 %v4961_v20, %v4978_v60 }
0x1d92   : > { %v4985_v0 = vpack.c.bf16 %v4980_v4, %v4979_v14 }
0x1d94   : > { %5916 = vmatmul.mubr.msk.bf16.vlgmr.msra.gmra.mrb[0].mxu0 %vm1031_vm2, %v4985_v0 }
0x1e67   : > { %v5042_v45 = vpop.f32.mrb[0].mxu0 }
0x1e68   : > { %v5043_v31 = vadd.f32 %v5456_v3, %v5042_v45  ;;  %v5917_v6 = vpop.f32.mrb[1].mxu0 }
0x1e69   : > { %v5045_v5 = vpop.f32.mrb[2].mxu0 }
0x1e6a   : > { %5049 = vst [vmem:[%s7128_s5] sm:$0xff] %v5043_v31  ;;  %v5046_v9 = vadd.f32 %v5456_v3, %v5045_v5  ;;  %v5918_v10 = vpop.f32.mrb[3].mxu0 }
0x1e6c   : > { %5050 = vst [vmem:[%s7128_s5 + $0x8] sm:$0xff] %v5046_v9 }
0x1e6d PF: > { %s7129_s24 = sld [smem:[#allocation5_spill]]  ;;  %s7130_s3 = sld [smem:[#allocation4_spill]] }
0x1e6e   : > { %s7131_s28 = sld [smem:[#allocation6_spill]] }
0x1e73   : > { %s33_s29 = sadd.s32 1, %s7129_s24  }
0x1e74   : > { %p30_p7 = scmp.ge.s32.totalorder %s33_s29, 4  }
0x1e76   :  { %32 = sbr.rel (!%p30_p7) target bundleno = 15 (0xf), region = 200 }

</bundles_post_ra>
